<compile_context>
chip_gen: v6e
topology: v6e:2x2x1
jax: 0.10.0
libtpu: 0.0.40
codegen_flags: <defaults>
</compile_context>

<pallas_src>
import functools

import jax
import jax.numpy as jnp
from jax.experimental import pallas as pl
from jax.experimental.pallas import tpu as pltpu


# Geometry forced by repr_dim = 32*9*9: 24x24 input -> 12 -> 11 -> 10 -> 9.
_CONV_CH = 32
_IN_HW = 24
_W1_OUT = 12                               # spatial side after the stride-2 conv1
_FINAL_HW = 9                              # spatial side after conv4
_S_PER_B = _W1_OUT * _W1_OUT               # 144 flattened spatial lanes per image
_FC_BLOCK = 128                            # aligned lane block per (image, channel) in fc1 operand
_TAP_OFFS = (0, 1, _W1_OUT, _W1_OUT + 1)   # lane shift of 2x2 tap (di, dj) = di*12 + dj
_MAX_TB = 8                                # images per grid step for large batches

# Static asserts tying the garbage-column scheme to the geometry (review concern).
assert _W1_OUT == _IN_HW // 2
assert _FINAL_HW == _W1_OUT - 3                                    # three 2x2 stride-1 convs
# every valid conv4 output (h, w <= 8) lives inside the first _FC_BLOCK lanes of its image
assert (_FINAL_HW - 1) * _W1_OUT + (_FINAL_HW - 1) < _FC_BLOCK <= _S_PER_B
# tap reads of every *valid* conv output stay inside the producing image's 144-lane block
assert (_W1_OUT - 2) * (_W1_OUT + 1) + max(_TAP_OFFS) < _S_PER_B
assert _MAX_TB * _S_PER_B % 128 == 0                               # lane-dense x0 blocks at TB=8


# ------------------------------ fused kernel --------------------------------


def _qnet_kernel(x0_ref, w1_ref, b1_ref, w2_ref, b2_ref, w3_ref, b3_ref,
                 w4_ref, b4_ref, wfc1_ref, bfc1_ref, wfc2_ref, bfc2_ref,
                 o_ref, fcin_ref, *, tb):
    f32, bf16 = jnp.float32, jnp.bfloat16

    def shifted(x, off):
        # result[:, j] = x[:, j + off] for j < W-off; the wrapped tail columns are
        # finite garbage that never feeds a valid output (see static asserts).
        if off == 0:
            return x
        return jnp.concatenate([x[:, off:], x[:, :off]], axis=1)

    def conv2x2(x, w_ref, b_ref):
        # 2x2 stride-1 conv as ONE K=128 MXU matmul: stack the 4 lane-shifted tap
        # views along sublanes against the pre-stacked (32, 128) weight.  Width
        # stays tb*144; garbage columns land at positions later layers / fc1's
        # zero weight rows never read.
        stacked = jnp.concatenate([shifted(x, o) for o in _TAP_OFFS], axis=0)
        acc = jnp.dot(w_ref[...], stacked, preferred_element_type=f32)
        return jnp.maximum(acc + b_ref[...], 0.0)

    # conv1 (2x2, stride 2) == 1x1 conv on the space-to-depth input: one matmul.
    # obs/255 is folded into w1.
    x0 = x0_ref[0]                                             # (C*4, tb*144) bf16
    h = jnp.dot(w1_ref[...], x0, preferred_element_type=f32)
    h = jnp.maximum(h + b1_ref[...], 0.0)                      # (32, tb*144) f32

    h = conv2x2(h.astype(bf16), w2_ref, b2_ref)
    h = conv2x2(h.astype(bf16), w3_ref, b3_ref)
    h = conv2x2(h.astype(bf16), w4_ref, b4_ref)                # (32, tb*144) f32

    # Repack conv4's channel-major output into the fc1 operand (tb, 32*128):
    # one aligned 128-lane copy per (image, channel).  Invalid / padded lanes hit
    # all-zero rows of wfc1 so they contribute exactly 0.
    for b in range(tb):
        hb = h[:, b * _S_PER_B: b * _S_PER_B + _FC_BLOCK]      # (32, 128)
        for c in range(_CONV_CH):
            fcin_ref[b:b + 1, c * _FC_BLOCK:(c + 1) * _FC_BLOCK] = hb[c:c + 1, :]

    # fc1: ONE (tb, 4096) x (4096, hidden) matmul (was 32*B M=1 dots).
    hfc = jnp.dot(fcin_ref[...].astype(bf16), wfc1_ref[...],
                  preferred_element_type=f32)
    hfc = jnp.maximum(hfc + bfc1_ref[...], 0.0)                # (tb, hidden) f32

    # fc2 into a lane-dense 128-wide padded output (wrapper slices to action_dim).
    o_ref[...] = (jnp.dot(hfc.astype(bf16), wfc2_ref[...],
                          preferred_element_type=f32) + bfc2_ref[...])


# ------------------------- host-side one-time prep --------------------------


def prepare_params(params):
    """One-time re-layout of PyTorch-convention params into matmul-ready
    kernel operands (bf16 weights, f32 biases)."""
    hidden_dim = params["fc1_b"].shape[0]
    action_dim = params["fc2_b"].shape[0]
    assert action_dim <= 128
    f32, bf16 = jnp.float32, jnp.bfloat16
    p = {}
    # conv1: (32, C, 2, 2) -> (32, C*4); fold obs/255 into the weight.
    p["w1"] = (params["c1_w"].astype(f32).reshape(_CONV_CH, -1) / 255.0).astype(bf16)
    p["b1"] = params["c1_b"].reshape(_CONV_CH, 1).astype(f32)
    # conv2..4: pre-stack the 4 taps -> (32, 128); column = (di*2+dj)*32 + ic.
    for i in (2, 3, 4):
        w = params[f"c{i}_w"].astype(f32)                       # (oc, ic, di, dj)
        p[f"w{i}"] = w.transpose(0, 2, 3, 1).reshape(_CONV_CH, 4 * _CONV_CH).astype(bf16)
        p[f"b{i}"] = params[f"c{i}_b"].reshape(_CONV_CH, 1).astype(f32)
    # fc1: fold the NCHW flatten into per-channel 128-row blocks:
    # wfc1[c*128 + h*12 + w, n] = fc1_w[c*81 + h*9 + w, n] for h,w < 9, else 0.
    wfc = params["fc1_w"].astype(f32).reshape(_CONV_CH, _FINAL_HW, _FINAL_HW, hidden_dim)
    wz = jnp.zeros((_CONV_CH, _W1_OUT, _W1_OUT, hidden_dim), f32)
    wz = wz.at[:, :_FINAL_HW, :_FINAL_HW, :].set(wfc)
    wz = wz.reshape(_CONV_CH, _S_PER_B, hidden_dim)[:, :_FC_BLOCK, :]
    p["wfc1"] = wz.reshape(_CONV_CH * _FC_BLOCK, hidden_dim).astype(bf16)
    p["bfc1"] = params["fc1_b"].reshape(1, hidden_dim).astype(f32)
    # fc2: pad output columns to 128 for a lane-dense final store.
    wfc2 = jnp.zeros((hidden_dim, 128), f32).at[:, :action_dim].set(
        params["fc2_w"].astype(f32))
    p["wfc2"] = wfc2.astype(bf16)
    p["bfc2"] = jnp.zeros((1, 128), f32).at[:, :action_dim].set(
        params["fc2_b"].astype(f32))
    return p


@functools.partial(jax.jit, static_argnames=("action_dim",))
def qnet_encoder_forward(obs, prepped, *, action_dim):
    B, C, H, W = obs.shape
    assert H == _IN_HW and W == _IN_HW, "repr_dim = 32*9*9 forces 24x24 inputs"

    tb = B if B <= _MAX_TB else _MAX_TB
    g = pl.cdiv(B, tb)
    b_pad = g * tb
    if b_pad != B:
        obs = jnp.pad(obs, ((0, b_pad - B), (0, 0), (0, 0), (0, 0)))

    # Space-to-depth so the stride-2 conv1 becomes a plain matmul; per-grid-step
    # channel-major layout: x0[i, c*4+di*2+dj, t*144 + ho*12 + wo].
    # TODO(synk): this single XLA transpose of the (small) obs tensor could be
    # moved in-kernel (strided-tap conv1) to save one HBM round trip of obs.
    x = obs.astype(jnp.float32).reshape(g, tb, C, _W1_OUT, 2, _W1_OUT, 2)
    x0 = x.transpose(0, 2, 4, 6, 1, 3, 5).reshape(g, C * 4, tb * _S_PER_B)
    x0 = x0.astype(jnp.bfloat16)

    vmem = pl.BlockSpec(memory_space=pltpu.MemorySpace.VMEM)
    out = pl.pallas_call(
        functools.partial(_qnet_kernel, tb=tb),
        grid=(g,),
        in_specs=[pl.BlockSpec((1, C * 4, tb * _S_PER_B), lambda i: (i, 0, 0))]
                 + [vmem] * 12,
        out_specs=pl.BlockSpec((tb, 128), lambda i: (i, 0)),
        out_shape=jax.ShapeDtypeStruct((b_pad, 128), jnp.float32),
        scratch_shapes=[pltpu.VMEM((tb, _CONV_CH * _FC_BLOCK), jnp.float32)],
        compiler_params=pltpu.CompilerParams(
            dimension_semantics=("parallel",),
            vmem_limit_bytes=48 * 1024 * 1024),
    )(x0, prepped["w1"], prepped["b1"], prepped["w2"], prepped["b2"],
      prepped["w3"], prepped["b3"], prepped["w4"], prepped["b4"],
      prepped["wfc1"], prepped["bfc1"], prepped["wfc2"], prepped["bfc2"])
    return out[:B, :action_dim]


# ------------------------- pure-JAX reference + init ------------------------


def qnet_encoder_reference(obs, params):
    """Plain-XLA reference of the PyTorch module (for correctness checking)."""
    x = obs.astype(jnp.float32) / 255.0
    dn = ("NCHW", "OIHW", "NCHW")
    hp = jax.lax.Precision.HIGHEST

    def conv(x, w, b, stride):
        y = jax.lax.conv_general_dilated(
            x, w, (stride, stride), "VALID", dimension_numbers=dn, precision=hp)
        return jax.nn.relu(y + b.reshape(1, -1, 1, 1))

    x = conv(x, params["c1_w"], params["c1_b"], 2)
    x = conv(x, params["c2_w"], params["c2_b"], 1)
    x = conv(x, params["c3_w"], params["c3_b"], 1)
    x = conv(x, params["c4_w"], params["c4_b"], 1)
    h = x.reshape(x.shape[0], -1)                              # NCHW flatten
    h = jax.nn.relu(jnp.dot(h, params["fc1_w"], precision=hp) + params["fc1_b"])
    return jnp.dot(h, params["fc2_w"], precision=hp) + params["fc2_b"]


def init_params(key, obs_channels, hidden_dim, action_dim):
    # TODO(synk): utils.weight_init uses orthogonal init; deterministic scaled
    # normals with zero bias are used here as a stand-in (same shapes/dtypes).
    repr_dim = 32 * 9 * 9
    ks = jax.random.split(key, 6)

    def w(k, shape, fan_in):
        return jax.random.normal(k, shape, jnp.float32) / jnp.sqrt(fan_in)

    return {
        "c1_w": w(ks[0], (32, obs_channels, 2, 2), obs_channels * 4),
        "c1_b": jnp.zeros((32,), jnp.float32),
        "c2_w": w(ks[1], (32, 32, 2, 2), 32 * 4),
        "c2_b": jnp.zeros((32,), jnp.float32),
        "c3_w": w(ks[2], (32, 32, 2, 2), 32 * 4),
        "c3_b": jnp.zeros((32,), jnp.float32),
        "c4_w": w(ks[3], (32, 32, 2, 2), 32 * 4),
        "c4_b": jnp.zeros((32,), jnp.float32),
        "fc1_w": w(ks[4], (repr_dim, hidden_dim), repr_dim),
        "fc1_b": jnp.zeros((hidden_dim,), jnp.float32),
        "fc2_w": w(ks[5], (hidden_dim, action_dim), hidden_dim),
        "fc2_b": jnp.zeros((action_dim,), jnp.float32),
    }


if __name__ == "__main__":
    key = jax.random.PRNGKey(0)
    k_obs, k_par = jax.random.split(key)

    # repr_dim = 32*9*9 forces 24x24 spatial input:
    # 24 -conv(2,s2)-> 12 -conv(2,s1)-> 11 -> 10 -> 9
    B, C = 2, 4
    hidden_dim, action_dim = 32, 6

    obs = jax.random.uniform(k_obs, (B, C, _IN_HW, _IN_HW), jnp.float32, 0.0, 255.0)
    params = init_params(k_par, C, hidden_dim, action_dim)
    prepped = prepare_params(params)

    out = qnet_encoder_forward(obs, prepped, action_dim=action_dim)
    out = jax.block_until_ready(out)
    assert out.shape == (B, action_dim), out.shape
    assert out.dtype == jnp.float32

    # Semantics check against the plain-XLA f32 reference.  The kernel feeds the
    # MXU bf16 operands (with f32 accumulation), so a 2e-2 tolerance covers the
    # input-rounding drift; a layout/permutation bug shows up as O(0.1+) errors.
    ref = qnet_encoder_reference(obs, params)
    max_err = float(jnp.max(jnp.abs(out - ref)))
    assert jnp.allclose(out, ref, rtol=2e-2, atol=2e-2), max_err

    print("KERNEL_OK")
</pallas_src>

<mosaic_0001>
module attributes {stable_mosaic.version = 11 : i64} {
  func.func @_qnet_kernel(%arg0: i32, %arg1: memref<1x16x288xbf16, #tpu.memory_space<vmem>>, %arg2: memref<32x16xbf16, #tpu.memory_space<vmem>>, %arg3: memref<32x1xf32, #tpu.memory_space<vmem>>, %arg4: memref<32x128xbf16, #tpu.memory_space<vmem>>, %arg5: memref<32x1xf32, #tpu.memory_space<vmem>>, %arg6: memref<32x128xbf16, #tpu.memory_space<vmem>>, %arg7: memref<32x1xf32, #tpu.memory_space<vmem>>, %arg8: memref<32x128xbf16, #tpu.memory_space<vmem>>, %arg9: memref<32x1xf32, #tpu.memory_space<vmem>>, %arg10: memref<4096x32xbf16, #tpu.memory_space<vmem>>, %arg11: memref<1x32xf32, #tpu.memory_space<vmem>>, %arg12: memref<32x128xbf16, #tpu.memory_space<vmem>>, %arg13: memref<1x128xf32, #tpu.memory_space<vmem>>, %arg14: memref<2x128xf32, #tpu.memory_space<vmem>>, %arg15: memref<2x4096xf32, #tpu.memory_space<vmem>>) attributes {dimension_semantics = [#tpu.dimension_semantics<parallel>], iteration_bounds = array<i64: 1>, scalar_prefetch = 0 : i64, scratch_operands = 1 : i64, tpu.core_type = #tpu.core_type<tc>, window_params = [{transform_indices = @transform_0, window_bounds = array<i64: 1, 16, 288>}, {pipeline_mode = #tpu.pipeline_mode<synchronous>, transform_indices = @transform_1, window_bounds = array<i64: 32, 16>}, {pipeline_mode = #tpu.pipeline_mode<synchronous>, transform_indices = @transform_2, window_bounds = array<i64: 32, 1>}, {pipeline_mode = #tpu.pipeline_mode<synchronous>, transform_indices = @transform_3, window_bounds = array<i64: 32, 128>}, {pipeline_mode = #tpu.pipeline_mode<synchronous>, transform_indices = @transform_4, window_bounds = array<i64: 32, 1>}, {pipeline_mode = #tpu.pipeline_mode<synchronous>, transform_indices = @transform_5, window_bounds = array<i64: 32, 128>}, {pipeline_mode = #tpu.pipeline_mode<synchronous>, transform_indices = @transform_6, window_bounds = array<i64: 32, 1>}, {pipeline_mode = #tpu.pipeline_mode<synchronous>, transform_indices = @transform_7, window_bounds = array<i64: 32, 128>}, {pipeline_mode = #tpu.pipeline_mode<synchronous>, transform_indices = @transform_8, window_bounds = array<i64: 32, 1>}, {pipeline_mode = #tpu.pipeline_mode<synchronous>, transform_indices = @transform_9, window_bounds = array<i64: 4096, 32>}, {pipeline_mode = #tpu.pipeline_mode<synchronous>, transform_indices = @transform_10, window_bounds = array<i64: 1, 32>}, {pipeline_mode = #tpu.pipeline_mode<synchronous>, transform_indices = @transform_11, window_bounds = array<i64: 32, 128>}, {pipeline_mode = #tpu.pipeline_mode<synchronous>, transform_indices = @transform_12, window_bounds = array<i64: 1, 128>}, {transform_indices = @transform_13, window_bounds = array<i64: 2, 128>}]} {
    %c0 = arith.constant 0 : index
    %c0_0 = arith.constant 0 : index
    %c0_1 = arith.constant 0 : index
    %0 = vector.load %arg1[%c0, %c0_0, %c0_1] : memref<1x16x288xbf16, #tpu.memory_space<vmem>>, vector<1x16x288xbf16>
    %1 = vector.shape_cast %0 : vector<1x16x288xbf16> to vector<16x288xbf16>
    %c0_2 = arith.constant 0 : index
    %c0_3 = arith.constant 0 : index
    %2 = vector.load %arg2[%c0_2, %c0_3] : memref<32x16xbf16, #tpu.memory_space<vmem>>, vector<32x16xbf16>
    %cst = arith.constant dense<0.000000e+00> : vector<32x288xf32>
    %3 = tpu.matmul %2, %1, %cst {dimension_numbers = #tpu.dot_dimension_numbers<[1], [0], [0], [1], [0, 0, 1, 1], [], []>} : vector<32x16xbf16>, vector<16x288xbf16>, vector<32x288xf32> -> vector<32x288xf32>
    %c0_4 = arith.constant 0 : index
    %c0_5 = arith.constant 0 : index
    %4 = vector.load %arg3[%c0_4, %c0_5] : memref<32x1xf32, #tpu.memory_space<vmem>>, vector<32x1xf32>
    %5 = vector.broadcast %4 : vector<32x1xf32> to vector<32x288xf32>
    %6 = arith.addf %3, %5 : vector<32x288xf32>
    %cst_6 = arith.constant 0.000000e+00 : f32
    %7 = vector.broadcast %cst_6 : f32 to vector<32x288xf32>
    %8 = arith.maximumf %6, %7 : vector<32x288xf32>
    %9 = arith.truncf %8 : vector<32x288xf32> to vector<32x288xbf16>
    %10 = vector.extract_strided_slice %9 {offsets = [0, 1], sizes = [32, 287], strides = [1, 1]} : vector<32x288xbf16> to vector<32x287xbf16>
    %11 = vector.extract_strided_slice %9 {offsets = [0, 0], sizes = [32, 1], strides = [1, 1]} : vector<32x288xbf16> to vector<32x1xbf16>
    %12 = tpu.concatenate %10, %11 in 1 : vector<32x287xbf16>, vector<32x1xbf16> -> vector<32x288xbf16>
    %13 = vector.extract_strided_slice %9 {offsets = [0, 12], sizes = [32, 276], strides = [1, 1]} : vector<32x288xbf16> to vector<32x276xbf16>
    %14 = vector.extract_strided_slice %9 {offsets = [0, 0], sizes = [32, 12], strides = [1, 1]} : vector<32x288xbf16> to vector<32x12xbf16>
    %15 = tpu.concatenate %13, %14 in 1 : vector<32x276xbf16>, vector<32x12xbf16> -> vector<32x288xbf16>
    %16 = vector.extract_strided_slice %9 {offsets = [0, 13], sizes = [32, 275], strides = [1, 1]} : vector<32x288xbf16> to vector<32x275xbf16>
    %17 = vector.extract_strided_slice %9 {offsets = [0, 0], sizes = [32, 13], strides = [1, 1]} : vector<32x288xbf16> to vector<32x13xbf16>
    %18 = tpu.concatenate %16, %17 in 1 : vector<32x275xbf16>, vector<32x13xbf16> -> vector<32x288xbf16>
    %19 = tpu.concatenate %9, %12, %15, %18 in 0 : vector<32x288xbf16>, vector<32x288xbf16>, vector<32x288xbf16>, vector<32x288xbf16> -> vector<128x288xbf16>
    %c0_7 = arith.constant 0 : index
    %c0_8 = arith.constant 0 : index
    %20 = vector.load %arg4[%c0_7, %c0_8] : memref<32x128xbf16, #tpu.memory_space<vmem>>, vector<32x128xbf16>
    %cst_9 = arith.constant dense<0.000000e+00> : vector<32x288xf32>
    %21 = tpu.matmul %20, %19, %cst_9 {dimension_numbers = #tpu.dot_dimension_numbers<[1], [0], [0], [1], [0, 0, 1, 1], [], []>} : vector<32x128xbf16>, vector<128x288xbf16>, vector<32x288xf32> -> vector<32x288xf32>
    %c0_10 = arith.constant 0 : index
    %c0_11 = arith.constant 0 : index
    %22 = vector.load %arg5[%c0_10, %c0_11] : memref<32x1xf32, #tpu.memory_space<vmem>>, vector<32x1xf32>
    %23 = vector.broadcast %22 : vector<32x1xf32> to vector<32x288xf32>
    %24 = arith.addf %21, %23 : vector<32x288xf32>
    %cst_12 = arith.constant 0.000000e+00 : f32
    %25 = vector.broadcast %cst_12 : f32 to vector<32x288xf32>
    %26 = arith.maximumf %24, %25 : vector<32x288xf32>
    %27 = arith.truncf %26 : vector<32x288xf32> to vector<32x288xbf16>
    %28 = vector.extract_strided_slice %27 {offsets = [0, 1], sizes = [32, 287], strides = [1, 1]} : vector<32x288xbf16> to vector<32x287xbf16>
    %29 = vector.extract_strided_slice %27 {offsets = [0, 0], sizes = [32, 1], strides = [1, 1]} : vector<32x288xbf16> to vector<32x1xbf16>
    %30 = tpu.concatenate %28, %29 in 1 : vector<32x287xbf16>, vector<32x1xbf16> -> vector<32x288xbf16>
    %31 = vector.extract_strided_slice %27 {offsets = [0, 12], sizes = [32, 276], strides = [1, 1]} : vector<32x288xbf16> to vector<32x276xbf16>
    %32 = vector.extract_strided_slice %27 {offsets = [0, 0], sizes = [32, 12], strides = [1, 1]} : vector<32x288xbf16> to vector<32x12xbf16>
    %33 = tpu.concatenate %31, %32 in 1 : vector<32x276xbf16>, vector<32x12xbf16> -> vector<32x288xbf16>
    %34 = vector.extract_strided_slice %27 {offsets = [0, 13], sizes = [32, 275], strides = [1, 1]} : vector<32x288xbf16> to vector<32x275xbf16>
    %35 = vector.extract_strided_slice %27 {offsets = [0, 0], sizes = [32, 13], strides = [1, 1]} : vector<32x288xbf16> to vector<32x13xbf16>
    %36 = tpu.concatenate %34, %35 in 1 : vector<32x275xbf16>, vector<32x13xbf16> -> vector<32x288xbf16>
    %37 = tpu.concatenate %27, %30, %33, %36 in 0 : vector<32x288xbf16>, vector<32x288xbf16>, vector<32x288xbf16>, vector<32x288xbf16> -> vector<128x288xbf16>
    %c0_13 = arith.constant 0 : index
    %c0_14 = arith.constant 0 : index
    %38 = vector.load %arg6[%c0_13, %c0_14] : memref<32x128xbf16, #tpu.memory_space<vmem>>, vector<32x128xbf16>
    %cst_15 = arith.constant dense<0.000000e+00> : vector<32x288xf32>
    %39 = tpu.matmul %38, %37, %cst_15 {dimension_numbers = #tpu.dot_dimension_numbers<[1], [0], [0], [1], [0, 0, 1, 1], [], []>} : vector<32x128xbf16>, vector<128x288xbf16>, vector<32x288xf32> -> vector<32x288xf32>
    %c0_16 = arith.constant 0 : index
    %c0_17 = arith.constant 0 : index
    %40 = vector.load %arg7[%c0_16, %c0_17] : memref<32x1xf32, #tpu.memory_space<vmem>>, vector<32x1xf32>
    %41 = vector.broadcast %40 : vector<32x1xf32> to vector<32x288xf32>
    %42 = arith.addf %39, %41 : vector<32x288xf32>
    %cst_18 = arith.constant 0.000000e+00 : f32
    %43 = vector.broadcast %cst_18 : f32 to vector<32x288xf32>
    %44 = arith.maximumf %42, %43 : vector<32x288xf32>
    %45 = arith.truncf %44 : vector<32x288xf32> to vector<32x288xbf16>
    %46 = vector.extract_strided_slice %45 {offsets = [0, 1], sizes = [32, 287], strides = [1, 1]} : vector<32x288xbf16> to vector<32x287xbf16>
    %47 = vector.extract_strided_slice %45 {offsets = [0, 0], sizes = [32, 1], strides = [1, 1]} : vector<32x288xbf16> to vector<32x1xbf16>
    %48 = tpu.concatenate %46, %47 in 1 : vector<32x287xbf16>, vector<32x1xbf16> -> vector<32x288xbf16>
    %49 = vector.extract_strided_slice %45 {offsets = [0, 12], sizes = [32, 276], strides = [1, 1]} : vector<32x288xbf16> to vector<32x276xbf16>
    %50 = vector.extract_strided_slice %45 {offsets = [0, 0], sizes = [32, 12], strides = [1, 1]} : vector<32x288xbf16> to vector<32x12xbf16>
    %51 = tpu.concatenate %49, %50 in 1 : vector<32x276xbf16>, vector<32x12xbf16> -> vector<32x288xbf16>
    %52 = vector.extract_strided_slice %45 {offsets = [0, 13], sizes = [32, 275], strides = [1, 1]} : vector<32x288xbf16> to vector<32x275xbf16>
    %53 = vector.extract_strided_slice %45 {offsets = [0, 0], sizes = [32, 13], strides = [1, 1]} : vector<32x288xbf16> to vector<32x13xbf16>
    %54 = tpu.concatenate %52, %53 in 1 : vector<32x275xbf16>, vector<32x13xbf16> -> vector<32x288xbf16>
    %55 = tpu.concatenate %45, %48, %51, %54 in 0 : vector<32x288xbf16>, vector<32x288xbf16>, vector<32x288xbf16>, vector<32x288xbf16> -> vector<128x288xbf16>
    %c0_19 = arith.constant 0 : index
    %c0_20 = arith.constant 0 : index
    %56 = vector.load %arg8[%c0_19, %c0_20] : memref<32x128xbf16, #tpu.memory_space<vmem>>, vector<32x128xbf16>
    %cst_21 = arith.constant dense<0.000000e+00> : vector<32x288xf32>
    %57 = tpu.matmul %56, %55, %cst_21 {dimension_numbers = #tpu.dot_dimension_numbers<[1], [0], [0], [1], [0, 0, 1, 1], [], []>} : vector<32x128xbf16>, vector<128x288xbf16>, vector<32x288xf32> -> vector<32x288xf32>
    %c0_22 = arith.constant 0 : index
    %c0_23 = arith.constant 0 : index
    %58 = vector.load %arg9[%c0_22, %c0_23] : memref<32x1xf32, #tpu.memory_space<vmem>>, vector<32x1xf32>
    %59 = vector.broadcast %58 : vector<32x1xf32> to vector<32x288xf32>
    %60 = arith.addf %57, %59 : vector<32x288xf32>
    %cst_24 = arith.constant 0.000000e+00 : f32
    %61 = vector.broadcast %cst_24 : f32 to vector<32x288xf32>
    %62 = arith.maximumf %60, %61 : vector<32x288xf32>
    %63 = vector.extract_strided_slice %62 {offsets = [0, 0], sizes = [32, 128], strides = [1, 1]} : vector<32x288xf32> to vector<32x128xf32>
    %64 = vector.extract_strided_slice %63 {offsets = [0, 0], sizes = [1, 128], strides = [1, 1]} : vector<32x128xf32> to vector<1x128xf32>
    %c0_25 = arith.constant 0 : index
    %c0_26 = arith.constant 0 : index
    %65 = vector.load %arg15[%c0_25, %c0_26] : memref<2x4096xf32, #tpu.memory_space<vmem>>, vector<1x128xf32>
    tpu.vector_store %arg15[%c0_25, %c0_26], %64 {strides = array<i32>} : memref<2x4096xf32, #tpu.memory_space<vmem>>, vector<1x128xf32>,
    %66 = vector.extract_strided_slice %63 {offsets = [1, 0], sizes = [1, 128], strides = [1, 1]} : vector<32x128xf32> to vector<1x128xf32>
    %c0_27 = arith.constant 0 : index
    %c128 = arith.constant 128 : index
    %67 = vector.load %arg15[%c0_27, %c128] : memref<2x4096xf32, #tpu.memory_space<vmem>>, vector<1x128xf32>
    tpu.vector_store %arg15[%c0_27, %c128], %66 {strides = array<i32>} : memref<2x4096xf32, #tpu.memory_space<vmem>>, vector<1x128xf32>,
    %68 = vector.extract_strided_slice %63 {offsets = [2, 0], sizes = [1, 128], strides = [1, 1]} : vector<32x128xf32> to vector<1x128xf32>
    %c0_28 = arith.constant 0 : index
    %c256 = arith.constant 256 : index
    %69 = vector.load %arg15[%c0_28, %c256] : memref<2x4096xf32, #tpu.memory_space<vmem>>, vector<1x128xf32>
    tpu.vector_store %arg15[%c0_28, %c256], %68 {strides = array<i32>} : memref<2x4096xf32, #tpu.memory_space<vmem>>, vector<1x128xf32>,
    %70 = vector.extract_strided_slice %63 {offsets = [3, 0], sizes = [1, 128], strides = [1, 1]} : vector<32x128xf32> to vector<1x128xf32>
    %c0_29 = arith.constant 0 : index
    %c384 = arith.constant 384 : index
    %71 = vector.load %arg15[%c0_29, %c384] : memref<2x4096xf32, #tpu.memory_space<vmem>>, vector<1x128xf32>
    tpu.vector_store %arg15[%c0_29, %c384], %70 {strides = array<i32>} : memref<2x4096xf32, #tpu.memory_space<vmem>>, vector<1x128xf32>,
    %72 = vector.extract_strided_slice %63 {offsets = [4, 0], sizes = [1, 128], strides = [1, 1]} : vector<32x128xf32> to vector<1x128xf32>
    %c0_30 = arith.constant 0 : index
    %c512 = arith.constant 512 : index
    %73 = vector.load %arg15[%c0_30, %c512] : memref<2x4096xf32, #tpu.memory_space<vmem>>, vector<1x128xf32>
    tpu.vector_store %arg15[%c0_30, %c512], %72 {strides = array<i32>} : memref<2x4096xf32, #tpu.memory_space<vmem>>, vector<1x128xf32>,
    %74 = vector.extract_strided_slice %63 {offsets = [5, 0], sizes = [1, 128], strides = [1, 1]} : vector<32x128xf32> to vector<1x128xf32>
    %c0_31 = arith.constant 0 : index
    %c640 = arith.constant 640 : index
    %75 = vector.load %arg15[%c0_31, %c640] : memref<2x4096xf32, #tpu.memory_space<vmem>>, vector<1x128xf32>
    tpu.vector_store %arg15[%c0_31, %c640], %74 {strides = array<i32>} : memref<2x4096xf32, #tpu.memory_space<vmem>>, vector<1x128xf32>,
    %76 = vector.extract_strided_slice %63 {offsets = [6, 0], sizes = [1, 128], strides = [1, 1]} : vector<32x128xf32> to vector<1x128xf32>
    %c0_32 = arith.constant 0 : index
    %c768 = arith.constant 768 : index
    %77 = vector.load %arg15[%c0_32, %c768] : memref<2x4096xf32, #tpu.memory_space<vmem>>, vector<1x128xf32>
    tpu.vector_store %arg15[%c0_32, %c768], %76 {strides = array<i32>} : memref<2x4096xf32, #tpu.memory_space<vmem>>, vector<1x128xf32>,
    %78 = vector.extract_strided_slice %63 {offsets = [7, 0], sizes = [1, 128], strides = [1, 1]} : vector<32x128xf32> to vector<1x128xf32>
    %c0_33 = arith.constant 0 : index
    %c896 = arith.constant 896 : index
    %79 = vector.load %arg15[%c0_33, %c896] : memref<2x4096xf32, #tpu.memory_space<vmem>>, vector<1x128xf32>
    tpu.vector_store %arg15[%c0_33, %c896], %78 {strides = array<i32>} : memref<2x4096xf32, #tpu.memory_space<vmem>>, vector<1x128xf32>,
    %80 = vector.extract_strided_slice %63 {offsets = [8, 0], sizes = [1, 128], strides = [1, 1]} : vector<32x128xf32> to vector<1x128xf32>
    %c0_34 = arith.constant 0 : index
    %c1024 = arith.constant 1024 : index
    %81 = vector.load %arg15[%c0_34, %c1024] : memref<2x4096xf32, #tpu.memory_space<vmem>>, vector<1x128xf32>
    tpu.vector_store %arg15[%c0_34, %c1024], %80 {strides = array<i32>} : memref<2x4096xf32, #tpu.memory_space<vmem>>, vector<1x128xf32>,
    %82 = vector.extract_strided_slice %63 {offsets = [9, 0], sizes = [1, 128], strides = [1, 1]} : vector<32x128xf32> to vector<1x128xf32>
    %c0_35 = arith.constant 0 : index
    %c1152 = arith.constant 1152 : index
    %83 = vector.load %arg15[%c0_35, %c1152] : memref<2x4096xf32, #tpu.memory_space<vmem>>, vector<1x128xf32>
    tpu.vector_store %arg15[%c0_35, %c1152], %82 {strides = array<i32>} : memref<2x4096xf32, #tpu.memory_space<vmem>>, vector<1x128xf32>,
    %84 = vector.extract_strided_slice %63 {offsets = [10, 0], sizes = [1, 128], strides = [1, 1]} : vector<32x128xf32> to vector<1x128xf32>
    %c0_36 = arith.constant 0 : index
    %c1280 = arith.constant 1280 : index
    %85 = vector.load %arg15[%c0_36, %c1280] : memref<2x4096xf32, #tpu.memory_space<vmem>>, vector<1x128xf32>
    tpu.vector_store %arg15[%c0_36, %c1280], %84 {strides = array<i32>} : memref<2x4096xf32, #tpu.memory_space<vmem>>, vector<1x128xf32>,
    %86 = vector.extract_strided_slice %63 {offsets = [11, 0], sizes = [1, 128], strides = [1, 1]} : vector<32x128xf32> to vector<1x128xf32>
    %c0_37 = arith.constant 0 : index
    %c1408 = arith.constant 1408 : index
    %87 = vector.load %arg15[%c0_37, %c1408] : memref<2x4096xf32, #tpu.memory_space<vmem>>, vector<1x128xf32>
    tpu.vector_store %arg15[%c0_37, %c1408], %86 {strides = array<i32>} : memref<2x4096xf32, #tpu.memory_space<vmem>>, vector<1x128xf32>,
    %88 = vector.extract_strided_slice %63 {offsets = [12, 0], sizes = [1, 128], strides = [1, 1]} : vector<32x128xf32> to vector<1x128xf32>
    %c0_38 = arith.constant 0 : index
    %c1536 = arith.constant 1536 : index
    %89 = vector.load %arg15[%c0_38, %c1536] : memref<2x4096xf32, #tpu.memory_space<vmem>>, vector<1x128xf32>
    tpu.vector_store %arg15[%c0_38, %c1536], %88 {strides = array<i32>} : memref<2x4096xf32, #tpu.memory_space<vmem>>, vector<1x128xf32>,
    %90 = vector.extract_strided_slice %63 {offsets = [13, 0], sizes = [1, 128], strides = [1, 1]} : vector<32x128xf32> to vector<1x128xf32>
    %c0_39 = arith.constant 0 : index
    %c1664 = arith.constant 1664 : index
    %91 = vector.load %arg15[%c0_39, %c1664] : memref<2x4096xf32, #tpu.memory_space<vmem>>, vector<1x128xf32>
    tpu.vector_store %arg15[%c0_39, %c1664], %90 {strides = array<i32>} : memref<2x4096xf32, #tpu.memory_space<vmem>>, vector<1x128xf32>,
    %92 = vector.extract_strided_slice %63 {offsets = [14, 0], sizes = [1, 128], strides = [1, 1]} : vector<32x128xf32> to vector<1x128xf32>
    %c0_40 = arith.constant 0 : index
    %c1792 = arith.constant 1792 : index
    %93 = vector.load %arg15[%c0_40, %c1792] : memref<2x4096xf32, #tpu.memory_space<vmem>>, vector<1x128xf32>
    tpu.vector_store %arg15[%c0_40, %c1792], %92 {strides = array<i32>} : memref<2x4096xf32, #tpu.memory_space<vmem>>, vector<1x128xf32>,
    %94 = vector.extract_strided_slice %63 {offsets = [15, 0], sizes = [1, 128], strides = [1, 1]} : vector<32x128xf32> to vector<1x128xf32>
    %c0_41 = arith.constant 0 : index
    %c1920 = arith.constant 1920 : index
    %95 = vector.load %arg15[%c0_41, %c1920] : memref<2x4096xf32, #tpu.memory_space<vmem>>, vector<1x128xf32>
    tpu.vector_store %arg15[%c0_41, %c1920], %94 {strides = array<i32>} : memref<2x4096xf32, #tpu.memory_space<vmem>>, vector<1x128xf32>,
    %96 = vector.extract_strided_slice %63 {offsets = [16, 0], sizes = [1, 128], strides = [1, 1]} : vector<32x128xf32> to vector<1x128xf32>
    %c0_42 = arith.constant 0 : index
    %c2048 = arith.constant 2048 : index
    %97 = vector.load %arg15[%c0_42, %c2048] : memref<2x4096xf32, #tpu.memory_space<vmem>>, vector<1x128xf32>
    tpu.vector_store %arg15[%c0_42, %c2048], %96 {strides = array<i32>} : memref<2x4096xf32, #tpu.memory_space<vmem>>, vector<1x128xf32>,
    %98 = vector.extract_strided_slice %63 {offsets = [17, 0], sizes = [1, 128], strides = [1, 1]} : vector<32x128xf32> to vector<1x128xf32>
    %c0_43 = arith.constant 0 : index
    %c2176 = arith.constant 2176 : index
    %99 = vector.load %arg15[%c0_43, %c2176] : memref<2x4096xf32, #tpu.memory_space<vmem>>, vector<1x128xf32>
    tpu.vector_store %arg15[%c0_43, %c2176], %98 {strides = array<i32>} : memref<2x4096xf32, #tpu.memory_space<vmem>>, vector<1x128xf32>,
    %100 = vector.extract_strided_slice %63 {offsets = [18, 0], sizes = [1, 128], strides = [1, 1]} : vector<32x128xf32> to vector<1x128xf32>
    %c0_44 = arith.constant 0 : index
    %c2304 = arith.constant 2304 : index
    %101 = vector.load %arg15[%c0_44, %c2304] : memref<2x4096xf32, #tpu.memory_space<vmem>>, vector<1x128xf32>
    tpu.vector_store %arg15[%c0_44, %c2304], %100 {strides = array<i32>} : memref<2x4096xf32, #tpu.memory_space<vmem>>, vector<1x128xf32>,
    %102 = vector.extract_strided_slice %63 {offsets = [19, 0], sizes = [1, 128], strides = [1, 1]} : vector<32x128xf32> to vector<1x128xf32>
    %c0_45 = arith.constant 0 : index
    %c2432 = arith.constant 2432 : index
    %103 = vector.load %arg15[%c0_45, %c2432] : memref<2x4096xf32, #tpu.memory_space<vmem>>, vector<1x128xf32>
    tpu.vector_store %arg15[%c0_45, %c2432], %102 {strides = array<i32>} : memref<2x4096xf32, #tpu.memory_space<vmem>>, vector<1x128xf32>,
    %104 = vector.extract_strided_slice %63 {offsets = [20, 0], sizes = [1, 128], strides = [1, 1]} : vector<32x128xf32> to vector<1x128xf32>
    %c0_46 = arith.constant 0 : index
    %c2560 = arith.constant 2560 : index
    %105 = vector.load %arg15[%c0_46, %c2560] : memref<2x4096xf32, #tpu.memory_space<vmem>>, vector<1x128xf32>
    tpu.vector_store %arg15[%c0_46, %c2560], %104 {strides = array<i32>} : memref<2x4096xf32, #tpu.memory_space<vmem>>, vector<1x128xf32>,
    %106 = vector.extract_strided_slice %63 {offsets = [21, 0], sizes = [1, 128], strides = [1, 1]} : vector<32x128xf32> to vector<1x128xf32>
    %c0_47 = arith.constant 0 : index
    %c2688 = arith.constant 2688 : index
    %107 = vector.load %arg15[%c0_47, %c2688] : memref<2x4096xf32, #tpu.memory_space<vmem>>, vector<1x128xf32>
    tpu.vector_store %arg15[%c0_47, %c2688], %106 {strides = array<i32>} : memref<2x4096xf32, #tpu.memory_space<vmem>>, vector<1x128xf32>,
    %108 = vector.extract_strided_slice %63 {offsets = [22, 0], sizes = [1, 128], strides = [1, 1]} : vector<32x128xf32> to vector<1x128xf32>
    %c0_48 = arith.constant 0 : index
    %c2816 = arith.constant 2816 : index
    %109 = vector.load %arg15[%c0_48, %c2816] : memref<2x4096xf32, #tpu.memory_space<vmem>>, vector<1x128xf32>
    tpu.vector_store %arg15[%c0_48, %c2816], %108 {strides = array<i32>} : memref<2x4096xf32, #tpu.memory_space<vmem>>, vector<1x128xf32>,
    %110 = vector.extract_strided_slice %63 {offsets = [23, 0], sizes = [1, 128], strides = [1, 1]} : vector<32x128xf32> to vector<1x128xf32>
    %c0_49 = arith.constant 0 : index
    %c2944 = arith.constant 2944 : index
    %111 = vector.load %arg15[%c0_49, %c2944] : memref<2x4096xf32, #tpu.memory_space<vmem>>, vector<1x128xf32>
    tpu.vector_store %arg15[%c0_49, %c2944], %110 {strides = array<i32>} : memref<2x4096xf32, #tpu.memory_space<vmem>>, vector<1x128xf32>,
    %112 = vector.extract_strided_slice %63 {offsets = [24, 0], sizes = [1, 128], strides = [1, 1]} : vector<32x128xf32> to vector<1x128xf32>
    %c0_50 = arith.constant 0 : index
    %c3072 = arith.constant 3072 : index
    %113 = vector.load %arg15[%c0_50, %c3072] : memref<2x4096xf32, #tpu.memory_space<vmem>>, vector<1x128xf32>
    tpu.vector_store %arg15[%c0_50, %c3072], %112 {strides = array<i32>} : memref<2x4096xf32, #tpu.memory_space<vmem>>, vector<1x128xf32>,
    %114 = vector.extract_strided_slice %63 {offsets = [25, 0], sizes = [1, 128], strides = [1, 1]} : vector<32x128xf32> to vector<1x128xf32>
    %c0_51 = arith.constant 0 : index
    %c3200 = arith.constant 3200 : index
    %115 = vector.load %arg15[%c0_51, %c3200] : memref<2x4096xf32, #tpu.memory_space<vmem>>, vector<1x128xf32>
    tpu.vector_store %arg15[%c0_51, %c3200], %114 {strides = array<i32>} : memref<2x4096xf32, #tpu.memory_space<vmem>>, vector<1x128xf32>,
    %116 = vector.extract_strided_slice %63 {offsets = [26, 0], sizes = [1, 128], strides = [1, 1]} : vector<32x128xf32> to vector<1x128xf32>
    %c0_52 = arith.constant 0 : index
    %c3328 = arith.constant 3328 : index
    %117 = vector.load %arg15[%c0_52, %c3328] : memref<2x4096xf32, #tpu.memory_space<vmem>>, vector<1x128xf32>
    tpu.vector_store %arg15[%c0_52, %c3328], %116 {strides = array<i32>} : memref<2x4096xf32, #tpu.memory_space<vmem>>, vector<1x128xf32>,
    %118 = vector.extract_strided_slice %63 {offsets = [27, 0], sizes = [1, 128], strides = [1, 1]} : vector<32x128xf32> to vector<1x128xf32>
    %c0_53 = arith.constant 0 : index
    %c3456 = arith.constant 3456 : index
    %119 = vector.load %arg15[%c0_53, %c3456] : memref<2x4096xf32, #tpu.memory_space<vmem>>, vector<1x128xf32>
    tpu.vector_store %arg15[%c0_53, %c3456], %118 {strides = array<i32>} : memref<2x4096xf32, #tpu.memory_space<vmem>>, vector<1x128xf32>,
    %120 = vector.extract_strided_slice %63 {offsets = [28, 0], sizes = [1, 128], strides = [1, 1]} : vector<32x128xf32> to vector<1x128xf32>
    %c0_54 = arith.constant 0 : index
    %c3584 = arith.constant 3584 : index
    %121 = vector.load %arg15[%c0_54, %c3584] : memref<2x4096xf32, #tpu.memory_space<vmem>>, vector<1x128xf32>
    tpu.vector_store %arg15[%c0_54, %c3584], %120 {strides = array<i32>} : memref<2x4096xf32, #tpu.memory_space<vmem>>, vector<1x128xf32>,
    %122 = vector.extract_strided_slice %63 {offsets = [29, 0], sizes = [1, 128], strides = [1, 1]} : vector<32x128xf32> to vector<1x128xf32>
    %c0_55 = arith.constant 0 : index
    %c3712 = arith.constant 3712 : index
    %123 = vector.load %arg15[%c0_55, %c3712] : memref<2x4096xf32, #tpu.memory_space<vmem>>, vector<1x128xf32>
    tpu.vector_store %arg15[%c0_55, %c3712], %122 {strides = array<i32>} : memref<2x4096xf32, #tpu.memory_space<vmem>>, vector<1x128xf32>,
    %124 = vector.extract_strided_slice %63 {offsets = [30, 0], sizes = [1, 128], strides = [1, 1]} : vector<32x128xf32> to vector<1x128xf32>
    %c0_56 = arith.constant 0 : index
    %c3840 = arith.constant 3840 : index
    %125 = vector.load %arg15[%c0_56, %c3840] : memref<2x4096xf32, #tpu.memory_space<vmem>>, vector<1x128xf32>
    tpu.vector_store %arg15[%c0_56, %c3840], %124 {strides = array<i32>} : memref<2x4096xf32, #tpu.memory_space<vmem>>, vector<1x128xf32>,
    %126 = vector.extract_strided_slice %63 {offsets = [31, 0], sizes = [1, 128], strides = [1, 1]} : vector<32x128xf32> to vector<1x128xf32>
    %c0_57 = arith.constant 0 : index
    %c3968 = arith.constant 3968 : index
    %127 = vector.load %arg15[%c0_57, %c3968] : memref<2x4096xf32, #tpu.memory_space<vmem>>, vector<1x128xf32>
    tpu.vector_store %arg15[%c0_57, %c3968], %126 {strides = array<i32>} : memref<2x4096xf32, #tpu.memory_space<vmem>>, vector<1x128xf32>,
    %128 = vector.extract_strided_slice %62 {offsets = [0, 144], sizes = [32, 128], strides = [1, 1]} : vector<32x288xf32> to vector<32x128xf32>
    %129 = vector.extract_strided_slice %128 {offsets = [0, 0], sizes = [1, 128], strides = [1, 1]} : vector<32x128xf32> to vector<1x128xf32>
    %c1 = arith.constant 1 : index
    %c0_58 = arith.constant 0 : index
    %130 = vector.load %arg15[%c1, %c0_58] : memref<2x4096xf32, #tpu.memory_space<vmem>>, vector<1x128xf32>
    tpu.vector_store %arg15[%c1, %c0_58], %129 {strides = array<i32>} : memref<2x4096xf32, #tpu.memory_space<vmem>>, vector<1x128xf32>,
    %131 = vector.extract_strided_slice %128 {offsets = [1, 0], sizes = [1, 128], strides = [1, 1]} : vector<32x128xf32> to vector<1x128xf32>
    %c1_59 = arith.constant 1 : index
    %c128_60 = arith.constant 128 : index
    %132 = vector.load %arg15[%c1_59, %c128_60] : memref<2x4096xf32, #tpu.memory_space<vmem>>, vector<1x128xf32>
    tpu.vector_store %arg15[%c1_59, %c128_60], %131 {strides = array<i32>} : memref<2x4096xf32, #tpu.memory_space<vmem>>, vector<1x128xf32>,
    %133 = vector.extract_strided_slice %128 {offsets = [2, 0], sizes = [1, 128], strides = [1, 1]} : vector<32x128xf32> to vector<1x128xf32>
    %c1_61 = arith.constant 1 : index
    %c256_62 = arith.constant 256 : index
    %134 = vector.load %arg15[%c1_61, %c256_62] : memref<2x4096xf32, #tpu.memory_space<vmem>>, vector<1x128xf32>
    tpu.vector_store %arg15[%c1_61, %c256_62], %133 {strides = array<i32>} : memref<2x4096xf32, #tpu.memory_space<vmem>>, vector<1x128xf32>,
    %135 = vector.extract_strided_slice %128 {offsets = [3, 0], sizes = [1, 128], strides = [1, 1]} : vector<32x128xf32> to vector<1x128xf32>
    %c1_63 = arith.constant 1 : index
    %c384_64 = arith.constant 384 : index
    %136 = vector.load %arg15[%c1_63, %c384_64] : memref<2x4096xf32, #tpu.memory_space<vmem>>, vector<1x128xf32>
    tpu.vector_store %arg15[%c1_63, %c384_64], %135 {strides = array<i32>} : memref<2x4096xf32, #tpu.memory_space<vmem>>, vector<1x128xf32>,
    %137 = vector.extract_strided_slice %128 {offsets = [4, 0], sizes = [1, 128], strides = [1, 1]} : vector<32x128xf32> to vector<1x128xf32>
    %c1_65 = arith.constant 1 : index
    %c512_66 = arith.constant 512 : index
    %138 = vector.load %arg15[%c1_65, %c512_66] : memref<2x4096xf32, #tpu.memory_space<vmem>>, vector<1x128xf32>
    tpu.vector_store %arg15[%c1_65, %c512_66], %137 {strides = array<i32>} : memref<2x4096xf32, #tpu.memory_space<vmem>>, vector<1x128xf32>,
    %139 = vector.extract_strided_slice %128 {offsets = [5, 0], sizes = [1, 128], strides = [1, 1]} : vector<32x128xf32> to vector<1x128xf32>
    %c1_67 = arith.constant 1 : index
    %c640_68 = arith.constant 640 : index
    %140 = vector.load %arg15[%c1_67, %c640_68] : memref<2x4096xf32, #tpu.memory_space<vmem>>, vector<1x128xf32>
    tpu.vector_store %arg15[%c1_67, %c640_68], %139 {strides = array<i32>} : memref<2x4096xf32, #tpu.memory_space<vmem>>, vector<1x128xf32>,
    %141 = vector.extract_strided_slice %128 {offsets = [6, 0], sizes = [1, 128], strides = [1, 1]} : vector<32x128xf32> to vector<1x128xf32>
    %c1_69 = arith.constant 1 : index
    %c768_70 = arith.constant 768 : index
    %142 = vector.load %arg15[%c1_69, %c768_70] : memref<2x4096xf32, #tpu.memory_space<vmem>>, vector<1x128xf32>
    tpu.vector_store %arg15[%c1_69, %c768_70], %141 {strides = array<i32>} : memref<2x4096xf32, #tpu.memory_space<vmem>>, vector<1x128xf32>,
    %143 = vector.extract_strided_slice %128 {offsets = [7, 0], sizes = [1, 128], strides = [1, 1]} : vector<32x128xf32> to vector<1x128xf32>
    %c1_71 = arith.constant 1 : index
    %c896_72 = arith.constant 896 : index
    %144 = vector.load %arg15[%c1_71, %c896_72] : memref<2x4096xf32, #tpu.memory_space<vmem>>, vector<1x128xf32>
    tpu.vector_store %arg15[%c1_71, %c896_72], %143 {strides = array<i32>} : memref<2x4096xf32, #tpu.memory_space<vmem>>, vector<1x128xf32>,
    %145 = vector.extract_strided_slice %128 {offsets = [8, 0], sizes = [1, 128], strides = [1, 1]} : vector<32x128xf32> to vector<1x128xf32>
    %c1_73 = arith.constant 1 : index
    %c1024_74 = arith.constant 1024 : index
    %146 = vector.load %arg15[%c1_73, %c1024_74] : memref<2x4096xf32, #tpu.memory_space<vmem>>, vector<1x128xf32>
    tpu.vector_store %arg15[%c1_73, %c1024_74], %145 {strides = array<i32>} : memref<2x4096xf32, #tpu.memory_space<vmem>>, vector<1x128xf32>,
    %147 = vector.extract_strided_slice %128 {offsets = [9, 0], sizes = [1, 128], strides = [1, 1]} : vector<32x128xf32> to vector<1x128xf32>
    %c1_75 = arith.constant 1 : index
    %c1152_76 = arith.constant 1152 : index
    %148 = vector.load %arg15[%c1_75, %c1152_76] : memref<2x4096xf32, #tpu.memory_space<vmem>>, vector<1x128xf32>
    tpu.vector_store %arg15[%c1_75, %c1152_76], %147 {strides = array<i32>} : memref<2x4096xf32, #tpu.memory_space<vmem>>, vector<1x128xf32>,
    %149 = vector.extract_strided_slice %128 {offsets = [10, 0], sizes = [1, 128], strides = [1, 1]} : vector<32x128xf32> to vector<1x128xf32>
    %c1_77 = arith.constant 1 : index
    %c1280_78 = arith.constant 1280 : index
    %150 = vector.load %arg15[%c1_77, %c1280_78] : memref<2x4096xf32, #tpu.memory_space<vmem>>, vector<1x128xf32>
    tpu.vector_store %arg15[%c1_77, %c1280_78], %149 {strides = array<i32>} : memref<2x4096xf32, #tpu.memory_space<vmem>>, vector<1x128xf32>,
    %151 = vector.extract_strided_slice %128 {offsets = [11, 0], sizes = [1, 128], strides = [1, 1]} : vector<32x128xf32> to vector<1x128xf32>
    %c1_79 = arith.constant 1 : index
    %c1408_80 = arith.constant 1408 : index
    %152 = vector.load %arg15[%c1_79, %c1408_80] : memref<2x4096xf32, #tpu.memory_space<vmem>>, vector<1x128xf32>
    tpu.vector_store %arg15[%c1_79, %c1408_80], %151 {strides = array<i32>} : memref<2x4096xf32, #tpu.memory_space<vmem>>, vector<1x128xf32>,
    %153 = vector.extract_strided_slice %128 {offsets = [12, 0], sizes = [1, 128], strides = [1, 1]} : vector<32x128xf32> to vector<1x128xf32>
    %c1_81 = arith.constant 1 : index
    %c1536_82 = arith.constant 1536 : index
    %154 = vector.load %arg15[%c1_81, %c1536_82] : memref<2x4096xf32, #tpu.memory_space<vmem>>, vector<1x128xf32>
    tpu.vector_store %arg15[%c1_81, %c1536_82], %153 {strides = array<i32>} : memref<2x4096xf32, #tpu.memory_space<vmem>>, vector<1x128xf32>,
    %155 = vector.extract_strided_slice %128 {offsets = [13, 0], sizes = [1, 128], strides = [1, 1]} : vector<32x128xf32> to vector<1x128xf32>
    %c1_83 = arith.constant 1 : index
    %c1664_84 = arith.constant 1664 : index
    %156 = vector.load %arg15[%c1_83, %c1664_84] : memref<2x4096xf32, #tpu.memory_space<vmem>>, vector<1x128xf32>
    tpu.vector_store %arg15[%c1_83, %c1664_84], %155 {strides = array<i32>} : memref<2x4096xf32, #tpu.memory_space<vmem>>, vector<1x128xf32>,
    %157 = vector.extract_strided_slice %128 {offsets = [14, 0], sizes = [1, 128], strides = [1, 1]} : vector<32x128xf32> to vector<1x128xf32>
    %c1_85 = arith.constant 1 : index
    %c1792_86 = arith.constant 1792 : index
    %158 = vector.load %arg15[%c1_85, %c1792_86] : memref<2x4096xf32, #tpu.memory_space<vmem>>, vector<1x128xf32>
    tpu.vector_store %arg15[%c1_85, %c1792_86], %157 {strides = array<i32>} : memref<2x4096xf32, #tpu.memory_space<vmem>>, vector<1x128xf32>,
    %159 = vector.extract_strided_slice %128 {offsets = [15, 0], sizes = [1, 128], strides = [1, 1]} : vector<32x128xf32> to vector<1x128xf32>
    %c1_87 = arith.constant 1 : index
    %c1920_88 = arith.constant 1920 : index
    %160 = vector.load %arg15[%c1_87, %c1920_88] : memref<2x4096xf32, #tpu.memory_space<vmem>>, vector<1x128xf32>
    tpu.vector_store %arg15[%c1_87, %c1920_88], %159 {strides = array<i32>} : memref<2x4096xf32, #tpu.memory_space<vmem>>, vector<1x128xf32>,
    %161 = vector.extract_strided_slice %128 {offsets = [16, 0], sizes = [1, 128], strides = [1, 1]} : vector<32x128xf32> to vector<1x128xf32>
    %c1_89 = arith.constant 1 : index
    %c2048_90 = arith.constant 2048 : index
    %162 = vector.load %arg15[%c1_89, %c2048_90] : memref<2x4096xf32, #tpu.memory_space<vmem>>, vector<1x128xf32>
    tpu.vector_store %arg15[%c1_89, %c2048_90], %161 {strides = array<i32>} : memref<2x4096xf32, #tpu.memory_space<vmem>>, vector<1x128xf32>,
    %163 = vector.extract_strided_slice %128 {offsets = [17, 0], sizes = [1, 128], strides = [1, 1]} : vector<32x128xf32> to vector<1x128xf32>
    %c1_91 = arith.constant 1 : index
    %c2176_92 = arith.constant 2176 : index
    %164 = vector.load %arg15[%c1_91, %c2176_92] : memref<2x4096xf32, #tpu.memory_space<vmem>>, vector<1x128xf32>
    tpu.vector_store %arg15[%c1_91, %c2176_92], %163 {strides = array<i32>} : memref<2x4096xf32, #tpu.memory_space<vmem>>, vector<1x128xf32>,
    %165 = vector.extract_strided_slice %128 {offsets = [18, 0], sizes = [1, 128], strides = [1, 1]} : vector<32x128xf32> to vector<1x128xf32>
    %c1_93 = arith.constant 1 : index
    %c2304_94 = arith.constant 2304 : index
    %166 = vector.load %arg15[%c1_93, %c2304_94] : memref<2x4096xf32, #tpu.memory_space<vmem>>, vector<1x128xf32>
    tpu.vector_store %arg15[%c1_93, %c2304_94], %165 {strides = array<i32>} : memref<2x4096xf32, #tpu.memory_space<vmem>>, vector<1x128xf32>,
    %167 = vector.extract_strided_slice %128 {offsets = [19, 0], sizes = [1, 128], strides = [1, 1]} : vector<32x128xf32> to vector<1x128xf32>
    %c1_95 = arith.constant 1 : index
    %c2432_96 = arith.constant 2432 : index
    %168 = vector.load %arg15[%c1_95, %c2432_96] : memref<2x4096xf32, #tpu.memory_space<vmem>>, vector<1x128xf32>
    tpu.vector_store %arg15[%c1_95, %c2432_96], %167 {strides = array<i32>} : memref<2x4096xf32, #tpu.memory_space<vmem>>, vector<1x128xf32>,
    %169 = vector.extract_strided_slice %128 {offsets = [20, 0], sizes = [1, 128], strides = [1, 1]} : vector<32x128xf32> to vector<1x128xf32>
    %c1_97 = arith.constant 1 : index
    %c2560_98 = arith.constant 2560 : index
    %170 = vector.load %arg15[%c1_97, %c2560_98] : memref<2x4096xf32, #tpu.memory_space<vmem>>, vector<1x128xf32>
    tpu.vector_store %arg15[%c1_97, %c2560_98], %169 {strides = array<i32>} : memref<2x4096xf32, #tpu.memory_space<vmem>>, vector<1x128xf32>,
    %171 = vector.extract_strided_slice %128 {offsets = [21, 0], sizes = [1, 128], strides = [1, 1]} : vector<32x128xf32> to vector<1x128xf32>
    %c1_99 = arith.constant 1 : index
    %c2688_100 = arith.constant 2688 : index
    %172 = vector.load %arg15[%c1_99, %c2688_100] : memref<2x4096xf32, #tpu.memory_space<vmem>>, vector<1x128xf32>
    tpu.vector_store %arg15[%c1_99, %c2688_100], %171 {strides = array<i32>} : memref<2x4096xf32, #tpu.memory_space<vmem>>, vector<1x128xf32>,
    %173 = vector.extract_strided_slice %128 {offsets = [22, 0], sizes = [1, 128], strides = [1, 1]} : vector<32x128xf32> to vector<1x128xf32>
    %c1_101 = arith.constant 1 : index
    %c2816_102 = arith.constant 2816 : index
    %174 = vector.load %arg15[%c1_101, %c2816_102] : memref<2x4096xf32, #tpu.memory_space<vmem>>, vector<1x128xf32>
    tpu.vector_store %arg15[%c1_101, %c2816_102], %173 {strides = array<i32>} : memref<2x4096xf32, #tpu.memory_space<vmem>>, vector<1x128xf32>,
    %175 = vector.extract_strided_slice %128 {offsets = [23, 0], sizes = [1, 128], strides = [1, 1]} : vector<32x128xf32> to vector<1x128xf32>
    %c1_103 = arith.constant 1 : index
    %c2944_104 = arith.constant 2944 : index
    %176 = vector.load %arg15[%c1_103, %c2944_104] : memref<2x4096xf32, #tpu.memory_space<vmem>>, vector<1x128xf32>
    tpu.vector_store %arg15[%c1_103, %c2944_104], %175 {strides = array<i32>} : memref<2x4096xf32, #tpu.memory_space<vmem>>, vector<1x128xf32>,
    %177 = vector.extract_strided_slice %128 {offsets = [24, 0], sizes = [1, 128], strides = [1, 1]} : vector<32x128xf32> to vector<1x128xf32>
    %c1_105 = arith.constant 1 : index
    %c3072_106 = arith.constant 3072 : index
    %178 = vector.load %arg15[%c1_105, %c3072_106] : memref<2x4096xf32, #tpu.memory_space<vmem>>, vector<1x128xf32>
    tpu.vector_store %arg15[%c1_105, %c3072_106], %177 {strides = array<i32>} : memref<2x4096xf32, #tpu.memory_space<vmem>>, vector<1x128xf32>,
    %179 = vector.extract_strided_slice %128 {offsets = [25, 0], sizes = [1, 128], strides = [1, 1]} : vector<32x128xf32> to vector<1x128xf32>
    %c1_107 = arith.constant 1 : index
    %c3200_108 = arith.constant 3200 : index
    %180 = vector.load %arg15[%c1_107, %c3200_108] : memref<2x4096xf32, #tpu.memory_space<vmem>>, vector<1x128xf32>
    tpu.vector_store %arg15[%c1_107, %c3200_108], %179 {strides = array<i32>} : memref<2x4096xf32, #tpu.memory_space<vmem>>, vector<1x128xf32>,
    %181 = vector.extract_strided_slice %128 {offsets = [26, 0], sizes = [1, 128], strides = [1, 1]} : vector<32x128xf32> to vector<1x128xf32>
    %c1_109 = arith.constant 1 : index
    %c3328_110 = arith.constant 3328 : index
    %182 = vector.load %arg15[%c1_109, %c3328_110] : memref<2x4096xf32, #tpu.memory_space<vmem>>, vector<1x128xf32>
    tpu.vector_store %arg15[%c1_109, %c3328_110], %181 {strides = array<i32>} : memref<2x4096xf32, #tpu.memory_space<vmem>>, vector<1x128xf32>,
    %183 = vector.extract_strided_slice %128 {offsets = [27, 0], sizes = [1, 128], strides = [1, 1]} : vector<32x128xf32> to vector<1x128xf32>
    %c1_111 = arith.constant 1 : index
    %c3456_112 = arith.constant 3456 : index
    %184 = vector.load %arg15[%c1_111, %c3456_112] : memref<2x4096xf32, #tpu.memory_space<vmem>>, vector<1x128xf32>
    tpu.vector_store %arg15[%c1_111, %c3456_112], %183 {strides = array<i32>} : memref<2x4096xf32, #tpu.memory_space<vmem>>, vector<1x128xf32>,
    %185 = vector.extract_strided_slice %128 {offsets = [28, 0], sizes = [1, 128], strides = [1, 1]} : vector<32x128xf32> to vector<1x128xf32>
    %c1_113 = arith.constant 1 : index
    %c3584_114 = arith.constant 3584 : index
    %186 = vector.load %arg15[%c1_113, %c3584_114] : memref<2x4096xf32, #tpu.memory_space<vmem>>, vector<1x128xf32>
    tpu.vector_store %arg15[%c1_113, %c3584_114], %185 {strides = array<i32>} : memref<2x4096xf32, #tpu.memory_space<vmem>>, vector<1x128xf32>,
    %187 = vector.extract_strided_slice %128 {offsets = [29, 0], sizes = [1, 128], strides = [1, 1]} : vector<32x128xf32> to vector<1x128xf32>
    %c1_115 = arith.constant 1 : index
    %c3712_116 = arith.constant 3712 : index
    %188 = vector.load %arg15[%c1_115, %c3712_116] : memref<2x4096xf32, #tpu.memory_space<vmem>>, vector<1x128xf32>
    tpu.vector_store %arg15[%c1_115, %c3712_116], %187 {strides = array<i32>} : memref<2x4096xf32, #tpu.memory_space<vmem>>, vector<1x128xf32>,
    %189 = vector.extract_strided_slice %128 {offsets = [30, 0], sizes = [1, 128], strides = [1, 1]} : vector<32x128xf32> to vector<1x128xf32>
    %c1_117 = arith.constant 1 : index
    %c3840_118 = arith.constant 3840 : index
    %190 = vector.load %arg15[%c1_117, %c3840_118] : memref<2x4096xf32, #tpu.memory_space<vmem>>, vector<1x128xf32>
    tpu.vector_store %arg15[%c1_117, %c3840_118], %189 {strides = array<i32>} : memref<2x4096xf32, #tpu.memory_space<vmem>>, vector<1x128xf32>,
    %191 = vector.extract_strided_slice %128 {offsets = [31, 0], sizes = [1, 128], strides = [1, 1]} : vector<32x128xf32> to vector<1x128xf32>
    %c1_119 = arith.constant 1 : index
    %c3968_120 = arith.constant 3968 : index
    %192 = vector.load %arg15[%c1_119, %c3968_120] : memref<2x4096xf32, #tpu.memory_space<vmem>>, vector<1x128xf32>
    tpu.vector_store %arg15[%c1_119, %c3968_120], %191 {strides = array<i32>} : memref<2x4096xf32, #tpu.memory_space<vmem>>, vector<1x128xf32>,
    %c0_121 = arith.constant 0 : index
    %c0_122 = arith.constant 0 : index
    %193 = vector.load %arg15[%c0_121, %c0_122] : memref<2x4096xf32, #tpu.memory_space<vmem>>, vector<2x4096xf32>
    %194 = arith.truncf %193 : vector<2x4096xf32> to vector<2x4096xbf16>
    %c0_123 = arith.constant 0 : index
    %c0_124 = arith.constant 0 : index
    %195 = vector.load %arg10[%c0_123, %c0_124] : memref<4096x32xbf16, #tpu.memory_space<vmem>>, vector<4096x32xbf16>
    %cst_125 = arith.constant dense<0.000000e+00> : vector<2x32xf32>
    %196 = tpu.matmul %194, %195, %cst_125 {dimension_numbers = #tpu.dot_dimension_numbers<[1], [0], [0], [1], [0, 0, 1, 1], [], []>} : vector<2x4096xbf16>, vector<4096x32xbf16>, vector<2x32xf32> -> vector<2x32xf32>
    %c0_126 = arith.constant 0 : index
    %c0_127 = arith.constant 0 : index
    %197 = vector.load %arg11[%c0_126, %c0_127] : memref<1x32xf32, #tpu.memory_space<vmem>>, vector<1x32xf32>
    %198 = vector.broadcast %197 : vector<1x32xf32> to vector<2x32xf32>
    %199 = arith.addf %196, %198 : vector<2x32xf32>
    %cst_128 = arith.constant 0.000000e+00 : f32
    %200 = vector.broadcast %cst_128 : f32 to vector<2x32xf32>
    %201 = arith.maximumf %199, %200 : vector<2x32xf32>
    %202 = arith.truncf %201 : vector<2x32xf32> to vector<2x32xbf16>
    %c0_129 = arith.constant 0 : index
    %c0_130 = arith.constant 0 : index
    %203 = vector.load %arg12[%c0_129, %c0_130] : memref<32x128xbf16, #tpu.memory_space<vmem>>, vector<32x128xbf16>
    %cst_131 = arith.constant dense<0.000000e+00> : vector<2x128xf32>
    %204 = tpu.matmul %202, %203, %cst_131 {dimension_numbers = #tpu.dot_dimension_numbers<[1], [0], [0], [1], [0, 0, 1, 1], [], []>} : vector<2x32xbf16>, vector<32x128xbf16>, vector<2x128xf32> -> vector<2x128xf32>
    %c0_132 = arith.constant 0 : index
    %c0_133 = arith.constant 0 : index
    %205 = vector.load %arg13[%c0_132, %c0_133] : memref<1x128xf32, #tpu.memory_space<vmem>>, vector<1x128xf32>
    %206 = vector.broadcast %205 : vector<1x128xf32> to vector<2x128xf32>
    %207 = arith.addf %204, %206 : vector<2x128xf32>
    %c0_134 = arith.constant 0 : index
    %c0_135 = arith.constant 0 : index
    %208 = vector.load %arg14[%c0_134, %c0_135] : memref<2x128xf32, #tpu.memory_space<vmem>>, vector<2x128xf32>
    tpu.vector_store %arg14[%c0_134, %c0_135], %207 {strides = array<i32>} : memref<2x128xf32, #tpu.memory_space<vmem>>, vector<2x128xf32>,
    return
  }
  func.func @transform_0(%arg0: i32) -> (i32, i32, i32) {
    %c0_i32 = arith.constant 0 : i32
    %c0_i32_0 = arith.constant 0 : i32
    %c0_i32_1 = arith.constant 0 : i32
    return %arg0, %c0_i32, %c0_i32_0 : i32, i32, i32
  }
  func.func @transform_1(%arg0: i32) -> (i32, i32) {
    %c0_i32 = arith.constant 0 : i32
    %c0_i32_0 = arith.constant 0 : i32
    %c0_i32_1 = arith.constant 0 : i32
    return %c0_i32, %c0_i32_0 : i32, i32
  }
  func.func @transform_2(%arg0: i32) -> (i32, i32) {
    %c0_i32 = arith.constant 0 : i32
    %c0_i32_0 = arith.constant 0 : i32
    %c0_i32_1 = arith.constant 0 : i32
    return %c0_i32, %c0_i32_0 : i32, i32
  }
  func.func @transform_3(%arg0: i32) -> (i32, i32) {
    %c0_i32 = arith.constant 0 : i32
    %c0_i32_0 = arith.constant 0 : i32
    %c0_i32_1 = arith.constant 0 : i32
    return %c0_i32, %c0_i32_0 : i32, i32
  }
  func.func @transform_4(%arg0: i32) -> (i32, i32) {
    %c0_i32 = arith.constant 0 : i32
    %c0_i32_0 = arith.constant 0 : i32
    %c0_i32_1 = arith.constant 0 : i32
    return %c0_i32, %c0_i32_0 : i32, i32
  }
  func.func @transform_5(%arg0: i32) -> (i32, i32) {
    %c0_i32 = arith.constant 0 : i32
    %c0_i32_0 = arith.constant 0 : i32
    %c0_i32_1 = arith.constant 0 : i32
    return %c0_i32, %c0_i32_0 : i32, i32
  }
  func.func @transform_6(%arg0: i32) -> (i32, i32) {
    %c0_i32 = arith.constant 0 : i32
    %c0_i32_0 = arith.constant 0 : i32
    %c0_i32_1 = arith.constant 0 : i32
    return %c0_i32, %c0_i32_0 : i32, i32
  }
  func.func @transform_7(%arg0: i32) -> (i32, i32) {
    %c0_i32 = arith.constant 0 : i32
    %c0_i32_0 = arith.constant 0 : i32
    %c0_i32_1 = arith.constant 0 : i32
    return %c0_i32, %c0_i32_0 : i32, i32
  }
  func.func @transform_8(%arg0: i32) -> (i32, i32) {
    %c0_i32 = arith.constant 0 : i32
    %c0_i32_0 = arith.constant 0 : i32
    %c0_i32_1 = arith.constant 0 : i32
    return %c0_i32, %c0_i32_0 : i32, i32
  }
  func.func @transform_9(%arg0: i32) -> (i32, i32) {
    %c0_i32 = arith.constant 0 : i32
    %c0_i32_0 = arith.constant 0 : i32
    %c0_i32_1 = arith.constant 0 : i32
    return %c0_i32, %c0_i32_0 : i32, i32
  }
  func.func @transform_10(%arg0: i32) -> (i32, i32) {
    %c0_i32 = arith.constant 0 : i32
    %c0_i32_0 = arith.constant 0 : i32
    %c0_i32_1 = arith.constant 0 : i32
    return %c0_i32, %c0_i32_0 : i32, i32
  }
  func.func @transform_11(%arg0: i32) -> (i32, i32) {
    %c0_i32 = arith.constant 0 : i32
    %c0_i32_0 = arith.constant 0 : i32
    %c0_i32_1 = arith.constant 0 : i32
    return %c0_i32, %c0_i32_0 : i32, i32
  }
  func.func @transform_12(%arg0: i32) -> (i32, i32) {
    %c0_i32 = arith.constant 0 : i32
    %c0_i32_0 = arith.constant 0 : i32
    %c0_i32_1 = arith.constant 0 : i32
    return %c0_i32, %c0_i32_0 : i32, i32
  }
  func.func @transform_13(%arg0: i32) -> (i32, i32) {
    %c0_i32 = arith.constant 0 : i32
    %c0_i32_0 = arith.constant 0 : i32
    return %arg0, %c0_i32 : i32, i32
  }
}

</mosaic_0001>

<bundles_post_ra>
// kernel: qnet_encoder_forward.1
= control target key start
LH: loop header
LB: loop body
LE: loop exit
PB: predicated region body
PF: predicated region fallthrough
CT: control target
= control target key end

     0   :  { %vm104_vm0 = vcmask 130048   ;;  %v5568_v2 = vmov 0   ;;  %s6985_s0 = inlined_call_operand.vmem [shape: bf16[1,16,288], index: 0, kind: input, shape index: {}]   ;;  %s6986_s1 = inlined_call_operand.vmem [shape: bf16[32,16], index: 1, kind: input, shape index: {}]   ;;  %s6987_s2 = inlined_call_operand.vmem [shape: f32[32,1], index: 2, kind: input, shape index: {}]   ;;  %s6988_s3 = inlined_call_operand.vmem [shape: bf16[32,128], index: 3, kind: input, shape index: {}]   ;;  %s6989_s4 = inlined_call_operand.vmem [shape: f32[32,1], index: 4, kind: input, shape index: {}]   ;;  %s6990_s5 = inlined_call_operand.vmem [shape: bf16[32,128], index: 5, kind: input, shape index: {}]   ;;  %s6991_s6 = inlined_call_operand.vmem [shape: f32[32,1], index: 6, kind: input, shape index: {}]   ;;  %s6992_s7 = inlined_call_operand.vmem [shape: bf16[32,128], index: 7, kind: input, shape index: {}]   ;;  %s6993_s8 = inlined_call_operand.vmem [shape: f32[32,1], index: 8, kind: input, shape index: {}]   ;;  %s6994_s9 = inlined_call_operand.vmem [shape: bf16[4096,32], index: 9, kind: input, shape index: {}]   ;;  %s6995_s10 = inlined_call_operand.vmem [shape: f32[1,32], index: 10, kind: input, shape index: {}]   ;;  %s6996_s11 = inlined_call_operand.vmem [shape: bf16[32,128], index: 11, kind: input, shape index: {}]   ;;  %s6997_s12 = inlined_call_operand.vmem [shape: f32[1,128], index: 12, kind: input, shape index: {}]   ;;  %s6998_s13 = inlined_call_operand.hbm [shape: f32[2,128], index: 13, kind: output, shape index: {}]  }
   0x1   :  { %v5269_v0 = vld [vmem:[%s6985_s0 + $0x4] ss:$12 sps:$4 sm:$0xff]   ;;  %v5271_v1 = vld [vmem:[%s6985_s0 + $0x8] ss:$12 sps:$4 sm:$0xff]   ;;  %143 = vmatprep.mubr.bf16.mxu0 %v5568_v2  ;;  %5268 = vset.pattern.permute.xlu1 %v5568_v2  ;;  %v5272_v3 = vld [vmem:[%s6985_s0] ss:$12 sps:$4 sm:$0xff]  }
   0x2   :  { %125 = vmatprep.subr.bf16.mxu0 %v5269_v0  ;;  %5267 = vset.pattern.permute.xlu0 %v5568_v2  ;;  %v5273_v4 = vld [vmem:[%s6986_s1] sm:$0xff]   ;;  %v5274_v5 = vld [vmem:[%s6986_s1 + $0x8] sm:$0xff]   ;;  %v56_v6 = vld [vmem:[%s6987_s2 + $0x10] sm:$0xff] }
   0x3   :  { %5181 = vmatprep.subr.bf16.mxu1 %v5271_v1  ;;  %126 = vmatpush1.bf16.msra.mxu0 %v5272_v3  ;;  %v54_v7 = vld [vmem:[%s6987_s2] sm:$0xff]  ;;  %v57_v8 = vld [vmem:[%s6987_s2 + $0x18] sm:$0xff]  ;;  %v55_v9 = vld [vmem:[%s6987_s2 + $0x8] sm:$0xff] }
   0x4   :  { %5182 = vmatpush3.bf16.msra.mxu1 %v5271_v1  ;;  %5183 = vmatprep.mubr.msk.bf16.mxu1 %vm104_vm0, %v5273_v4 }
   0x5   :  { %70 = vperm.xlu0 %5267, %v56_v6   ;;  %60 = vperm.xlu1 %5268, %v54_v7  }
   0x6   :  { %4486 = vmatmul.mubr.msk.bf16.vlgmr.msra.gmra.mxu0 %vm104_vm0, %v5273_v4 }
   0x7   :  { %5184 = vmatmul.mubr.msk.bf16.vlgmr.msra.gmra.mxu1 %vm104_vm0, %v5274_v5  ;;  %153 = vmatprep.mubr.bf16.mxu0 %v5568_v2 }
   0x9   :  { %75 = vperm.xlu0 %5267, %v57_v8   ;;  %65 = vperm.xlu1 %5268, %v55_v9  }
   0xe   :  { %4487 = vmatmul.mubr.msk.bf16.gmra.mxu0 %vm104_vm0, %v5274_v5 }
   0xf   :  { %411 = vmatprep.mubr.bf16.mxu0 %v5568_v2 }
  0x10   :  { %18 = vsyncpa [#allocation4], 0  ;;  %s5569_s1 = smov 115   ;;  %s5570_s2 = smov 116   ;;  %v5743_v56 = vld [vmem:[%s6988_s3] sm:$0xff]   ;;  %v346_v57 = vld [vmem:[%s6989_s4 + $0x18] sm:$0xff] }
  0x11   :  { %s5571_s25 = smov 19   ;;  %s5572_s26 = smov 127   ;;  %5203 = vmatprep.mubr.bf16.mxu1 %v5743_v56  ;;  %v345_v58 = vld [vmem:[%s6989_s4 + $0x10] sm:$0xff]  ;;  %v344_v59 = vld [vmem:[%s6989_s4 + $0x8] sm:$0xff]  ;;  %v343_v60 = vld [vmem:[%s6989_s4] sm:$0xff]  ;;  %vm317_vm1 = vcmask 941056  }
  0x12   :  { %s5573_s27 = smov 20   ;;  %s5574_s30 = smov 31   ;;  %vm330_vm2 = vcmask 154624   ;;  %vm283_vm3 = vcmask 949248   ;;  %vm296_vm4 = vcmask 162816   ;;  %vm249_vm5 = vcmask 1039360  }
  0x13   :  { %vm262_vm6 = vcmask 252928   ;;  %vm1194_vm7 = vcmask 916480   ;;  %vm5578_vm8 = vmmov 0   ;;  %vm4422_vm9 = vcmask 261120  }
  0x80   :  { %v71_v10 = vpop.permute.xlu0 %70  ;;  %v61_v11 = vpop.permute.xlu1 %60 }
  0x84   :  { %v76_v17 = vpop.permute.xlu0 %75  ;;  %v66_v18 = vpop.permute.xlu1 %65 }
  0xc6   :  { %v145_v12 = vpop.f32.mrf.mxu0 }
  0xc7   :  { %v5185_v13 = vpop.f32.mrf.mxu1  ;;  %v146_v24 = vadd.f32 %v145_v12, %v61_v11 }
  0xc8   :  { %v147_v14 = vpop.f32.mrf.mxu0  ;;  %v207_v16 = vadd.f32 %v5185_v13, %v71_v10 }
  0xc9   :  { %v198_v15 = vpop.f32.mrf.mxu1  ;;  %v148_v31 = vadd.f32 %v147_v14, %v61_v11  ;;  %v213_v38 = vmax.f32 %v146_v24, 0.0 }
  0xca   :  { %v149_v19 = vpop.f32.mrf.mxu0  ;;  %v199_v21 = vadd.f32 %v198_v15, %v61_v11  ;;  %v221_v27 = vmax.f32 %v207_v16, 0.0 }
  0xcb   :  { %v5186_v20 = vpop.f32.mrf.mxu1  ;;  %v150_v22 = vadd.f32 %v149_v19, %v66_v18  ;;  %v214_v42 = vmax.f32 %v148_v31, 0.0 }
  0xcc   :  { %v210_v23 = vadd.f32 %v5186_v20, %v76_v17  ;;  %v151_v25 = vpop.f32.mrf.mxu0  ;;  %v215_v33 = vmax.f32 %v199_v21, 0.0 }
  0xcd   :  { %v201_v26 = vpop.f32.mrf.mxu1  ;;  %v152_v29 = vadd.f32 %v151_v25, %v66_v18  ;;  %v216_v34 = vmax.f32 %v150_v22, 0.0 }
  0xce   :  { %v224_v28 = vmax.f32 %v210_v23, 0.0  ;;  %v202_v30 = vadd.f32 %v201_v26, %v66_v18  ;;  %v155_v32 = vpop.f32.mrf.mxu0 }
  0xcf   :  { %v217_v39 = vmax.f32 %v152_v29, 0.0  ;;  %v5692_v43 = vpack.c.bf16 %v216_v34, %v213_v38  ;;  %v156_v44 = vadd.f32 %v155_v32, %v71_v10 }
  0xd0   :  { %v5686_v35 = vpack.c.bf16 %v224_v28, %v221_v27  ;;  %v218_v36 = vmax.f32 %v202_v30, 0.0  ;;  %v157_v37 = vpop.f32.mrf.mxu0 }
  0xd1   :  { %v5696_v46 = vpack.c.bf16 %v217_v39, %v214_v42  ;;  %v219_v49 = vmax.f32 %v156_v44, 0.0  ;;  %v158_v52 = vadd.f32 %v157_v37, %v71_v10  ;;  %v5276_v42 = vld [vmem:[%s6988_s3 + $0x8] sm:$0xff]   ;;  %s5579_s3 = smov [#allocation3]  }
  0xd2   :  { %v5688_v40 = vpack.c.bf16 %v218_v36, %v215_v33  ;;  %315 = vrot.lane.b32.xlu1 %v5686_v35, %s5569_s1  ;;  %v159_v41 = vpop.f32.mrf.mxu0  ;;  %s4473_s22 = sshll.u32 %s5579_s3, 4  ;;  %s4474_s22 = int_to_ptr.vmem [resolvable:$true] %s4473_s22 }
  0xd3   :  { %v160_v45 = vadd.f32 %v159_v41, %v76_v17  ;;  %v220_v54 = vmax.f32 %v158_v52, 0.0  ;;  %s5546_s23 = scalar_lea.vmem %s4474_s22, 32  ;;  %p5551_p1 = scmp.lt.s32.totalorder %s4474_s22, %s4474_s22 }
  0xd4   :  { %309 = vrot.lane.b32.xlu0 %v5688_v40, %s5569_s1  ;;  %v161_v48 = vpop.f32.mrf.mxu0  ;;  %p5547_p0 = scmp.ne.s32.totalorder %s4474_s22, %s5546_s23  ;;  %p5552_p2 = scmp.lt.s32.totalorder %s5546_s23, %s5546_s23 }
  0xd5   :  { %v222_v47 = vmax.f32 %v160_v45, 0.0  ;;  %v162_v51 = vadd.f32 %v161_v48, %v76_v17 }
  0xd6   :  { %305 = vrot.lane.b32.xlu1 %v5692_v43, %s5569_s1  ;;  %p5553_p3 = por %p5552_p2, %p5551_p1 }
  0xd7   :  { %v5702_v50 = vpack.c.bf16 %v222_v47, %v219_v49  ;;  %v223_v53 = vmax.f32 %v162_v51, 0.0 }
  0xd8   :  { %273 = vrot.lane.b32.xlu0 %v5696_v46, %s5570_s2  ;;  %p5554_p4 = pnand %p5553_p3, %p5547_p0 }
  0xd9   :  { %v5712_v55 = vpack.c.bf16 %v223_v53, %v220_v54 }
  0xda   :  { %281 = vrot.lane.b32.xlu1 %v5686_v35, %s5570_s2 }
  0xdc   :  { %311 = vrot.lane.b32.xlu0 %v5702_v50, %s5569_s1 }
  0xde   :  { %307 = vrot.lane.b32.xlu1 %v5696_v46, %s5569_s1 }
  0xe0   :  { %277 = vrot.lane.b32.xlu0 %v5702_v50, %s5570_s2 }
  0xe2   :  { %275 = vrot.lane.b32.xlu1 %v5688_v40, %s5570_s2 }
  0xe4   :  { %313 = vrot.lane.b32.xlu0 %v5712_v55, %s5569_s1 }
  0xe6   :  { %328 = vrot.lane.b32.xlu1 %v5702_v50, %s5571_s25 }
  0xe8   :  { %271 = vrot.lane.b32.xlu0 %v5692_v43, %s5570_s2 }
  0xea   :  { %326 = vrot.lane.b32.xlu1 %v5692_v43, %s5571_s25 }
  0xec   :  { %279 = vrot.lane.b32.xlu0 %v5712_v55, %s5570_s2 }
  0xee   :  { %247 = vrot.lane.b32.xlu1 %v5686_v35, %s5572_s26 }
  0xf0   :  { %243 = vrot.lane.b32.xlu0 %v5702_v50, %s5572_s26 }
  0xf2   :  { %294 = vrot.lane.b32.xlu1 %v5702_v50, %s5573_s27 }
  0xf4   :  { %245 = vrot.lane.b32.xlu0 %v5712_v55, %s5572_s26 }
  0xf6   :  { %241 = vrot.lane.b32.xlu1 %v5688_v40, %s5572_s26 }
  0xf8   :  { %239 = vrot.lane.b32.xlu0 %v5696_v46, %s5572_s26 }
  0xfa   :  { %292 = vrot.lane.b32.xlu1 %v5692_v43, %s5573_s27 }
  0xfc   :  { %237 = vrot.lane.b32.xlu0 %v5692_v43, %s5572_s26 }
  0xfe   :  { %258 = vrot.lane.b32.xlu1 %v5692_v43, %s5574_s30 }
 0x100   :  { %260 = vrot.lane.b32.xlu0 %v5702_v50, %s5574_s30 }
 0x102   :  { %364 = vperm.xlu1 %5268, %v346_v57  }
 0x104   :  { %359 = vperm.xlu0 %5267, %v345_v58  }
 0x106   :  { %354 = vperm.xlu1 %5268, %v344_v59  }
 0x108   :  { %349 = vperm.xlu0 %5267, %v343_v60  }
 0x144   :  { %v316_v61 = vpop.permute.xlu1 %315 }
 0x146   :  { %v310_v62 = vpop.permute.xlu0 %309 }
 0x148   :  { %v306_v63 = vpop.permute.xlu1 %305 }
 0x14a   :  { %v274_v0 = vpop.permute.xlu0 %273 }
 0x14c   :  { %v282_v1 = vpop.permute.xlu1 %281 }
 0x14e   :  { %v312_v3 = vpop.permute.xlu0 %311 }
 0x150   :  { %v308_v4 = vpop.permute.xlu1 %307 }
 0x151   :  { %v319_v11 = vsel %vm317_vm1, %v308_v4, %v310_v62  ;;  %v318_v15 = vsel %vm317_vm1, %v306_v63, %v308_v4 }
 0x152   :  { %v278_v5 = vpop.permute.xlu0 %277 }
 0x154   :  { %v276_v6 = vpop.permute.xlu1 %275 }
 0x155   :  { %v285_v21 = vsel %vm283_vm3, %v274_v0, %v276_v6 }
 0x156   :  { %v314_v7 = vpop.permute.xlu0 %313 }
 0x157   :  { %v321_v8 = vsel %vm317_vm1, %v314_v7, %v316_v61  ;;  %v320_v9 = vsel %vm317_vm1, %v312_v3, %v314_v7 }
 0x158   :  { %379 = vmatprep.subr.bf16.mxu0 %v321_v8  ;;  %v329_v10 = vpop.permute.xlu1 %328 }
 0x159   :  { %380 = vmatpush1.bf16.msra.mxu0 %v320_v9  ;;  %v337_v12 = vsel %vm330_vm2, %v316_v61, %v329_v10 }
 0x15a   :  { %v272_v13 = vpop.permute.xlu0 %271  ;;  %381 = vmatprep.subr.bf16.mxu0 %v319_v11  ;;  %5187 = vmatprep.subr.bf16.mxu1 %v337_v12 }
 0x15b   :  { %5188 = vmatpush3.bf16.msra.mxu1 %v337_v12  ;;  %v284_v23 = vsel %vm283_vm3, %v272_v13, %v274_v0 }
 0x15c   :  { %v327_v14 = vpop.permute.xlu1 %326 }
 0x15d   :  { %382 = vmatpush1.bf16.msra.mxu0 %v318_v15  ;;  %v333_v16 = vsel %vm330_vm2, %v310_v62, %v327_v14 }
 0x15e   :  { %v280_v17 = vpop.permute.xlu0 %279  ;;  %5189 = vmatprep.subr.bf16.mxu1 %v333_v16 }
 0x15f   :  { %5190 = vmatpush3.bf16.msra.mxu1 %v333_v16  ;;  %v287_v18 = vsel %vm283_vm3, %v280_v17, %v282_v1  ;;  %v286_v19 = vsel %vm283_vm3, %v278_v5, %v280_v17 }
 0x160   :  { %383 = vmatprep.subr.bf16.mxu0 %v287_v18  ;;  %v248_v20 = vpop.permute.xlu1 %247 }
 0x161   :  { %384 = vmatpush1.bf16.msra.mxu0 %v286_v19 }
 0x162   :  { %v244_v22 = vpop.permute.xlu0 %243  ;;  %385 = vmatprep.subr.bf16.mxu0 %v285_v21 }
 0x164   :  { %v295_v24 = vpop.permute.xlu1 %294 }
 0x165   :  { %386 = vmatpush1.bf16.msra.mxu0 %v284_v23  ;;  %v303_v25 = vsel %vm296_vm4, %v282_v1, %v295_v24  ;;  %v5853_v24 = vld [vmem:[%s6990_s5] sm:$0xff]  }
 0x166   :  { %v246_v26 = vpop.permute.xlu0 %245  ;;  %5191 = vmatprep.subr.bf16.mxu1 %v303_v25 }
 0x167   :  { %5192 = vmatpush3.bf16.msra.mxu1 %v303_v25  ;;  %v253_v27 = vsel %vm249_vm5, %v246_v26, %v248_v20  ;;  %v252_v28 = vsel %vm249_vm5, %v244_v22, %v246_v26  ;;  %v608_v25 = vld [vmem:[%s6991_s6 + $0x18] sm:$0xff]  ;;  %v607_v26 = vld [vmem:[%s6991_s6 + $0x10] sm:$0xff] }
 0x168   :  { %387 = vmatprep.subr.bf16.mxu0 %v253_v27  ;;  %v242_v29 = vpop.permute.xlu1 %241  ;;  %v606_v27 = vld [vmem:[%s6991_s6 + $0x8] sm:$0xff] }
 0x169   :  { %388 = vmatpush1.bf16.msra.mxu0 %v252_v28  ;;  %v605_v28 = vld [vmem:[%s6991_s6] sm:$0xff] }
 0x16a   :  { %v240_v30 = vpop.permute.xlu0 %239 }
 0x16b   :  { %v251_v31 = vsel %vm249_vm5, %v240_v30, %v242_v29 }
 0x16c   :  { %389 = vmatprep.subr.bf16.mxu0 %v251_v31  ;;  %v293_v32 = vpop.permute.xlu1 %292 }
 0x16d   :  { %v299_v33 = vsel %vm296_vm4, %v276_v6, %v293_v32 }
 0x16e   :  { %v238_v34 = vpop.permute.xlu0 %237  ;;  %5193 = vmatprep.subr.bf16.mxu1 %v299_v33 }
 0x16f   :  { %v250_v36 = vsel %vm249_vm5, %v238_v34, %v240_v30  ;;  %5194 = vmatpush3.bf16.msra.mxu1 %v299_v33 }
 0x170   :  { %390 = vmatpush1.bf16.msra.mxu0 %v250_v36  ;;  %v259_v37 = vpop.permute.xlu1 %258 }
 0x171   :  { %391 = vmatprep.subr.bf16.mxu0 %v5712_v55  ;;  %v265_v41 = vsel %vm262_vm6, %v242_v29, %v259_v37 }
 0x172   :  { %v261_v38 = vpop.permute.xlu0 %260 }
 0x173   :  { %v269_v39 = vsel %vm262_vm6, %v248_v20, %v261_v38 }
 0x174   :  { %392 = vmatpush1.bf16.msra.mxu0 %v5702_v50  ;;  %5195 = vmatprep.subr.bf16.mxu1 %v269_v39 }
 0x175   :  { %393 = vmatprep.subr.bf16.mxu0 %v5696_v46  ;;  %5196 = vmatpush3.bf16.msra.mxu1 %v269_v39 }
 0x176   :  { %5197 = vmatprep.subr.bf16.mxu1 %v265_v41 }
 0x178   :  { %394 = vmatpush1.bf16.msra.mxu0 %v5692_v43 }
 0x179   :  { %5198 = vmatpush3.bf16.msra.mxu1 %v265_v41 }
 0x17a   :  { %5199 = vmatprep.subr.bf16.mxu1 %v5686_v35 }
 0x17b   :  { %412 = vmatmul.mubr.bf16.vlgmr.msra.gmra.mxu0 %v5743_v56 }
 0x17c   :  { %421 = vmatprep.mubr.bf16.mxu0 %v5568_v2 }
 0x17d   :  { %5200 = vmatpush3.bf16.msra.mxu1 %v5686_v35  ;;  %v365_v48 = vpop.permute.xlu1 %364 }
 0x17e   :  { %5201 = vmatprep.subr.bf16.mxu1 %v5688_v40 }
 0x17f   :  { %v360_v46 = vpop.permute.xlu0 %359 }
 0x181   :  { %5202 = vmatpush3.bf16.msra.mxu1 %v5688_v40  ;;  %v355_v40 = vpop.permute.xlu1 %354 }
 0x183   :  { %422 = vmatmul.mubr.bf16.gmra.mxu0 %v5276_v42  ;;  %v350_v51 = vpop.permute.xlu0 %349 }
 0x184   :  { %5204 = vmatmul.mubr.bf16.vlgmr.msra.gmra.mxu1 %v5276_v42  ;;  %673 = vmatprep.mubr.bf16.mxu0 %v5568_v2 }
 0x185   :  { %5223 = vmatprep.mubr.bf16.mxu1 %v5853_v24 }
 0x23b   :  { %v413_v43 = vpop.f32.mrf.mxu0 }
 0x23c   :  { %v414_v5 = vadd.f32 %v413_v43, %v350_v51 }
 0x23d   :  { %v415_v44 = vpop.f32.mrf.mxu0 }
 0x23e   :  { %v416_v62 = vadd.f32 %v415_v44, %v350_v51  ;;  %v481_v12 = vmax.f32 %v414_v5, 0.0 }
 0x23f   :  { %v417_v45 = vpop.f32.mrf.mxu0 }
 0x240   :  { %v418_v0 = vadd.f32 %v417_v45, %v355_v40  ;;  %v482_v9 = vmax.f32 %v416_v62, 0.0 }
 0x241   :  { %v419_v47 = vpop.f32.mrf.mxu0 }
 0x242   :  { %v420_v58 = vadd.f32 %v419_v47, %v355_v40  ;;  %v484_v10 = vmax.f32 %v418_v0, 0.0 }
 0x243   :  { %v423_v49 = vpop.f32.mrf.mxu0 }
 0x244   :  { %v5205_v35 = vpop.f32.mrf.mxu1  ;;  %v485_v6 = vmax.f32 %v420_v58, 0.0  ;;  %v424_v11 = vadd.f32 %v423_v49, %v360_v46  ;;  %v5808_v16 = vpack.c.bf16 %v484_v10, %v481_v12  ;;  %v5278_v10 = vld [vmem:[%s6990_s5 + $0x8] sm:$0xff]  }
 0x245   :  { %v475_v52 = vadd.f32 %v5205_v35, %v360_v46  ;;  %v425_v53 = vpop.f32.mrf.mxu0 }
 0x246   :  { %v466_v50 = vpop.f32.mrf.mxu1  ;;  %v5804_v13 = vpack.c.bf16 %v485_v6, %v482_v9  ;;  %v487_v17 = vmax.f32 %v424_v11, 0.0  ;;  %v426_v20 = vadd.f32 %v425_v53, %v360_v46 }
 0x247   :  { %v467_v55 = vadd.f32 %v466_v50, %v350_v51  ;;  %v489_v59 = vmax.f32 %v475_v52, 0.0  ;;  %v427_v63 = vpop.f32.mrf.mxu0 }
 0x248   :  { %v5206_v54 = vpop.f32.mrf.mxu1  ;;  %v428_v7 = vadd.f32 %v427_v63, %v365_v48  ;;  %v488_v22 = vmax.f32 %v426_v20, 0.0 }
 0x249   :  { %v478_v56 = vadd.f32 %v5206_v54, %v365_v48  ;;  %v483_v1 = vmax.f32 %v467_v55, 0.0  ;;  %v429_v15 = vpop.f32.mrf.mxu0 }
 0x24a   :  { %v469_v57 = vpop.f32.mrf.mxu1  ;;  %v490_v14 = vmax.f32 %v428_v7, 0.0  ;;  %v430_v19 = vadd.f32 %v429_v15, %v365_v48 }
 0x24b   :  { %v492_v60 = vmax.f32 %v478_v56, 0.0  ;;  %v470_v61 = vadd.f32 %v469_v57, %v355_v40 }
 0x24c   :  { %v5812_v18 = vpack.c.bf16 %v490_v14, %v487_v17  ;;  %v491_v21 = vmax.f32 %v430_v19, 0.0 }
 0x24d   :  { %v5796_v3 = vpack.c.bf16 %v492_v60, %v489_v59  ;;  %v486_v4 = vmax.f32 %v470_v61, 0.0 }
 0x24e   :  { %v5822_v23 = vpack.c.bf16 %v491_v21, %v488_v22 }
 0x24f   :  { %v5798_v8 = vpack.c.bf16 %v486_v4, %v483_v1  ;;  %579 = vrot.lane.b32.xlu1 %v5796_v3, %s5569_s1 }
 0x251   :  { %573 = vrot.lane.b32.xlu0 %v5798_v8, %s5569_s1 }
 0x253   :  { %547 = vrot.lane.b32.xlu1 %v5796_v3, %s5570_s2 }
 0x255   :  { %539 = vrot.lane.b32.xlu0 %v5804_v13, %s5570_s2 }
 0x257   :  { %569 = vrot.lane.b32.xlu1 %v5808_v16, %s5569_s1 }
 0x259   :  { %575 = vrot.lane.b32.xlu0 %v5812_v18, %s5569_s1 }
 0x25b   :  { %541 = vrot.lane.b32.xlu1 %v5798_v8, %s5570_s2 }
 0x25d   :  { %543 = vrot.lane.b32.xlu0 %v5812_v18, %s5570_s2 }
 0x25f   :  { %571 = vrot.lane.b32.xlu1 %v5804_v13, %s5569_s1 }
 0x261   :  { %577 = vrot.lane.b32.xlu0 %v5822_v23, %s5569_s1 }
 0x263   :  { %591 = vrot.lane.b32.xlu1 %v5812_v18, %s5571_s25 }
 0x265   :  { %537 = vrot.lane.b32.xlu0 %v5808_v16, %s5570_s2 }
 0x267   :  { %589 = vrot.lane.b32.xlu1 %v5808_v16, %s5571_s25 }
 0x269   :  { %545 = vrot.lane.b32.xlu0 %v5822_v23, %s5570_s2 }
 0x26b   :  { %515 = vrot.lane.b32.xlu1 %v5796_v3, %s5572_s26 }
 0x26d   :  { %511 = vrot.lane.b32.xlu0 %v5812_v18, %s5572_s26 }
 0x26f   :  { %559 = vrot.lane.b32.xlu1 %v5812_v18, %s5573_s27 }
 0x271   :  { %513 = vrot.lane.b32.xlu0 %v5822_v23, %s5572_s26 }
 0x273   :  { %509 = vrot.lane.b32.xlu1 %v5798_v8, %s5572_s26 }
 0x275   :  { %507 = vrot.lane.b32.xlu0 %v5804_v13, %s5572_s26 }
 0x277   :  { %557 = vrot.lane.b32.xlu1 %v5808_v16, %s5573_s27 }
 0x279   :  { %505 = vrot.lane.b32.xlu0 %v5808_v16, %s5572_s26 }
 0x27b   :  { %525 = vrot.lane.b32.xlu1 %v5808_v16, %s5574_s30 }
 0x27d   :  { %527 = vrot.lane.b32.xlu0 %v5812_v18, %s5574_s30 }
 0x27f   :  { %626 = vperm.xlu1 %5268, %v608_v25  }
 0x281   :  { %621 = vperm.xlu0 %5267, %v607_v26  }
 0x283   :  { %616 = vperm.xlu1 %5268, %v606_v27  }
 0x285   :  { %611 = vperm.xlu0 %5267, %v605_v28  }
 0x2c1   :  { %v580_v29 = vpop.permute.xlu1 %579 }
 0x2c3   :  { %v574_v30 = vpop.permute.xlu0 %573 }
 0x2c5   :  { %v548_v31 = vpop.permute.xlu1 %547 }
 0x2c7   :  { %v540_v32 = vpop.permute.xlu0 %539 }
 0x2c9   :  { %v570_v33 = vpop.permute.xlu1 %569 }
 0x2cb   :  { %v576_v34 = vpop.permute.xlu0 %575 }
 0x2cd   :  { %v542_v36 = vpop.permute.xlu1 %541 }
 0x2ce   :  { %v550_v53 = vsel %vm283_vm3, %v540_v32, %v542_v36 }
 0x2cf   :  { %v544_v37 = vpop.permute.xlu0 %543 }
 0x2d1   :  { %v572_v38 = vpop.permute.xlu1 %571 }
 0x2d2   :  { %v582_v44 = vsel %vm317_vm1, %v572_v38, %v574_v30  ;;  %v581_v47 = vsel %vm317_vm1, %v570_v33, %v572_v38 }
 0x2d3   :  { %v578_v39 = vpop.permute.xlu0 %577 }
 0x2d4   :  { %v583_v41 = vsel %vm317_vm1, %v576_v34, %v578_v39  ;;  %v584_v42 = vsel %vm317_vm1, %v578_v39, %v580_v29 }
 0x2d5   :  { %641 = vmatprep.subr.bf16.mxu0 %v584_v42  ;;  %v592_v43 = vpop.permute.xlu1 %591 }
 0x2d6   :  { %642 = vmatpush1.bf16.msra.mxu0 %v583_v41  ;;  %v599_v45 = vsel %vm330_vm2, %v580_v29, %v592_v43 }
 0x2d7   :  { %v538_v46 = vpop.permute.xlu0 %537  ;;  %643 = vmatprep.subr.bf16.mxu0 %v582_v44  ;;  %5207 = vmatprep.subr.bf16.mxu1 %v599_v45 }
 0x2d8   :  { %5208 = vmatpush3.bf16.msra.mxu1 %v599_v45  ;;  %v549_v55 = vsel %vm283_vm3, %v538_v46, %v540_v32 }
 0x2d9   :  { %v590_v48 = vpop.permute.xlu1 %589 }
 0x2da   :  { %644 = vmatpush1.bf16.msra.mxu0 %v581_v47  ;;  %v595_v49 = vsel %vm330_vm2, %v574_v30, %v590_v48 }
 0x2db   :  { %v546_v35 = vpop.permute.xlu0 %545  ;;  %5209 = vmatprep.subr.bf16.mxu1 %v595_v49 }
 0x2dc   :  { %v551_v50 = vsel %vm283_vm3, %v544_v37, %v546_v35  ;;  %5210 = vmatpush3.bf16.msra.mxu1 %v595_v49  ;;  %v552_v51 = vsel %vm283_vm3, %v546_v35, %v548_v31 }
 0x2dd   :  { %645 = vmatprep.subr.bf16.mxu0 %v552_v51  ;;  %v516_v52 = vpop.permute.xlu1 %515 }
 0x2de   :  { %646 = vmatpush1.bf16.msra.mxu0 %v551_v50 }
 0x2df   :  { %v512_v54 = vpop.permute.xlu0 %511  ;;  %647 = vmatprep.subr.bf16.mxu0 %v550_v53 }
 0x2e1   :  { %v560_v56 = vpop.permute.xlu1 %559 }
 0x2e2   :  { %648 = vmatpush1.bf16.msra.mxu0 %v549_v55  ;;  %v567_v40 = vsel %vm296_vm4, %v548_v31, %v560_v56  ;;  %v867_v56 = vld [vmem:[%s6993_s8] sm:$0xff] }
 0x2e3   :  { %v514_v57 = vpop.permute.xlu0 %513  ;;  %5211 = vmatprep.subr.bf16.mxu1 %v567_v40 }
 0x2e4   :  { %v519_v58 = vsel %vm249_vm5, %v512_v54, %v514_v57  ;;  %5212 = vmatpush3.bf16.msra.mxu1 %v567_v40  ;;  %v520_v59 = vsel %vm249_vm5, %v514_v57, %v516_v52  ;;  %v5968_v40 = vld [vmem:[%s6992_s7] sm:$0xff]   ;;  %v868_v57 = vld [vmem:[%s6993_s8 + $0x8] sm:$0xff] }
 0x2e5   :  { %649 = vmatprep.subr.bf16.mxu0 %v520_v59  ;;  %v510_v60 = vpop.permute.xlu1 %509 }
 0x2e6   :  { %650 = vmatpush1.bf16.msra.mxu0 %v519_v58 }
 0x2e7   :  { %v508_v61 = vpop.permute.xlu0 %507 }
 0x2e8   :  { %v518_v62 = vsel %vm249_vm5, %v508_v61, %v510_v60 }
 0x2e9   :  { %651 = vmatprep.subr.bf16.mxu0 %v518_v62  ;;  %v558_v63 = vpop.permute.xlu1 %557 }
 0x2ea   :  { %v563_v0 = vsel %vm296_vm4, %v542_v36, %v558_v63 }
 0x2eb   :  { %v506_v1 = vpop.permute.xlu0 %505  ;;  %5213 = vmatprep.subr.bf16.mxu1 %v563_v0 }
 0x2ec   :  { %v517_v4 = vsel %vm249_vm5, %v506_v1, %v508_v61  ;;  %5214 = vmatpush3.bf16.msra.mxu1 %v563_v0 }
 0x2ed   :  { %652 = vmatpush1.bf16.msra.mxu0 %v517_v4  ;;  %v526_v5 = vpop.permute.xlu1 %525 }
 0x2ee   :  { %653 = vmatprep.subr.bf16.mxu0 %v5822_v23  ;;  %v531_v9 = vsel %vm262_vm6, %v510_v60, %v526_v5 }
 0x2ef   :  { %v528_v6 = vpop.permute.xlu0 %527 }
 0x2f0   :  { %v535_v7 = vsel %vm262_vm6, %v516_v52, %v528_v6 }
 0x2f1   :  { %654 = vmatpush1.bf16.msra.mxu0 %v5812_v18  ;;  %5215 = vmatprep.subr.bf16.mxu1 %v535_v7 }
 0x2f2   :  { %655 = vmatprep.subr.bf16.mxu0 %v5804_v13  ;;  %5216 = vmatpush3.bf16.msra.mxu1 %v535_v7 }
 0x2f3   :  { %5217 = vmatprep.subr.bf16.mxu1 %v531_v9 }
 0x2f5   :  { %656 = vmatpush1.bf16.msra.mxu0 %v5808_v16 }
 0x2f6   :  { %5218 = vmatpush3.bf16.msra.mxu1 %v531_v9 }
 0x2f7   :  { %5219 = vmatprep.subr.bf16.mxu1 %v5796_v3 }
 0x2f8   :  { %674 = vmatmul.mubr.bf16.vlgmr.msra.gmra.mxu0 %v5853_v24 }
 0x2f9   :  { %683 = vmatprep.mubr.bf16.mxu0 %v5568_v2 }
 0x2fa   :  { %5220 = vmatpush3.bf16.msra.mxu1 %v5796_v3  ;;  %v627_v12 = vpop.permute.xlu1 %626 }
 0x2fb   :  { %5221 = vmatprep.subr.bf16.mxu1 %v5798_v8 }
 0x2fc   :  { %v622_v11 = vpop.permute.xlu0 %621 }
 0x2fe   :  { %5222 = vmatpush3.bf16.msra.mxu1 %v5798_v8  ;;  %v617_v17 = vpop.permute.xlu1 %616 }
 0x300   :  { %684 = vmatmul.mubr.bf16.gmra.mxu0 %v5278_v10  ;;  %v612_v14 = vpop.permute.xlu0 %611 }
 0x301   :  { %5224 = vmatmul.mubr.bf16.vlgmr.msra.gmra.mxu1 %v5278_v10  ;;  %935 = vmatprep.mubr.bf16.mxu0 %v5568_v2 }
 0x302   :  { %5243 = vmatprep.mubr.bf16.mxu1 %v5968_v40 }
 0x3b8   :  { %v675_v13 = vpop.f32.mrf.mxu0 }
 0x3b9   :  { %v676_v16 = vadd.f32 %v675_v13, %v612_v14 }
 0x3ba   :  { %v677_v15 = vpop.f32.mrf.mxu0 }
 0x3bb   :  { %v743_v20 = vmax.f32 %v676_v16, 0.0  ;;  %v678_v26 = vadd.f32 %v677_v15, %v612_v14 }
 0x3bc   :  { %v679_v3 = vpop.f32.mrf.mxu0 }
 0x3bd   :  { %v680_v18 = vadd.f32 %v679_v3, %v617_v17  ;;  %v744_v33 = vmax.f32 %v678_v26, 0.0 }
 0x3be   :  { %v681_v19 = vpop.f32.mrf.mxu0 }
 0x3bf   :  { %v746_v21 = vmax.f32 %v680_v18, 0.0  ;;  %v682_v8 = vadd.f32 %v681_v19, %v617_v17 }
 0x3c0   :  { %v685_v22 = vpop.f32.mrf.mxu0 }
 0x3c1   :  { %v5906_v23 = vpack.c.bf16 %v746_v21, %v743_v20  ;;  %v5225_v24 = vpop.f32.mrf.mxu1  ;;  %v747_v29 = vmax.f32 %v682_v8, 0.0  ;;  %v686_v43 = vadd.f32 %v685_v22, %v622_v11 }
 0x3c2   :  { %v687_v25 = vpop.f32.mrf.mxu0  ;;  %v737_v28 = vadd.f32 %v5225_v24, %v622_v11 }
 0x3c3   :  { %v728_v27 = vpop.f32.mrf.mxu1  ;;  %851 = vrot.lane.b32.xlu0 %v5906_v23, %s5571_s25  ;;  %v5912_v38 = vpack.c.bf16 %v747_v29, %v744_v33  ;;  %v749_v48 = vmax.f32 %v686_v43, 0.0  ;;  %v688_v52 = vadd.f32 %v687_v25, %v622_v11  ;;  %v5282_v43 = vld [vmem:[%s6994_s9 + $0x38] sm:$0xff]  }
 0x3c4   :  { %v689_v31 = vpop.f32.mrf.mxu0  ;;  %v751_v36 = vmax.f32 %v737_v28, 0.0  ;;  %v729_v44 = vadd.f32 %v728_v27, %v612_v14 }
 0x3c5   :  { %v5226_v30 = vpop.f32.mrf.mxu1  ;;  %v690_v39 = vadd.f32 %v689_v31, %v627_v12  ;;  %v750_v54 = vmax.f32 %v688_v52, 0.0 }
 0x3c6   :  { %v740_v32 = vadd.f32 %v5226_v30, %v627_v12  ;;  %v691_v46 = vpop.f32.mrf.mxu0  ;;  %v745_v49 = vmax.f32 %v729_v44, 0.0  ;;  %v5287_v44 = vld [vmem:[%s6994_s9 + $0xf0] sm:$0xff]  }
 0x3c7   :  { %v731_v34 = vpop.f32.mrf.mxu1  ;;  %819 = vrot.lane.b32.xlu0 %v5906_v23, %s5573_s27  ;;  %v752_v45 = vmax.f32 %v690_v39, 0.0  ;;  %v692_v50 = vadd.f32 %v691_v46, %v627_v12  ;;  %v5288_v46 = vld [vmem:[%s6994_s9 + $0xb0] sm:$0xff]  }
 0x3c8   :  { %v754_v37 = vmax.f32 %v740_v32, 0.0  ;;  %v732_v42 = vadd.f32 %v731_v34, %v617_v17 }
 0x3c9   :  { %v5924_v35 = vpack.c.bf16 %v752_v45, %v749_v48  ;;  %v753_v53 = vmax.f32 %v692_v50, 0.0  ;;  %v5286_v45 = vld [vmem:[%s6994_s9 + $0x30] sm:$0xff]   ;;  %v5575_v48 = vmov 1983009808  }
 0x3ca   :  { %v5914_v41 = vpack.c.bf16 %v754_v37, %v751_v36  ;;  %v748_v47 = vmax.f32 %v732_v42, 0.0  ;;  %v5280_v42 = vld [vmem:[%s6992_s7 + $0x8] sm:$0xff]  }
 0x3cb   :  { %833 = vrot.lane.b32.xlu0 %v5912_v38, %s5569_s1  ;;  %v5936_v55 = vpack.c.bf16 %v753_v53, %v750_v54  ;;  %v5290_v53 = vld [vmem:[%s6994_s9 + $0x28] sm:$0xff]  }
 0x3cc   :  { %841 = vrot.lane.b32.xlu1 %v5914_v41, %s5569_s1  ;;  %v5926_v51 = vpack.c.bf16 %v748_v47, %v745_v49  ;;  %v5289_v47 = vld [vmem:[%s6994_s9 + $0x68] sm:$0xff]   ;;  %v1020_v49 = vunpack.c.l.s4 %v5575_v48 }
 0x3cf   :  { %801 = vrot.lane.b32.xlu0 %v5912_v38, %s5570_s2 }
 0x3d0   :  { %809 = vrot.lane.b32.xlu1 %v5914_v41, %s5570_s2 }
 0x3d3   :  { %853 = vrot.lane.b32.xlu0 %v5924_v35, %s5571_s25  ;;  %s5576_s25 = smov 112  }
 0x3d4   :  { %835 = vrot.lane.b32.xlu1 %v5926_v51, %s5569_s1 }
 0x3d7   :  { %821 = vrot.lane.b32.xlu0 %v5924_v35, %s5573_s27 }
 0x3d8   :  { %831 = vrot.lane.b32.xlu1 %v5906_v23, %s5569_s1 }
 0x3db   :  { %839 = vrot.lane.b32.xlu0 %v5936_v55, %s5569_s1 }
 0x3dc   :  { %803 = vrot.lane.b32.xlu1 %v5926_v51, %s5570_s2 }
 0x3df   :  { %789 = vrot.lane.b32.xlu0 %v5924_v35, %s5574_s30 }
 0x3e0   :  { %799 = vrot.lane.b32.xlu1 %v5906_v23, %s5570_s2 }
 0x3e3   :  { %807 = vrot.lane.b32.xlu0 %v5936_v55, %s5570_s2 }
 0x3e4   :  { %837 = vrot.lane.b32.xlu1 %v5924_v35, %s5569_s1 }
 0x3e7   :  { %769 = vrot.lane.b32.xlu0 %v5912_v38, %s5572_s26 }
 0x3e8   :  { %777 = vrot.lane.b32.xlu1 %v5914_v41, %s5572_s26 }
 0x3eb   :  { %775 = vrot.lane.b32.xlu0 %v5936_v55, %s5572_s26 }
 0x3ec   :  { %805 = vrot.lane.b32.xlu1 %v5924_v35, %s5570_s2 }
 0x3ef   :  { %787 = vrot.lane.b32.xlu0 %v5906_v23, %s5574_s30 }
 0x3f0   :  { %773 = vrot.lane.b32.xlu1 %v5924_v35, %s5572_s26 }
 0x3f3   :  { %873 = vperm.xlu0 %5267, %v867_v56   ;;  %v5291_v56 = vld [vmem:[%s6994_s9 + $0xe8] sm:$0xff]  }
 0x3f4   :  { %771 = vrot.lane.b32.xlu1 %v5926_v51, %s5572_s26 }
 0x3f8   :  { %767 = vrot.lane.b32.xlu1 %v5906_v23, %s5572_s26 }
 0x3fc   :  { %878 = vperm.xlu1 %5268, %v868_v57  }
 0x435   :  { %v852_v58 = vpop.permute.xlu0 %851 }
 0x439   :  { %v820_v59 = vpop.permute.xlu0 %819 }
 0x43d   :  { %v834_v60 = vpop.permute.xlu0 %833 }
 0x43e   :  { %v842_v61 = vpop.permute.xlu1 %841 }
 0x441   :  { %v802_v62 = vpop.permute.xlu0 %801 }
 0x442   :  { %v810_v63 = vpop.permute.xlu1 %809 }
 0x445   :  { %v854_v0 = vpop.permute.xlu0 %853 }
 0x446   :  { %v836_v1 = vpop.permute.xlu1 %835  ;;  %v861_v4 = vsel %vm330_vm2, %v842_v61, %v854_v0 }
 0x447   :  { %5227 = vmatprep.subr.bf16.mxu1 %v861_v4  ;;  %v857_v5 = vsel %vm330_vm2, %v836_v1, %v852_v58  ;;  %v844_v18 = vsel %vm317_vm1, %v834_v60, %v836_v1  ;;  %v5292_v58 = vld [vmem:[%s6994_s9 + $0xa8] sm:$0xff]  }
 0x448   :  { %5228 = vmatpush3.bf16.msra.mxu1 %v861_v4  ;;  %v5295_v4 = vld [vmem:[%s6994_s9 + $0xe0] sm:$0xff]  }
 0x449   :  { %v822_v6 = vpop.permute.xlu0 %821  ;;  %5229 = vmatprep.subr.bf16.mxu1 %v857_v5 }
 0x44a   :  { %v832_v7 = vpop.permute.xlu1 %831  ;;  %v829_v9 = vsel %vm296_vm4, %v810_v63, %v822_v6 }
 0x44b   :  { %v843_v21 = vsel %vm317_vm1, %v832_v7, %v834_v60 }
 0x44c   :  { %5230 = vmatpush3.bf16.msra.mxu1 %v857_v5 }
 0x44d   :  { %v840_v10 = vpop.permute.xlu0 %839  ;;  %5231 = vmatprep.subr.bf16.mxu1 %v829_v9 }
 0x44e   :  { %v804_v11 = vpop.permute.xlu1 %803  ;;  %v846_v12 = vsel %vm317_vm1, %v840_v10, %v842_v61  ;;  %v5293_v61 = vld [vmem:[%s6994_s9 + $0x60] sm:$0xff]  }
 0x44f   :  { %903 = vmatprep.subr.bf16.mxu0 %v846_v12  ;;  %v825_v13 = vsel %vm296_vm4, %v804_v11, %v820_v59  ;;  %v812_v27 = vsel %vm283_vm3, %v802_v62, %v804_v11 }
 0x450   :  { %5232 = vmatpush3.bf16.msra.mxu1 %v829_v9  ;;  %v5296_v9 = vld [vmem:[%s6994_s9 + $0xa0] sm:$0xff]  }
 0x451   :  { %v790_v14 = vpop.permute.xlu0 %789  ;;  %5233 = vmatprep.subr.bf16.mxu1 %v825_v13 }
 0x452   :  { %v800_v15 = vpop.permute.xlu1 %799 }
 0x453   :  { %v811_v29 = vsel %vm283_vm3, %v800_v15, %v802_v62  ;;  %v5298_v15 = vld [vmem:[%s6994_s9 + $0x18] sm:$0xff]  }
 0x454   :  { %5234 = vmatpush3.bf16.msra.mxu1 %v825_v13 }
 0x455   :  { %v808_v16 = vpop.permute.xlu0 %807 }
 0x456   :  { %v838_v17 = vpop.permute.xlu1 %837  ;;  %v814_v8 = vsel %vm283_vm3, %v808_v16, %v810_v63  ;;  %v5294_v63 = vld [vmem:[%s6994_s9 + $0x20] sm:$0xff]  }
 0x457   :  { %v845_v3 = vsel %vm317_vm1, %v838_v17, %v840_v10 }
 0x458   :  { %904 = vmatpush1.bf16.msra.mxu0 %v845_v3 }
 0x459   :  { %905 = vmatprep.subr.bf16.mxu0 %v844_v18  ;;  %v770_v19 = vpop.permute.xlu0 %769 }
 0x45a   :  { %v778_v20 = vpop.permute.xlu1 %777 }
 0x45b   :  { %v797_v22 = vsel %vm262_vm6, %v778_v20, %v790_v14  ;;  %v5297_v14 = vld [vmem:[%s6994_s9 + $0x58] sm:$0xff]  }
 0x45c   :  { %906 = vmatpush1.bf16.msra.mxu0 %v843_v21  ;;  %5235 = vmatprep.subr.bf16.mxu1 %v797_v22 }
 0x45d   :  { %907 = vmatprep.subr.bf16.mxu0 %v814_v8  ;;  %5236 = vmatpush3.bf16.msra.mxu1 %v797_v22  ;;  %v776_v26 = vpop.permute.xlu0 %775  ;;  %v5300_v22 = vld [vmem:[%s6994_s9 + $0x98] sm:$0xff]  }
 0x45e   :  { %v806_v24 = vpop.permute.xlu1 %805  ;;  %v782_v30 = vsel %vm249_vm5, %v776_v26, %v778_v20 }
 0x45f   :  { %v813_v25 = vsel %vm283_vm3, %v806_v24, %v808_v16 }
 0x460   :  { %908 = vmatpush1.bf16.msra.mxu0 %v813_v25 }
 0x461   :  { %909 = vmatprep.subr.bf16.mxu0 %v812_v27  ;;  %v788_v31 = vpop.permute.xlu0 %787  ;;  %v5301_v27 = vld [vmem:[%s6994_s9 + $0x50] sm:$0xff]  }
 0x462   :  { %v774_v28 = vpop.permute.xlu1 %773 }
 0x463   :  { %v781_v33 = vsel %vm249_vm5, %v774_v28, %v776_v26 }
 0x464   :  { %910 = vmatpush1.bf16.msra.mxu0 %v811_v29 }
 0x465   :  { %911 = vmatprep.subr.bf16.mxu0 %v782_v30 }
 0x466   :  { %v772_v32 = vpop.permute.xlu1 %771 }
 0x467   :  { %v793_v34 = vsel %vm262_vm6, %v772_v32, %v788_v31  ;;  %v780_v36 = vsel %vm249_vm5, %v770_v19, %v772_v32  ;;  %v5302_v31 = vld [vmem:[%s6994_s9 + $0x10] sm:$0xff]  }
 0x468   :  { %912 = vmatpush1.bf16.msra.mxu0 %v781_v33  ;;  %5237 = vmatprep.subr.bf16.mxu1 %v793_v34 }
 0x469   :  { %913 = vmatprep.subr.bf16.mxu0 %v780_v36  ;;  %5238 = vmatpush3.bf16.msra.mxu1 %v793_v34 }
 0x46a   :  { %5239 = vmatprep.subr.bf16.mxu1 %v5914_v41  ;;  %v768_v37 = vpop.permute.xlu1 %767 }
 0x46b   :  { %v779_v39 = vsel %vm249_vm5, %v768_v37, %v770_v19  ;;  %v5299_v19 = vld [vmem:[%s6994_s9 + $0xd8] sm:$0xff]   ;;  %v5303_v37 = vld [vmem:[%s6994_s9 + $0xd0] sm:$0xff]  }
 0x46c   :  { %914 = vmatpush1.bf16.msra.mxu0 %v779_v39 }
 0x46d   :  { %915 = vmatprep.subr.bf16.mxu0 %v5936_v55  ;;  %5240 = vmatpush3.bf16.msra.mxu1 %v5914_v41  ;;  %v5281_v41 = vld [vmem:[%s6994_s9 + $0x78] sm:$0xff]  }
 0x46e   :  { %5241 = vmatprep.subr.bf16.mxu1 %v5926_v51  ;;  %v874_v54 = vpop.permute.xlu0 %873 }
 0x470   :  { %916 = vmatpush1.bf16.msra.mxu0 %v5924_v35  ;;  %v1022_v35 = vlaneseq }
 0x471   :  { %917 = vmatprep.subr.bf16.mxu0 %v5912_v38  ;;  %5242 = vmatpush3.bf16.msra.mxu1 %v5926_v51  ;;  %v5283_v38 = vld [vmem:[%s6994_s9 + $0xf8] sm:$0xff]   ;;  %v1021_v51 = vunpack.c.0.s8 %v1020_v49 }
 0x472   :  { %4848 = vmatprep.subr.bf16.mxu1 %v5283_v38  ;;  %v1023_v52 = vshrl.u32 %v1022_v35, 7  ;;  %v5304_v38 = vld [vmem:[%s6994_s9 + $0x90] sm:$0xff]  }
 0x474   :  { %918 = vmatpush1.bf16.msra.mxu0 %v5906_v23  ;;  %5244 = vmatmul.mubr.bf16.vlgmr.msra.gmra.mxu1 %v5280_v42  ;;  %v5284_v23 = vld [vmem:[%s6994_s9 + $0xb8] sm:$0xff]   ;;  %v6047_v60 = vsub.s32 %v1021_v51, %v1023_v52  ;;  %v5307_v51 = vld [vmem:[%s6994_s9 + $0xc8] sm:$0xff]  }
 0x475   :  { %4826 = vmatprep.subr.bf16.mxu0 %v5281_v41  ;;  %4849 = vmatpush3.bf16.msra.mxu1 %v5284_v23 }
 0x476   :  { %4850 = vmatprep.subr.bf16.mxu1 %v5287_v44 }
 0x477   :  { %936 = vmatmul.mubr.bf16.vlgmr.msra.gmra.mxu0 %v5968_v40  ;;  %v6058_v5 = vpop.permute.xlu1 %878 }
 0x478   :  { %945 = vmatprep.mubr.bf16.mxu0 %v5568_v2  ;;  %v5285_v2 = vld [vmem:[%s6994_s9 + $0x70] sm:$0xff]   ;;  %4827 = vmatpush3.bf16.msra.mxu0 %v5282_v43 }
 0x479   :  { %4828 = vmatprep.subr.bf16.mxu0 %v5285_v2  ;;  %4851 = vmatpush3.bf16.msra.mxu1 %v5288_v46  ;;  %v5305_v2 = vld [vmem:[%s6994_s9 + $0x48] sm:$0xff]  }
 0x47a   :  { %4852 = vmatprep.subr.bf16.mxu1 %v5291_v56  ;;  %v5310_v56 = vld [vmem:[%s6994_s9] sm:$0xff]  }
 0x47c   :  { %4829 = vmatpush3.bf16.msra.mxu0 %v5286_v45 }
 0x47d   :  { %4830 = vmatprep.subr.bf16.mxu0 %v5289_v47  ;;  %4853 = vmatpush3.bf16.msra.mxu1 %v5292_v58  ;;  %v5306_v47 = vld [vmem:[%s6994_s9 + $0x8] sm:$0xff]  }
 0x47e   :  { %4854 = vmatprep.subr.bf16.mxu1 %v5295_v4  ;;  %v869_v4 = vld [vmem:[%s6993_s8 + $0x10] sm:$0xff] }
 0x47f   :  { %946 = vmatmul.mubr.bf16.gmra.mxu0 %v5280_v42 }
 0x480   :  { %4831 = vmatpush3.bf16.msra.mxu0 %v5290_v53  ;;  %v5308_v53 = vld [vmem:[%s6994_s9 + $0x88] sm:$0xff]  }
 0x481   :  { %4832 = vmatprep.subr.bf16.mxu0 %v5293_v61  ;;  %4855 = vmatpush3.bf16.msra.mxu1 %v5296_v9  ;;  %v5312_v61 = vld [vmem:[%s6994_s9 + $0x80] sm:$0xff]  }
 0x482   :  { %4856 = vmatprep.subr.bf16.mxu1 %v5299_v19 }
 0x484   :  { %4833 = vmatpush3.bf16.msra.mxu0 %v5294_v63  ;;  %v5313_v63 = vld [vmem:[%s6994_s9 + $0x178] sm:$0xff]  }
 0x485   :  { %4834 = vmatprep.subr.bf16.mxu0 %v5297_v14  ;;  %4857 = vmatpush3.bf16.msra.mxu1 %v5300_v22 }
 0x486   :  { %4858 = vmatprep.subr.bf16.mxu1 %v5303_v37 }
 0x488   :  { %4835 = vmatpush3.bf16.msra.mxu0 %v5298_v15  ;;  %v870_v15 = vld [vmem:[%s6993_s8 + $0x18] sm:$0xff] }
 0x489   :  { %4836 = vmatprep.subr.bf16.mxu0 %v5301_v27  ;;  %4859 = vmatpush3.bf16.msra.mxu1 %v5304_v38 }
 0x48a   :  { %4860 = vmatprep.subr.bf16.mxu1 %v5307_v51  ;;  %v5314_v51 = vld [vmem:[%s6994_s9 + $0x138] sm:$0xff]  }
 0x48c   :  { %4837 = vmatpush3.bf16.msra.mxu0 %v5302_v31 }
 0x48d   :  { %4838 = vmatprep.subr.bf16.mxu0 %v5305_v2  ;;  %4861 = vmatpush3.bf16.msra.mxu1 %v5308_v53 }
 0x490   :  { %4839 = vmatpush3.bf16.msra.mxu0 %v5306_v47 }
 0x534   :  { %v6036_v50 = vpop.f32.mrf.mxu1 }
 0x536   :  { %v990_v55 = vpop.f32.mrf.mxu1 }
 0x537   :  { %v991_v40 = vadd.f32 %v990_v55, %v874_v54  ;;  %v937_v57 = vpop.f32.mrf.mxu0  ;;  %v5309_v55 = vld [vmem:[%s6994_s9 + $0x40] sm:$0xff]  }
 0x538   :  { %v938_v59 = vadd.f32 %v937_v57, %v874_v54  ;;  %v6075_v20 = vpop.f32.mrf.mxu1  ;;  %4840 = vmatprep.subr.bf16.mxu0 %v5309_v55  ;;  %v5317_v55 = vld [vmem:[%s6994_s9 + $0x170] sm:$0xff]  }
 0x539   :  { %v939_v62 = vpop.f32.mrf.mxu0  ;;  %v1007_v6 = vmax.f32 %v991_v40, 0.0  ;;  %4841 = vmatpush3.bf16.msra.mxu0 %v5310_v56 }
 0x53a   :  { %v1005_v0 = vmax.f32 %v938_v59, 0.0  ;;  %v940_v1 = vadd.f32 %v939_v62, %v874_v54  ;;  %v993_v39 = vpop.f32.mrf.mxu1  ;;  %v5311_v59 = vld [vmem:[%s6994_s9 + $0xc0] sm:$0xff]   ;;  %4870 = vmatprep.subr.bf16.mxu0 %v5313_v63 }
 0x53b   :  { %v941_v7 = vpop.f32.mrf.mxu0  ;;  %v994_v48 = vadd.f32 %v993_v39, %v6058_v5  ;;  %4862 = vmatprep.subr.bf16.mxu1 %v5311_v59 }
 0x53c   :  { %1017 = vst [vmem:[#allocation2] sm:$0x1] %v1005_v0  ;;  %v1025_v10 = vrot.slane %v1005_v0, %v6047_v60  ;;  %v1037_v11 = vcombine.high %v1005_v0, %v1005_v0  ;;  %v1006_v12 = vmax.f32 %v940_v1, 0.0  ;;  %v942_v13 = vadd.f32 %v941_v7, %v6058_v5  ;;  %4863 = vmatpush3.bf16.msra.mxu1 %v5312_v61  ;;  %v5315_v1 = vld [vmem:[%s6994_s9 + $0x1f8] sm:$0xff]  }
 0x53d   :  { %v943_v30 = vpop.f32.mrf.mxu0  ;;  %v1010_v40 = vmax.f32 %v994_v48, 0.0  ;;  %4892 = vmatprep.subr.bf16.mxu1 %v5315_v1 }
 0x53e   :  { %v4496_v16 = vrot.slane %v1025_v10, 9  ;;  %v1030_v17 = vcombine.high %v1025_v10, %v1025_v10  ;;  %v1044_v3 = vrot.slane %v1037_v11, %v6047_v60  ;;  %4498 = vst.sshfl [vmem:[#allocation2 + $0x8] sm:$0x1 pattern:$0x76325410] %v1037_v11  ;;  %v1183_v18 = vcombine.low %v1006_v12, %v1007_v6 }
 0x53f   :  { %v1008_v21 = vmax.f32 %v942_v13, 0.0  ;;  %v1221_v33 = vcombine.high %v1006_v12, %v1007_v6  ;;  %v944_v23 = vadd.f32 %v943_v30, %v6058_v5  ;;  %v947_v47 = vpop.f32.mrf.mxu0 }
 0x540   :  { %1029 = vst [vmem:[#allocation2 + $0x2] sm:$0x1] %v4496_v16  ;;  %1032 = vst [vmem:[#allocation2 + $0x4] sm:$0x1] %v1030_v17  ;;  %v4497_v8 = vrot.slane %v1030_v17, 9  ;;  %v4499_v24 = vrot.slane %v1044_v3, 9  ;;  %v1051_v25 = vcombine.high %v1044_v3, %v1044_v3  ;;  %v1190_v26 = vrot.slane %v1183_v18, %v6047_v60 }
 0x541   :  { %1058 = vst [vmem:[#allocation2 + $0x10] sm:$0x1] %v1008_v21  ;;  %v1066_v28 = vrot.slane %v1008_v21, %v6047_v60  ;;  %v1078_v29 = vcombine.high %v1008_v21, %v1008_v21  ;;  %v1228_v35 = vrot.slane %v1221_v33, %v6047_v60  ;;  %v1009_v54 = vmax.f32 %v944_v23, 0.0 }
 0x542   :  { %1036 = vst [vmem:[#allocation2 + $0x6] sm:$0x1] %v4497_v8  ;;  %1050 = vst [vmem:[#allocation2 + $0xa] sm:$0x1] %v4499_v24  ;;  %v4500_v32 = vrot.slane %v1051_v25, 9  ;;  %1191 = vrot.lane.b32.xlu0 %v1190_v26, %s5576_s25  ;;  %v4516_v34 = vrot.slane %v1190_v26, 9  ;;  %v1206_v36 = vcombine.high %v1190_v26, %v1190_v26 }
 0x543   :  { %1053 = vst [vmem:[#allocation2 + $0xc] sm:$0x1] %v1051_v25  ;;  %v4501_v42 = vrot.slane %v1066_v28, 9  ;;  %v1071_v41 = vcombine.high %v1066_v28, %v1066_v28  ;;  %v1085_v43 = vrot.slane %v1078_v29, %v6047_v60  ;;  %v4518_v57 = vrot.slane %v1228_v35, 9 }
 0x544   :  { %4503 = vst.sshfl [vmem:[#allocation2 + $0x18] sm:$0x1 pattern:$0x76325410] %v1078_v29  ;;  %1057 = vst [vmem:[#allocation2 + $0xe] sm:$0x1] %v4500_v32  ;;  %1200 = vrot.lane.b32.xlu1 %v4516_v34, %s5576_s25  ;;  %v1243_v58 = vcombine.high %v1228_v35, %v1228_v35  ;;  %v1260_v62 = vcombine.low %v1009_v54, %v1010_v40  ;;  %v1297_v6 = vcombine.high %v1009_v54, %v1010_v40 }
 0x545   :  { %1070 = vst [vmem:[#allocation2 + $0x12] sm:$0x1] %v4501_v42  ;;  %1073 = vst [vmem:[#allocation2 + $0x14] sm:$0x1] %v1071_v41  ;;  %v4502_v44 = vrot.slane %v1071_v41, 9  ;;  %v4504_v45 = vrot.slane %v1085_v43, 9  ;;  %v1092_v46 = vcombine.high %v1085_v43, %v1085_v43 }
 0x546   :  { %1207 = vrot.lane.b32.xlu0 %v1206_v36, %s5576_s25  ;;  %v4517_v49 = vrot.slane %v1206_v36, 9  ;;  %v4519_v0 = vrot.slane %v1243_v58, 9  ;;  %v1267_v5 = vrot.slane %v1260_v62, %v6047_v60  ;;  %v1304_v10 = vrot.slane %v1297_v6, %v6047_v60  ;;  %v5316_v40 = vld [vmem:[%s6994_s9 + $0x1b8] sm:$0xff]   ;;  %v5319_v62 = vld [vmem:[%s6994_s9 + $0x1f0] sm:$0xff]  }
 0x547   :  { %1077 = vst [vmem:[#allocation2 + $0x16] sm:$0x1] %v4502_v44  ;;  %1091 = vst [vmem:[#allocation2 + $0x1a] sm:$0x1] %v4504_v45  ;;  %v4505_v52 = vrot.slane %v1092_v46, 9  ;;  %v5318_v6 = vld [vmem:[%s6994_s9 + $0x130] sm:$0xff]  }
 0x548   :  { %1094 = vst [vmem:[#allocation2 + $0x1c] sm:$0x1] %v1092_v46  ;;  %1215 = vrot.lane.b32.xlu1 %v4517_v49, %s5576_s25  ;;  %v4520_v7 = vrot.slane %v1267_v5, 9  ;;  %v1282_v9 = vcombine.high %v1267_v5, %v1267_v5  ;;  %v4522_v12 = vrot.slane %v1304_v10, 9  ;;  %v1319_v13 = vcombine.high %v1304_v10, %v1304_v10 }
 0x549   :  { %1098 = vst [vmem:[#allocation2 + $0x1e] sm:$0x1] %v4505_v52 }
 0x54a   :  { %1229 = vrot.lane.b32.xlu0 %v1228_v35, %s5576_s25  ;;  %v4521_v11 = vrot.slane %v1282_v9, 9  ;;  %v4523_v14 = vrot.slane %v1319_v13, 9 }
 0x54c   :  { %1237 = vrot.lane.b32.xlu1 %v4518_v57, %s5576_s25  ;;  %v949_v57 = vpop.f32.mrf.mxu0 }
 0x54e   :  { %1244 = vrot.lane.b32.xlu0 %v1243_v58, %s5576_s25 }
 0x550   :  { %1252 = vrot.lane.b32.xlu1 %v4519_v0, %s5576_s25 }
 0x552   :  { %883 = vperm.xlu0 %5267, %v869_v4  }
 0x554   :  { %1268 = vrot.lane.b32.xlu1 %v1267_v5, %s5576_s25 }
 0x556   :  { %1276 = vrot.lane.b32.xlu0 %v4520_v7, %s5576_s25 }
 0x558   :  { %1283 = vrot.lane.b32.xlu1 %v1282_v9, %s5576_s25  ;;  %v5321_v9 = vld [vmem:[%s6994_s9 + $0x168] sm:$0xff]  }
 0x55a   :  { %1291 = vrot.lane.b32.xlu0 %v4521_v11, %s5576_s25 }
 0x55c   :  { %1305 = vrot.lane.b32.xlu1 %v1304_v10, %s5576_s25 }
 0x55e   :  { %1313 = vrot.lane.b32.xlu0 %v4522_v12, %s5576_s25 }
 0x560   :  { %1320 = vrot.lane.b32.xlu1 %v1319_v13, %s5576_s25 }
 0x562   :  { %1328 = vrot.lane.b32.xlu0 %v4523_v14, %s5576_s25  ;;  %v5320_v14 = vld [vmem:[%s6994_s9 + $0x1b0] sm:$0xff]  }
 0x564   :  { %888 = vperm.xlu1 %5268, %v870_v15  }
 0x5b4   :  { %v1192_v16 = vpop.permute.xlu0 %1191 }
 0x5b5   :  { %v1193_v17 = vrot.slane %v1192_v16, 2 }
 0x5b6   :  { %v1201_v3 = vpop.permute.xlu1 %1200 }
 0x5b7   :  { %v1195_v18 = vsel %vm1194_vm7, %v1192_v16, %v1193_v17  ;;  %v1202_v19 = vrot.slane %v1201_v3, 2 }
 0x5b8   :  { %1197 = vst [vmem:[#allocation2 + $0x1] sm:$0x1] %v1195_v18  ;;  %v1208_v21 = vpop.permute.xlu0 %1207 }
 0x5b9   :  { %v1203_v22 = vsel %vm1194_vm7, %v1201_v3, %v1202_v19  ;;  %v1209_v8 = vrot.slane %v1208_v21, 2  ;;  %v5323_v3 = vld [vmem:[%s6994_s9 + $0x1e8] sm:$0xff]  }
 0x5ba   :  { %1205 = vst [vmem:[#allocation2 + $0x3] sm:$0x1] %v1203_v22  ;;  %v1216_v24 = vpop.permute.xlu1 %1215 }
 0x5bb   :  { %v1210_v25 = vsel %vm1194_vm7, %v1208_v21, %v1209_v8  ;;  %v1217_v26 = vrot.slane %v1216_v24, 2 }
 0x5bc   :  { %1212 = vst [vmem:[#allocation2 + $0x5] sm:$0x1] %v1210_v25  ;;  %v1230_v27 = vpop.permute.xlu0 %1229 }
 0x5bd   :  { %v1218_v28 = vsel %vm1194_vm7, %v1216_v24, %v1217_v26  ;;  %v1231_v29 = vrot.slane %v1230_v27, 2  ;;  %v5322_v24 = vld [vmem:[%s6994_s9 + $0x128] sm:$0xff]  }
 0x5be   :  { %1220 = vst [vmem:[#allocation2 + $0x7] sm:$0x1] %v1218_v28  ;;  %v1238_v30 = vpop.permute.xlu1 %1237 }
 0x5bf   :  { %v1232_v31 = vsel %vm1194_vm7, %v1230_v27, %v1231_v29  ;;  %v1239_v32 = vrot.slane %v1238_v30, 2  ;;  %v5326_v29 = vld [vmem:[%s6994_s9 + $0x160] sm:$0xff]  }
 0x5c0   :  { %1234 = vst [vmem:[#allocation2 + $0x9] sm:$0x1] %v1232_v31  ;;  %v1245_v33 = vpop.permute.xlu0 %1244 }
 0x5c1   :  { %v1240_v34 = vsel %vm1194_vm7, %v1238_v30, %v1239_v32  ;;  %v1246_v36 = vrot.slane %v1245_v33, 2 }
 0x5c2   :  { %1242 = vst [vmem:[#allocation2 + $0xb] sm:$0x1] %v1240_v34  ;;  %v1253_v37 = vpop.permute.xlu1 %1252  ;;  %v5325_v34 = vld [vmem:[%s6994_s9 + $0x1a8] sm:$0xff]  }
 0x5c3   :  { %v1247_v39 = vsel %vm1194_vm7, %v1245_v33, %v1246_v36  ;;  %v1254_v42 = vrot.slane %v1253_v37, 2 }
 0x5c4   :  { %1249 = vst [vmem:[#allocation2 + $0xd] sm:$0x1] %v1247_v39 }
 0x5c5   :  { %v1255_v41 = vsel %vm1194_vm7, %v1253_v37, %v1254_v42  ;;  %v1486_v43 = vld [vmem:[#allocation2] sm:$0xff] }
 0x5c6   :  { %1257 = vst [vmem:[#allocation2 + $0xf] sm:$0x1] %v1255_v41  ;;  %v1269_v38 = vpop.permute.xlu1 %1268  ;;  %v1509_v23 = vrot.slane %v1486_v43, %v6047_v60  ;;  %v1502_v2 = vcombine.high %v1486_v43, %v1486_v43  ;;  %v5328_v41 = vld [vmem:[%s6994_s9 + $0x1e0] sm:$0xff]  }
 0x5c7   :  { %v1270_v44 = vrot.slane %v1269_v38, 2 }
 0x5c8   :  { %v1517_v45 = vcombine.high %v1509_v23, %v1509_v23  ;;  %v1516_v46 = vrot.slane %v1502_v2, %v6047_v60  ;;  %v1670_v54 = vpack.c.bf16 %v1509_v23, %v1509_v23 }
 0x5c9   :  { %v1271_v48 = vsel %vm1194_vm7, %v1269_v38, %v1270_v44  ;;  %v5327_v44 = vld [vmem:[%s6994_s9 + $0x120] sm:$0xff]  }
 0x5ca   :  { %1273 = vst [vmem:[#allocation2 + $0x11] sm:$0x1] %v1271_v48  ;;  %v1284_v49 = vpop.permute.xlu1 %1283  ;;  %v1671_v35 = vpack.c.bf16 %v1517_v45, %v1517_v45  ;;  %v1518_v52 = vcombine.high %v1516_v46, %v1516_v46  ;;  %v1672_v61 = vpack.c.bf16 %v1516_v46, %v1516_v46  ;;  %v5330_v48 = vld [vmem:[%s6994_s9 + $0x158] sm:$0xff]  }
 0x5cb   :  { %v1285_v53 = vrot.slane %v1284_v49, 2 }
 0x5cc   :  { %3789 = vmatprep.mubr.bf16.mxu0 %v1671_v35  ;;  %v1673_v56 = vpack.c.bf16 %v1518_v52, %v1518_v52 }
 0x5cd   :  { %v1286_v58 = vsel %vm1194_vm7, %v1284_v49, %v1285_v53  ;;  %v884_v59 = vpop.permute.xlu0 %883  ;;  %3790 = vmatmul.mubr.bf16.vlgmr.msra.gmra.mxu0 %v1670_v54  ;;  %v1487_v63 = vld [vmem:[#allocation2 + $0x8] sm:$0xff]  ;;  %v5332_v53 = vld [vmem:[%s6994_s9 + $0x1d8] sm:$0xff]  }
 0x5ce   :  { %1288 = vst [vmem:[#allocation2 + $0x15] sm:$0x1] %v1286_v58  ;;  %v948_v0 = vadd.f32 %v947_v47, %v884_v59  ;;  %v6176_v1 = vadd.f32 %v949_v57, %v884_v59  ;;  %v999_v4 = vadd.f32 %v6036_v50, %v884_v59  ;;  %4871 = vmatpush3.bf16.msra.mxu0 %v5314_v51  ;;  %v1306_v5 = vpop.permute.xlu1 %1305  ;;  %v5329_v51 = vld [vmem:[%s6994_s9 + $0x1a0] sm:$0xff]   ;;  %v5334_v58 = vld [vmem:[%s6994_s9 + $0x150] sm:$0xff]  }
 0x5cf   :  { %3829 = vmatprep.mubr.bf16.mxu1 %v1673_v56  ;;  %v1307_v7 = vrot.slane %v1306_v5, 2  ;;  %4872 = vmatprep.subr.bf16.mxu0 %v5317_v55  ;;  %v6186_v10 = vrot.slane %v1487_v63, %v6047_v60  ;;  %v1519_v11 = vcombine.high %v1487_v63, %v1487_v63  ;;  %v5331_v55 = vld [vmem:[%s6994_s9 + $0x118] sm:$0xff]   ;;  %v951_v56 = vpop.f32.mrf.mxu0  ;;  %v5336_v63 = vld [vmem:[%s6994_s9 + $0x1d0] sm:$0xff]  }
 0x5d0   :  { %3830 = vmatmul.mubr.bf16.vlgmr.msra.gmra.mxu1 %v1672_v61  ;;  %v1011_v12 = vmax.f32 %v948_v0, 0.0  ;;  %v1012_v50 = vmax.f32 %v6176_v1, 0.0  ;;  %v1013_v13 = vmax.f32 %v999_v4, 0.0  ;;  %v5333_v61 = vld [vmem:[%s6994_s9 + $0x198] sm:$0xff]   ;;  %v5335_v1 = vld [vmem:[%s6994_s9 + $0x110] sm:$0xff]  }
 0x5d1   :  { %4893 = vmatpush3.bf16.msra.mxu1 %v5316_v40  ;;  %v1308_v15 = vsel %vm1194_vm7, %v1306_v5, %v1307_v7  ;;  %v1277_v16 = vpop.permute.xlu0 %1276  ;;  %v1534_v17 = vcombine.high %v6186_v10, %v6186_v10  ;;  %v6199_v18 = vrot.slane %v1519_v11, %v6047_v60  ;;  %v953_v4 = vpop.f32.mrf.mxu0 }
 0x5d2   :  { %4894 = vmatprep.subr.bf16.mxu1 %v5319_v62  ;;  %1099 = vst [vmem:[#allocation2 + $0x20] sm:$0x1] %v1011_v12  ;;  %v1107_v19 = vrot.slane %v1011_v12, %v6047_v60  ;;  %v1119_v21 = vcombine.high %v1011_v12, %v1011_v12  ;;  %v1336_v22 = vcombine.low %v1012_v50, %v1013_v13  ;;  %1310 = vst [vmem:[#allocation2 + $0x19] sm:$0x1] %v1308_v15  ;;  %v1321_v8 = vpop.permute.xlu1 %1320 }
 0x5d3   :  { %4873 = vmatpush3.bf16.msra.mxu0 %v5318_v6  ;;  %v1278_v25 = vrot.slane %v1277_v16, 2  ;;  %v1322_v26 = vrot.slane %v1321_v8, 2  ;;  %v1675_v27 = vpack.c.bf16 %v1534_v17, %v1534_v17  ;;  %v1535_v28 = vcombine.high %v6199_v18, %v6199_v18 }
 0x5d4   :  { %4874 = vmatprep.subr.bf16.mxu0 %v5321_v9  ;;  %v4506_v30 = vrot.slane %v1107_v19, 9  ;;  %v1112_v31 = vcombine.high %v1107_v19, %v1107_v19  ;;  %v1126_v32 = vrot.slane %v1119_v21, %v6047_v60  ;;  %4508 = vst.sshfl [vmem:[#allocation2 + $0x28] sm:$0x1 pattern:$0x76325410] %v1119_v21  ;;  %v1343_v33 = vrot.slane %v1336_v22, %v6047_v60  ;;  %v5338_v9 = vld [vmem:[%s6994_s9 + $0x148] sm:$0xff]  }
 0x5d5   :  { %4895 = vmatpush3.bf16.msra.mxu1 %v5320_v14  ;;  %v1279_v36 = vsel %vm1194_vm7, %v1277_v16, %v1278_v25  ;;  %v1323_v37 = vsel %vm1194_vm7, %v1321_v8, %v1322_v26  ;;  %3869 = vmatprep.mubr.bf16.mxu0 %v1675_v27  ;;  %v1292_v39 = vpop.permute.xlu0 %1291  ;;  %v1677_v42 = vpack.c.bf16 %v1535_v28, %v1535_v28  ;;  %v5337_v14 = vld [vmem:[%s6994_s9 + $0x190] sm:$0xff]   ;;  %v5340_v16 = vld [vmem:[%s6994_s9 + $0x1c8] sm:$0xff]   ;;  %v5342_v8 = vld [vmem:[%s6994_s9 + $0x140] sm:$0xff]  }
 0x5d6   :  { %4896 = vmatprep.subr.bf16.mxu1 %v5323_v3  ;;  %1111 = vst [vmem:[#allocation2 + $0x22] sm:$0x1] %v4506_v30  ;;  %1114 = vst [vmem:[#allocation2 + $0x24] sm:$0x1] %v1112_v31  ;;  %v4507_v43 = vrot.slane %v1112_v31, 9  ;;  %v4509_v38 = vrot.slane %v1126_v32, 9  ;;  %v1133_v23 = vcombine.high %v1126_v32, %v1126_v32  ;;  %1344 = vrot.lane.b32.xlu0 %v1343_v33, %s5576_s25 }
 0x5d7   :  { %1281 = vst [vmem:[#allocation2 + $0x13] sm:$0x1] %v1279_v36  ;;  %1325 = vst [vmem:[#allocation2 + $0x1d] sm:$0x1] %v1323_v37  ;;  %v1293_v2 = vrot.slane %v1292_v39, 2  ;;  %4875 = vmatpush3.bf16.msra.mxu0 %v5322_v24  ;;  %v1373_v45 = vcombine.high %v1012_v50, %v1013_v13  ;;  %3909 = vmatprep.mubr.bf16.mxu1 %v1677_v42  ;;  %v4524_v46 = vrot.slane %v1343_v33, 9 }
 0x5d8   :  { %4876 = vmatprep.subr.bf16.mxu0 %v5326_v29  ;;  %v1358_v47 = vcombine.high %v1343_v33, %v1343_v33  ;;  %1118 = vst [vmem:[#allocation2 + $0x26] sm:$0x1] %v4507_v43  ;;  %1132 = vst [vmem:[#allocation2 + $0x2a] sm:$0x1] %v4509_v38  ;;  %v4510_v49 = vrot.slane %v1133_v23, 9  ;;  %v5341_v28 = vld [vmem:[%s6994_s9 + $0x188] sm:$0xff]  }
 0x5d9   :  { %1135 = vst [vmem:[#allocation2 + $0x2c] sm:$0x1] %v1133_v23  ;;  %v1294_v35 = vsel %vm1194_vm7, %v1292_v39, %v1293_v2  ;;  %4897 = vmatpush3.bf16.msra.mxu1 %v5325_v34  ;;  %1352 = vrot.lane.b32.xlu1 %v4524_v46, %s5576_s25  ;;  %v1314_v52 = vpop.permute.xlu0 %1313  ;;  %v1380_v57 = vrot.slane %v1373_v45, %v6047_v60  ;;  %v5344_v29 = vld [vmem:[%s6994_s9 + $0x1c0] sm:$0xff]   ;;  %v5346_v37 = vld [vmem:[%s6994_s9 + $0x278] sm:$0xff]  }
 0x5da   :  { %1296 = vst [vmem:[#allocation2 + $0x17] sm:$0x1] %v1294_v35  ;;  %4898 = vmatprep.subr.bf16.mxu1 %v5328_v41  ;;  %1139 = vst [vmem:[#allocation2 + $0x2e] sm:$0x1] %v4510_v49  ;;  %v1315_v54 = vrot.slane %v1314_v52, 2  ;;  %1359 = vrot.lane.b32.xlu0 %v1358_v47, %s5576_s25  ;;  %v4525_v40 = vrot.slane %v1358_v47, 9  ;;  %v1674_v49 = vpack.c.bf16 %v6186_v10, %v6186_v10 }
 0x5db   :  { %4877 = vmatpush3.bf16.msra.mxu0 %v5327_v44  ;;  %v4526_v6 = vrot.slane %v1380_v57, 9  ;;  %v1395_v7 = vcombine.high %v1380_v57, %v1380_v57  ;;  %v5343_v36 = vld [vmem:[%s6994_s9 + $0x100] sm:$0xff]   ;;  %v5348_v45 = vld [vmem:[%s6994_s9 + $0x2f8] sm:$0xff]   ;;  %v5351_v10 = vld [vmem:[%s6994_s9 + $0x270] sm:$0xff]  }
 0x5dc   :  { %4878 = vmatprep.subr.bf16.mxu0 %v5330_v48  ;;  %v1316_v59 = vsel %vm1194_vm7, %v1314_v52, %v1315_v54  ;;  %v5345_v23 = vld [vmem:[%s6994_s9 + $0x180] sm:$0xff]   ;;  %v5347_v47 = vld [vmem:[%s6994_s9 + $0x238] sm:$0xff]   ;;  %v1676_v52 = vpack.c.bf16 %v6199_v18, %v6199_v18  ;;  %v5355_v18 = vld [vmem:[%s6994_s9 + $0x268] sm:$0xff]  }
 0x5dd   :  { %4899 = vmatpush3.bf16.msra.mxu1 %v5329_v51  ;;  %1318 = vst [vmem:[#allocation2 + $0x1b] sm:$0x1] %v1316_v59  ;;  %1367 = vrot.lane.b32.xlu1 %v4525_v40, %s5576_s25  ;;  %v1329_v62 = vpop.permute.xlu0 %1328  ;;  %v4527_v22 = vrot.slane %v1395_v7, 9  ;;  %v5349_v51 = vld [vmem:[%s6994_s9 + $0x2b8] sm:$0xff]   ;;  %v5353_v40 = vld [vmem:[%s6994_s9 + $0x2f0] sm:$0xff]  }
 0x5de   :  { %4900 = vmatprep.subr.bf16.mxu1 %v5332_v53  ;;  %v1330_v0 = vrot.slane %v1329_v62, 2  ;;  %1381 = vrot.lane.b32.xlu0 %v1380_v57, %s5576_s25  ;;  %v5354_v57 = vld [vmem:[%s6994_s9 + $0x2b0] sm:$0xff]  }
 0x5df   :  { %4879 = vmatpush3.bf16.msra.mxu0 %v5331_v55  ;;  %v889_v5 = vpop.permute.xlu1 %888 }
 0x5e0   :  { %4880 = vmatprep.subr.bf16.mxu0 %v5334_v58  ;;  %v1331_v11 = vsel %vm1194_vm7, %v1329_v62, %v1330_v0  ;;  %v952_v12 = vadd.f32 %v951_v56, %v889_v5  ;;  %v954_v50 = vadd.f32 %v953_v4, %v889_v5  ;;  %v1002_v13 = vadd.f32 %v6075_v20, %v889_v5  ;;  %v5339_v20 = vld [vmem:[%s6994_s9 + $0x108] sm:$0xff]   ;;  %v5352_v56 = vld [vmem:[%s6994_s9 + $0x230] sm:$0xff]   ;;  %v5361_v4 = vld [vmem:[%s6994_s9 + $0x2e0] sm:$0xff]  }
 0x5e1   :  { %4901 = vmatpush3.bf16.msra.mxu1 %v5333_v61  ;;  %v1488_v15 = vld [vmem:[#allocation2 + $0x10] sm:$0xff]  ;;  %1333 = vst [vmem:[#allocation2 + $0x1f] sm:$0x1] %v1331_v11  ;;  %1389 = vrot.lane.b32.xlu1 %v4526_v6, %s5576_s25  ;;  %v5357_v61 = vld [vmem:[%s6994_s9 + $0x2e8] sm:$0xff]   ;;  %v5360_v5 = vld [vmem:[%s6994_s9 + $0x220] sm:$0xff]  }
 0x5e2   :  { %4902 = vmatprep.subr.bf16.mxu1 %v5336_v63  ;;  %v1536_v17 = vcombine.high %v1488_v15, %v1488_v15  ;;  %v1014_v3 = vmax.f32 %v952_v12, 0.0  ;;  %v1015_v19 = vmax.f32 %v954_v50, 0.0  ;;  %v1016_v21 = vmax.f32 %v1002_v13, 0.0  ;;  %1396 = vrot.lane.b32.xlu0 %v1395_v7, %s5576_s25  ;;  %v5356_v62 = vld [vmem:[%s6994_s9 + $0x228] sm:$0xff]   ;;  %v5359_v63 = vld [vmem:[%s6994_s9 + $0x260] sm:$0xff]   ;;  %v5363_v6 = vld [vmem:[%s6994_s9 + $0x258] sm:$0xff]  }
 0x5e3   :  { %4881 = vmatpush3.bf16.msra.mxu0 %v5335_v1  ;;  %v6275_v24 = vrot.slane %v1488_v15, %v6047_v60  ;;  %v5358_v0 = vld [vmem:[%s6994_s9 + $0x2a8] sm:$0xff]   ;;  %v5362_v7 = vld [vmem:[%s6994_s9 + $0x2a0] sm:$0xff]   ;;  %v5364_v11 = vld [vmem:[%s6994_s9 + $0x218] sm:$0xff]  }
 0x5e4   :  { %4882 = vmatprep.subr.bf16.mxu0 %v5338_v9  ;;  %1140 = vst [vmem:[#allocation2 + $0x30] sm:$0x1] %v1014_v3  ;;  %v1148_v25 = vrot.slane %v1014_v3, %v6047_v60  ;;  %v1160_v26 = vcombine.high %v1014_v3, %v1014_v3  ;;  %v1412_v27 = vcombine.low %v1015_v19, %v1016_v21  ;;  %v5365_v9 = vld [vmem:[%s6994_s9 + $0x2d8] sm:$0xff]   ;;  %v5367_v12 = vld [vmem:[%s6994_s9 + $0x250] sm:$0xff]   ;;  %v5371_v15 = vld [vmem:[%s6994_s9 + $0x248] sm:$0xff]  }
 0x5e5   :  { %4903 = vmatpush3.bf16.msra.mxu1 %v5337_v14  ;;  %1404 = vrot.lane.b32.xlu1 %v4527_v22, %s5576_s25  ;;  %v6286_v30 = vrot.slane %v1536_v17, %v6047_v60  ;;  %v1551_v39 = vcombine.high %v6275_v24, %v6275_v24  ;;  %v1449_v2 = vcombine.high %v1015_v19, %v1016_v21  ;;  %v5366_v50 = vld [vmem:[%s6994_s9 + $0x298] sm:$0xff]   ;;  %v5369_v13 = vld [vmem:[%s6994_s9 + $0x2d0] sm:$0xff]   ;;  %v5373_v3 = vld [vmem:[%s6994_s9 + $0x2c8] sm:$0xff]  }
 0x5e6   :  { %4904 = vmatprep.subr.bf16.mxu1 %v5340_v16  ;;  %v4511_v31 = vrot.slane %v1148_v25, 9  ;;  %v1153_v32 = vcombine.high %v1148_v25, %v1148_v25  ;;  %v1167_v33 = vrot.slane %v1160_v26, %v6047_v60  ;;  %4513 = vst.sshfl [vmem:[#allocation2 + $0x38] sm:$0x1 pattern:$0x76325410] %v1160_v26  ;;  %v1419_v34 = vrot.slane %v1412_v27, %v6047_v60  ;;  %v5368_v14 = vld [vmem:[%s6994_s9 + $0x210] sm:$0xff]  }
 0x5e7   :  { %4883 = vmatpush3.bf16.msra.mxu0 %v5339_v20  ;;  %v1552_v48 = vcombine.high %v6286_v30, %v6286_v30  ;;  %v1679_v35 = vpack.c.bf16 %v1551_v39, %v1551_v39  ;;  %v1456_v54 = vrot.slane %v1449_v2, %v6047_v60  ;;  %v5370_v17 = vld [vmem:[%s6994_s9 + $0x290] sm:$0xff]   ;;  %v5372_v19 = vld [vmem:[%s6994_s9 + $0x208] sm:$0xff]   ;;  %v5375_v20 = vld [vmem:[%s6994_s9 + $0x240] sm:$0xff]  }
 0x5e8   :  { %4884 = vmatprep.subr.bf16.mxu0 %v5342_v8  ;;  %1152 = vst [vmem:[#allocation2 + $0x32] sm:$0x1] %v4511_v31  ;;  %1155 = vst [vmem:[#allocation2 + $0x34] sm:$0x1] %v1153_v32  ;;  %v4512_v42 = vrot.slane %v1153_v32, 9  ;;  %v4514_v41 = vrot.slane %v1167_v33, 9  ;;  %v1174_v43 = vcombine.high %v1167_v33, %v1167_v33  ;;  %1420 = vrot.lane.b32.xlu0 %v1419_v34, %s5576_s25 }
 0x5e9   :  { %4905 = vmatpush3.bf16.msra.mxu1 %v5341_v28  ;;  %v4528_v38 = vrot.slane %v1419_v34, 9  ;;  %v1434_v44 = vcombine.high %v1419_v34, %v1419_v34  ;;  %v1681_v55 = vpack.c.bf16 %v1552_v48, %v1552_v48  ;;  %v4530_v58 = vrot.slane %v1456_v54, 9  ;;  %v1489_v16 = vld [vmem:[#allocation2 + $0x18] sm:$0xff]  ;;  %v5374_v22 = vld [vmem:[%s6994_s9 + $0x288] sm:$0xff]   ;;  %v5377_v25 = vld [vmem:[%s6994_s9 + $0x2c0] sm:$0xff]  }
 0x5ea   :  { %4906 = vmatprep.subr.bf16.mxu1 %v5344_v29  ;;  %1159 = vst [vmem:[#allocation2 + $0x36] sm:$0x1] %v4512_v42  ;;  %1173 = vst [vmem:[#allocation2 + $0x3a] sm:$0x1] %v4514_v41  ;;  %v4515_v46 = vrot.slane %v1174_v43, 9  ;;  %v1471_v59 = vcombine.high %v1456_v54, %v1456_v54  ;;  %v1553_v21 = vcombine.high %v1489_v16, %v1489_v16  ;;  %v5376_v26 = vld [vmem:[%s6994_s9 + $0x200] sm:$0xff]  }
 0x5eb   :  { %1176 = vst [vmem:[#allocation2 + $0x3c] sm:$0x1] %v1174_v43  ;;  %4885 = vmatpush3.bf16.msra.mxu0 %v5343_v36  ;;  %1428 = vrot.lane.b32.xlu1 %v4528_v38, %s5576_s25  ;;  %v4529_v53 = vrot.slane %v1434_v44, 9  ;;  %v6401_v8 = vrot.slane %v1489_v16, %v6047_v60  ;;  %v5379_v28 = vld [vmem:[%s6994_s9 + $0x378] sm:$0xff]   ;;  %v5378_v29 = vld [vmem:[%s6994_s9 + $0x280] sm:$0xff]   ;;  %v1678_v36 = vpack.c.bf16 %v6275_v24, %v6275_v24  ;;  %v5386_v24 = vld [vmem:[%s6994_s9 + $0x3f0] sm:$0xff]  }
 0x5ec   :  { %4914 = vmatprep.subr.bf16.mxu0 %v5346_v37  ;;  %1180 = vst [vmem:[#allocation2 + $0x3e] sm:$0x1] %v4515_v46  ;;  %1435 = vrot.lane.b32.xlu0 %v1434_v44, %s5576_s25  ;;  %v4531_v1 = vrot.slane %v1471_v59, 9  ;;  %v6410_v27 = vrot.slane %v1553_v21, %v6047_v60  ;;  %v5381_v32 = vld [vmem:[%s6994_s9 + $0x3f8] sm:$0xff]   ;;  %v5384_v37 = vld [vmem:[%s6994_s9 + $0x370] sm:$0xff]   ;;  %v1680_v41 = vpack.c.bf16 %v6286_v30, %v6286_v30  ;;  %v5390_v2 = vld [vmem:[%s6994_s9 + $0x3e8] sm:$0xff]  }
 0x5ed   :  { %4907 = vmatpush3.bf16.msra.mxu1 %v5345_v23  ;;  %v1568_v31 = vcombine.high %v6401_v8, %v6401_v8  ;;  %v5380_v33 = vld [vmem:[%s6994_s9 + $0x338] sm:$0xff]   ;;  %v5385_v38 = vld [vmem:[%s6994_s9 + $0x330] sm:$0xff]   ;;  %v5388_v23 = vld [vmem:[%s6994_s9 + $0x368] sm:$0xff]  }
 0x5ee   :  { %3870 = vmatmul.mubr.bf16.vlgmr.msra.gmra.mxu0 %v1674_v49  ;;  %4936 = vmatprep.subr.bf16.mxu1 %v5348_v45  ;;  %v1569_v34 = vcombine.high %v6410_v27, %v6410_v27  ;;  %v5382_v42 = vld [vmem:[%s6994_s9 + $0x3b8] sm:$0xff]   ;;  %v5387_v30 = vld [vmem:[%s6994_s9 + $0x3b0] sm:$0xff]   ;;  %v5389_v44 = vld [vmem:[%s6994_s9 + $0x328] sm:$0xff]  }
 0x5ef   :  { %4915 = vmatpush3.bf16.msra.mxu0 %v5347_v47  ;;  %3949 = vmatprep.mubr.bf16.mxu0 %v1679_v35  ;;  %v1683_v39 = vpack.c.bf16 %v1568_v31, %v1568_v31  ;;  %v5392_v45 = vld [vmem:[%s6994_s9 + $0x360] sm:$0xff]   ;;  %v5391_v46 = vld [vmem:[%s6994_s9 + $0x3a8] sm:$0xff]   ;;  %v5396_v49 = vld [vmem:[%s6994_s9 + $0x358] sm:$0xff]  }
 0x5f0   :  { %3910 = vmatmul.mubr.bf16.vlgmr.msra.gmra.mxu1 %v1676_v52  ;;  %1443 = vrot.lane.b32.xlu1 %v4529_v53, %s5576_s25  ;;  %v1685_v43 = vpack.c.bf16 %v1569_v34, %v1569_v34  ;;  %v5394_v47 = vld [vmem:[%s6994_s9 + $0x3e0] sm:$0xff]   ;;  %v5397_v52 = vld [vmem:[%s6994_s9 + $0x318] sm:$0xff]   ;;  %v5400_v53 = vld [vmem:[%s6994_s9 + $0x350] sm:$0xff]  }
 0x5f1   :  { %4937 = vmatpush3.bf16.msra.mxu1 %v5349_v51  ;;  %3989 = vmatprep.mubr.bf16.mxu1 %v1681_v55  ;;  %v5393_v48 = vld [vmem:[%s6994_s9 + $0x320] sm:$0xff]   ;;  %v5398_v51 = vld [vmem:[%s6994_s9 + $0x3d8] sm:$0xff]   ;;  %v5401_v55 = vld [vmem:[%s6994_s9 + $0x310] sm:$0xff]  }
 0x5f2   :  { %4916 = vmatprep.subr.bf16.mxu0 %v5351_v10  ;;  %1457 = vrot.lane.b32.xlu0 %v1456_v54, %s5576_s25  ;;  %v5395_v35 = vld [vmem:[%s6994_s9 + $0x3a0] sm:$0xff]   ;;  %v5399_v10 = vld [vmem:[%s6994_s9 + $0x398] sm:$0xff]   ;;  %v5402_v54 = vld [vmem:[%s6994_s9 + $0x3d0] sm:$0xff]  }
 0x5f3   :  { %4917 = vmatpush3.bf16.msra.mxu0 %v5352_v56  ;;  %4938 = vmatprep.subr.bf16.mxu1 %v5353_v40  ;;  %v5404_v56 = vld [vmem:[%s6994_s9 + $0x348] sm:$0xff]   ;;  %v5403_v40 = vld [vmem:[%s6994_s9 + $0x390] sm:$0xff]   ;;  %v5424_v16 = vld [vmem:[%s6994_s9 + $0x460] sm:$0xff]  }
 0x5f4   :  { %1465 = vrot.lane.b32.xlu1 %v4530_v58, %s5576_s25  ;;  %4918 = vmatprep.subr.bf16.mxu0 %v5355_v18  ;;  %v5406_v18 = vld [vmem:[%s6994_s9 + $0x3c8] sm:$0xff]   ;;  %v5408_v58 = vld [vmem:[%s6994_s9 + $0x340] sm:$0xff]   ;;  %v5428_v21 = vld [vmem:[%s6994_s9 + $0x458] sm:$0xff]  }
 0x5f5   :  { %4939 = vmatpush3.bf16.msra.mxu1 %v5354_v57  ;;  %v5405_v57 = vld [vmem:[%s6994_s9 + $0x308] sm:$0xff]   ;;  %v5435_v31 = vld [vmem:[%s6994_s9 + $0x490] sm:$0xff]   ;;  %v5440_v34 = vld [vmem:[%s6994_s9 + $0x440] sm:$0xff]  }
 0x5f6   :  { %1472 = vrot.lane.b32.xlu0 %v1471_v59, %s5576_s25  ;;  %4940 = vmatprep.subr.bf16.mxu1 %v5357_v61  ;;  %v5407_v59 = vld [vmem:[%s6994_s9 + $0x388] sm:$0xff]   ;;  %v5410_v61 = vld [vmem:[%s6994_s9 + $0x3c0] sm:$0xff]  }
 0x5f7   :  { %4919 = vmatpush3.bf16.msra.mxu0 %v5356_v62  ;;  %v5409_v62 = vld [vmem:[%s6994_s9 + $0x300] sm:$0xff]  }
 0x5f8   :  { %1480 = vrot.lane.b32.xlu1 %v4531_v1, %s5576_s25  ;;  %4920 = vmatprep.subr.bf16.mxu0 %v5359_v63  ;;  %v5412_v63 = vld [vmem:[%s6994_s9 + $0x478] sm:$0xff]  }
 0x5f9   :  { %4941 = vmatpush3.bf16.msra.mxu1 %v5358_v0  ;;  %v5411_v0 = vld [vmem:[%s6994_s9 + $0x380] sm:$0xff]   ;;  %v5414_v1 = vld [vmem:[%s6994_s9 + $0x4f8] sm:$0xff]  }
 0x5fa   :  { %4942 = vmatprep.subr.bf16.mxu1 %v5361_v4  ;;  %v5413_v4 = vld [vmem:[%s6994_s9 + $0x438] sm:$0xff]  }
 0x5fb   :  { %4921 = vmatpush3.bf16.msra.mxu0 %v5360_v5  ;;  %v1682_v5 = vpack.c.bf16 %v6401_v8, %v6401_v8  ;;  %v5429_v8 = vld [vmem:[%s6994_s9 + $0x418] sm:$0xff]  }
 0x5fc   :  { %4922 = vmatprep.subr.bf16.mxu0 %v5363_v6  ;;  %v5416_v6 = vld [vmem:[%s6994_s9 + $0x470] sm:$0xff]  }
 0x5fd   :  { %4943 = vmatpush3.bf16.msra.mxu1 %v5362_v7  ;;  %v5415_v7 = vld [vmem:[%s6994_s9 + $0x4b8] sm:$0xff]  }
 0x5fe   :  { %4944 = vmatprep.subr.bf16.mxu1 %v5365_v9  ;;  %v1684_v9 = vpack.c.bf16 %v6410_v27, %v6410_v27  ;;  %v5434_v27 = vld [vmem:[%s6994_s9 + $0x4d0] sm:$0xff]  }
 0x5ff   :  { %4923 = vmatpush3.bf16.msra.mxu0 %v5364_v11  ;;  %v5418_v11 = vld [vmem:[%s6994_s9 + $0x4f0] sm:$0xff]  }
 0x600   :  { %4924 = vmatprep.subr.bf16.mxu0 %v5367_v12  ;;  %v5417_v12 = vld [vmem:[%s6994_s9 + $0x430] sm:$0xff]  }
 0x601   :  { %4945 = vmatpush3.bf16.msra.mxu1 %v5366_v50  ;;  %v5420_v50 = vld [vmem:[%s6994_s9 + $0x468] sm:$0xff]  }
 0x602   :  { %4946 = vmatprep.subr.bf16.mxu1 %v5369_v13  ;;  %v5419_v13 = vld [vmem:[%s6994_s9 + $0x4b0] sm:$0xff]  }
 0x603   :  { %4925 = vmatpush3.bf16.msra.mxu0 %v5368_v14  ;;  %v5422_v14 = vld [vmem:[%s6994_s9 + $0x4e8] sm:$0xff]  }
 0x604   :  { %4926 = vmatprep.subr.bf16.mxu0 %v5371_v15  ;;  %v5421_v15 = vld [vmem:[%s6994_s9 + $0x428] sm:$0xff]  }
 0x605   :  { %4947 = vmatpush3.bf16.msra.mxu1 %v5370_v17  ;;  %v5423_v17 = vld [vmem:[%s6994_s9 + $0x4a8] sm:$0xff]  }
 0x606   :  { %4948 = vmatprep.subr.bf16.mxu1 %v5373_v3  ;;  %v5426_v3 = vld [vmem:[%s6994_s9 + $0x4e0] sm:$0xff]  }
 0x607   :  { %4927 = vmatpush3.bf16.msra.mxu0 %v5372_v19  ;;  %v5425_v19 = vld [vmem:[%s6994_s9 + $0x420] sm:$0xff]  }
 0x608   :  { %4928 = vmatprep.subr.bf16.mxu0 %v5375_v20  ;;  %v5427_v20 = vld [vmem:[%s6994_s9 + $0x4a0] sm:$0xff]  }
 0x609   :  { %4949 = vmatpush3.bf16.msra.mxu1 %v5374_v22  ;;  %v5430_v22 = vld [vmem:[%s6994_s9 + $0x4d8] sm:$0xff]  }
 0x60a   :  { %4950 = vmatprep.subr.bf16.mxu1 %v5377_v25  ;;  %v5432_v25 = vld [vmem:[%s6994_s9 + $0x450] sm:$0xff]  }
 0x60b   :  { %4929 = vmatpush3.bf16.msra.mxu0 %v5376_v26  ;;  %v5431_v26 = vld [vmem:[%s6994_s9 + $0x498] sm:$0xff]  }
 0x60c   :  { %4958 = vmatprep.subr.bf16.mxu0 %v5379_v28  ;;  %v5433_v28 = vld [vmem:[%s6994_s9 + $0x410] sm:$0xff]  }
 0x60d   :  { %4951 = vmatpush3.bf16.msra.mxu1 %v5378_v29  ;;  %v5436_v29 = vld [vmem:[%s6994_s9 + $0x448] sm:$0xff]  }
 0x60e   :  { %3950 = vmatmul.mubr.bf16.vlgmr.msra.gmra.mxu0 %v1678_v36  ;;  %4980 = vmatprep.subr.bf16.mxu1 %v5381_v32  ;;  %v5438_v32 = vld [vmem:[%s6994_s9 + $0x4c8] sm:$0xff]  }
 0x60f   :  { %4959 = vmatpush3.bf16.msra.mxu0 %v5380_v33  ;;  %4029 = vmatprep.mubr.bf16.mxu0 %v1683_v39  ;;  %v5437_v33 = vld [vmem:[%s6994_s9 + $0x408] sm:$0xff]   ;;  %v5441_v39 = vld [vmem:[%s6994_s9 + $0x400] sm:$0xff]  }
 0x610   :  { %3990 = vmatmul.mubr.bf16.vlgmr.msra.gmra.mxu1 %v1680_v41  ;;  %4960 = vmatprep.subr.bf16.mxu0 %v5384_v37  ;;  %v5439_v36 = vld [vmem:[%s6994_s9 + $0x488] sm:$0xff]   ;;  %v5442_v37 = vld [vmem:[%s6994_s9 + $0x4c0] sm:$0xff]  }
 0x611   :  { %4981 = vmatpush3.bf16.msra.mxu1 %v5382_v42  ;;  %4069 = vmatprep.mubr.bf16.mxu1 %v1685_v43  ;;  %v5444_v42 = vld [vmem:[%s6994_s9 + $0x578] sm:$0xff]  }
 0x612   :  { %4982 = vmatprep.subr.bf16.mxu1 %v5386_v24  ;;  %v5443_v24 = vld [vmem:[%s6994_s9 + $0x480] sm:$0xff]  }
 0x613   :  { %4961 = vmatpush3.bf16.msra.mxu0 %v5385_v38  ;;  %v5446_v38 = vld [vmem:[%s6994_s9 + $0x5f8] sm:$0xff]  }
 0x614   :  { %4962 = vmatprep.subr.bf16.mxu0 %v5388_v23 }
 0x615   :  { %4983 = vmatpush3.bf16.msra.mxu1 %v5387_v30 }
 0x616   :  { %4984 = vmatprep.subr.bf16.mxu1 %v5390_v2 }
 0x617   :  { %4963 = vmatpush3.bf16.msra.mxu0 %v5389_v44 }
 0x618   :  { %4964 = vmatprep.subr.bf16.mxu0 %v5392_v45 }
 0x619   :  { %4985 = vmatpush3.bf16.msra.mxu1 %v5391_v46 }
 0x61a   :  { %4986 = vmatprep.subr.bf16.mxu1 %v5394_v47 }
 0x61b   :  { %4965 = vmatpush3.bf16.msra.mxu0 %v5393_v48 }
 0x61c   :  { %4966 = vmatprep.subr.bf16.mxu0 %v5396_v49 }
 0x61d   :  { %4987 = vmatpush3.bf16.msra.mxu1 %v5395_v35 }
 0x61e   :  { %4988 = vmatprep.subr.bf16.mxu1 %v5398_v51 }
 0x61f   :  { %4967 = vmatpush3.bf16.msra.mxu0 %v5397_v52 }
 0x620   :  { %4968 = vmatprep.subr.bf16.mxu0 %v5400_v53 }
 0x621   :  { %4989 = vmatpush3.bf16.msra.mxu1 %v5399_v10 }
 0x622   :  { %4990 = vmatprep.subr.bf16.mxu1 %v5402_v54 }
 0x623   :  { %4969 = vmatpush3.bf16.msra.mxu0 %v5401_v55 }
 0x624   :  { %4970 = vmatprep.subr.bf16.mxu0 %v5404_v56 }
 0x625   :  { %4991 = vmatpush3.bf16.msra.mxu1 %v5403_v40 }
 0x626   :  { %4992 = vmatprep.subr.bf16.mxu1 %v5406_v18 }
 0x627   :  { %4971 = vmatpush3.bf16.msra.mxu0 %v5405_v57 }
 0x628   :  { %4972 = vmatprep.subr.bf16.mxu0 %v5408_v58 }
 0x629   :  { %4993 = vmatpush3.bf16.msra.mxu1 %v5407_v59 }
 0x62a   :  { %4994 = vmatprep.subr.bf16.mxu1 %v5410_v61 }
 0x62b   :  { %4973 = vmatpush3.bf16.msra.mxu0 %v5409_v62 }
 0x62c   :  { %5002 = vmatprep.subr.bf16.mxu0 %v5412_v63 }
 0x62d   :  { %4995 = vmatpush3.bf16.msra.mxu1 %v5411_v0 }
 0x62e   :  { %4030 = vmatmul.mubr.bf16.vlgmr.msra.gmra.mxu0 %v1682_v5  ;;  %5024 = vmatprep.subr.bf16.mxu1 %v5414_v1 }
 0x62f   :  { %5003 = vmatpush3.bf16.msra.mxu0 %v5413_v4 }
 0x630   :  { %4070 = vmatmul.mubr.bf16.vlgmr.msra.gmra.mxu1 %v1684_v9  ;;  %5004 = vmatprep.subr.bf16.mxu0 %v5416_v6 }
 0x631   :  { %5025 = vmatpush3.bf16.msra.mxu1 %v5415_v7 }
 0x632   :  { %5026 = vmatprep.subr.bf16.mxu1 %v5418_v11 }
 0x633   :  { %5005 = vmatpush3.bf16.msra.mxu0 %v5417_v12 }
 0x634   :  { %5006 = vmatprep.subr.bf16.mxu0 %v5420_v50 }
 0x635   :  { %5027 = vmatpush3.bf16.msra.mxu1 %v5419_v13 }
 0x636   :  { %5028 = vmatprep.subr.bf16.mxu1 %v5422_v14  ;;  %v5445_v14 = vld [vmem:[%s6994_s9 + $0x538] sm:$0xff]  }
 0x637   :  { %5007 = vmatpush3.bf16.msra.mxu0 %v5421_v15 }
 0x638   :  { %5008 = vmatprep.subr.bf16.mxu0 %v5424_v16 }
 0x639   :  { %5029 = vmatpush3.bf16.msra.mxu1 %v5423_v17  ;;  %v5449_v17 = vld [vmem:[%s6994_s9 + $0x570] sm:$0xff]  }
 0x63a   :  { %5030 = vmatprep.subr.bf16.mxu1 %v5426_v3 }
 0x63b   :  { %5009 = vmatpush3.bf16.msra.mxu0 %v5425_v19 }
 0x63c   :  { %5010 = vmatprep.subr.bf16.mxu0 %v5428_v21 }
 0x63d   :  { %5031 = vmatpush3.bf16.msra.mxu1 %v5427_v20 }
 0x63e   :  { %5032 = vmatprep.subr.bf16.mxu1 %v5430_v22  ;;  %v5448_v22 = vld [vmem:[%s6994_s9 + $0x5b8] sm:$0xff]  }
 0x63f   :  { %5011 = vmatpush3.bf16.msra.mxu0 %v5429_v8 }
 0x640   :  { %5012 = vmatprep.subr.bf16.mxu0 %v5432_v25 }
 0x641   :  { %5033 = vmatpush3.bf16.msra.mxu1 %v5431_v26 }
 0x642   :  { %5034 = vmatprep.subr.bf16.mxu1 %v5434_v27  ;;  %v5450_v27 = vld [vmem:[%s6994_s9 + $0x530] sm:$0xff]  }
 0x643   :  { %5013 = vmatpush3.bf16.msra.mxu0 %v5433_v28  ;;  %v5451_v28 = vld [vmem:[%s6994_s9 + $0x5f0] sm:$0xff]  }
 0x644   :  { %5014 = vmatprep.subr.bf16.mxu0 %v5436_v29 }
 0x645   :  { %5035 = vmatpush3.bf16.msra.mxu1 %v5435_v31 }
 0x646   :  { %5036 = vmatprep.subr.bf16.mxu1 %v5438_v32 }
 0x647   :  { %5015 = vmatpush3.bf16.msra.mxu0 %v5437_v33 }
 0x648   :  { %5016 = vmatprep.subr.bf16.mxu0 %v5440_v34  ;;  %v1345_v41 = vpop.permute.xlu0 %1344  ;;  %v5453_v34 = vld [vmem:[%s6994_s9 + $0x568] sm:$0xff]  }
 0x649   :  { %5037 = vmatpush3.bf16.msra.mxu1 %v5439_v36  ;;  %v1346_v43 = vrot.slane %v1345_v41, 2 }
 0x64a   :  { %5038 = vmatprep.subr.bf16.mxu1 %v5442_v37 }
 0x64b   :  { %5017 = vmatpush3.bf16.msra.mxu0 %v5441_v39  ;;  %v1347_v23 = vsel %vm1194_vm7, %v1345_v41, %v1346_v43  ;;  %v1353_v30 = vpop.permute.xlu1 %1352 }
 0x64c   :  { %5046 = vmatprep.subr.bf16.mxu0 %v5444_v42  ;;  %1349 = vst [vmem:[#allocation2 + $0x21] sm:$0x1] %v1347_v23  ;;  %v1354_v2 = vrot.slane %v1353_v30, 2  ;;  %v1360_v44 = vpop.permute.xlu0 %1359  ;;  %v5454_v23 = vld [vmem:[%s6994_s9 + $0x528] sm:$0xff]  }
 0x64d   :  { %5039 = vmatpush3.bf16.msra.mxu1 %v5443_v24  ;;  %v1361_v45 = vrot.slane %v1360_v44, 2  ;;  %v5452_v24 = vld [vmem:[%s6994_s9 + $0x5b0] sm:$0xff]  }
 0x64e   :  { %5068 = vmatprep.subr.bf16.mxu1 %v5446_v38  ;;  %v1355_v46 = vsel %vm1194_vm7, %v1353_v30, %v1354_v2  ;;  %v5455_v30 = vld [vmem:[%s6994_s9 + $0x5e8] sm:$0xff]  }
 0x64f   :  { %1357 = vst [vmem:[#allocation2 + $0x23] sm:$0x1] %v1355_v46  ;;  %v1362_v47 = vsel %vm1194_vm7, %v1360_v44, %v1361_v45  ;;  %v1368_v48 = vpop.permute.xlu1 %1367  ;;  %v5458_v46 = vld [vmem:[%s6994_s9 + $0x560] sm:$0xff]  }
 0x650   :  { %1364 = vst [vmem:[#allocation2 + $0x25] sm:$0x1] %v1362_v47  ;;  %v1369_v49 = vrot.slane %v1368_v48, 2  ;;  %v1382_v35 = vpop.permute.xlu0 %1381 }
 0x651   :  { %v1383_v51 = vrot.slane %v1382_v35, 2 }
 0x652   :  { %v1370_v52 = vsel %vm1194_vm7, %v1368_v48, %v1369_v49 }
 0x653   :  { %1372 = vst [vmem:[#allocation2 + $0x27] sm:$0x1] %v1370_v52  ;;  %v1384_v53 = vsel %vm1194_vm7, %v1382_v35, %v1383_v51  ;;  %v1390_v10 = vpop.permute.xlu1 %1389  ;;  %v5457_v51 = vld [vmem:[%s6994_s9 + $0x5a8] sm:$0xff]   ;;  %v5459_v52 = vld [vmem:[%s6994_s9 + $0x520] sm:$0xff]  }
 0x654   :  { %1386 = vst [vmem:[#allocation2 + $0x29] sm:$0x1] %v1384_v53  ;;  %v1391_v54 = vrot.slane %v1390_v10, 2  ;;  %v1397_v55 = vpop.permute.xlu0 %1396  ;;  %v5460_v53 = vld [vmem:[%s6994_s9 + $0x5e0] sm:$0xff]  }
 0x655   :  { %v1398_v56 = vrot.slane %v1397_v55, 2 }
 0x656   :  { %v1392_v40 = vsel %vm1194_vm7, %v1390_v10, %v1391_v54  ;;  %v5462_v54 = vld [vmem:[%s6994_s9 + $0x558] sm:$0xff]  }
 0x657   :  { %1394 = vst [vmem:[#allocation2 + $0x2b] sm:$0x1] %v1392_v40  ;;  %v1399_v18 = vsel %vm1194_vm7, %v1397_v55, %v1398_v56  ;;  %v1405_v57 = vpop.permute.xlu1 %1404  ;;  %v5461_v55 = vld [vmem:[%s6994_s9 + $0x5a0] sm:$0xff]   ;;  %v5463_v56 = vld [vmem:[%s6994_s9 + $0x518] sm:$0xff]  }
 0x658   :  { %1401 = vst [vmem:[#allocation2 + $0x2d] sm:$0x1] %v1399_v18  ;;  %v1406_v58 = vrot.slane %v1405_v57, 2  ;;  %v5464_v40 = vld [vmem:[%s6994_s9 + $0x5d8] sm:$0xff]   ;;  %v5466_v18 = vld [vmem:[%s6994_s9 + $0x550] sm:$0xff]  }
 0x65a   :  { %v1407_v59 = vsel %vm1194_vm7, %v1405_v57, %v1406_v58  ;;  %v1421_v61 = vpop.permute.xlu0 %1420  ;;  %v1490_v62 = vld [vmem:[#allocation2 + $0x20] sm:$0xff]  ;;  %v5465_v57 = vld [vmem:[%s6994_s9 + $0x598] sm:$0xff]   ;;  %v5467_v58 = vld [vmem:[%s6994_s9 + $0x510] sm:$0xff]  }
 0x65b   :  { %1409 = vst [vmem:[#allocation2 + $0x2f] sm:$0x1] %v1407_v59  ;;  %v1422_v63 = vrot.slane %v1421_v61, 2  ;;  %v1577_v0 = vrot.slane %v1490_v62, %v6047_v60  ;;  %v1570_v1 = vcombine.high %v1490_v62, %v1490_v62  ;;  %v5468_v59 = vld [vmem:[%s6994_s9 + $0x5d0] sm:$0xff]  }
 0x65d   :  { %v1429_v4 = vpop.permute.xlu1 %1428  ;;  %v1423_v5 = vsel %vm1194_vm7, %v1421_v61, %v1422_v63  ;;  %v1585_v7 = vcombine.high %v1577_v0, %v1577_v0  ;;  %v1584_v11 = vrot.slane %v1570_v1, %v6047_v60  ;;  %v1686_v15 = vpack.c.bf16 %v1577_v0, %v1577_v0  ;;  %v5470_v61 = vld [vmem:[%s6994_s9 + $0x548] sm:$0xff]   ;;  %v5469_v63 = vld [vmem:[%s6994_s9 + $0x590] sm:$0xff]  }
 0x65e   :  { %v1430_v6 = vrot.slane %v1429_v4, 2  ;;  %1425 = vst [vmem:[#allocation2 + $0x31] sm:$0x1] %v1423_v5  ;;  %v1436_v9 = vpop.permute.xlu0 %1435  ;;  %v5471_v0 = vld [vmem:[%s6994_s9 + $0x508] sm:$0xff]  }
 0x65f   :  { %v1437_v50 = vrot.slane %v1436_v9, 2  ;;  %v1687_v13 = vpack.c.bf16 %v1585_v7, %v1585_v7  ;;  %v1586_v16 = vcombine.high %v1584_v11, %v1584_v11  ;;  %v1688_v26 = vpack.c.bf16 %v1584_v11, %v1584_v11  ;;  %v5472_v1 = vld [vmem:[%s6994_s9 + $0x5c8] sm:$0xff]   ;;  %v5476_v11 = vld [vmem:[%s6994_s9 + $0x5c0] sm:$0xff]  }
 0x660   :  { %v1431_v12 = vsel %vm1194_vm7, %v1429_v4, %v1430_v6  ;;  %v5474_v4 = vld [vmem:[%s6994_s9 + $0x540] sm:$0xff]   ;;  %v5473_v7 = vld [vmem:[%s6994_s9 + $0x588] sm:$0xff]  }
 0x661   :  { %1433 = vst [vmem:[#allocation2 + $0x33] sm:$0x1] %v1431_v12  ;;  %v1438_v3 = vsel %vm1194_vm7, %v1436_v9, %v1437_v50  ;;  %4109 = vmatprep.mubr.bf16.mxu0 %v1687_v13  ;;  %v1689_v20 = vpack.c.bf16 %v1586_v16, %v1586_v16  ;;  %v5475_v9 = vld [vmem:[%s6994_s9 + $0x500] sm:$0xff]   ;;  %v5478_v12 = vld [vmem:[%s6994_s9 + $0x678] sm:$0xff]  }
 0x662   :  { %v1444_v19 = vpop.permute.xlu1 %1443  ;;  %1440 = vst [vmem:[#allocation2 + $0x35] sm:$0x1] %v1438_v3  ;;  %4110 = vmatmul.mubr.bf16.vlgmr.msra.gmra.mxu0 %v1686_v15  ;;  %v1491_v8 = vld [vmem:[#allocation2 + $0x28] sm:$0xff]  ;;  %v5479_v15 = vld [vmem:[%s6994_s9 + $0x638] sm:$0xff]  }
 0x663   :  { %v1445_v21 = vrot.slane %v1444_v19, 2  ;;  %5047 = vmatpush3.bf16.msra.mxu0 %v5445_v14  ;;  %v6654_v29 = vrot.slane %v1491_v8, %v6047_v60  ;;  %v1587_v31 = vcombine.high %v1491_v8, %v1491_v8  ;;  %4149 = vmatprep.mubr.bf16.mxu1 %v1689_v20  ;;  %v5477_v14 = vld [vmem:[%s6994_s9 + $0x580] sm:$0xff]   ;;  %v5481_v20 = vld [vmem:[%s6994_s9 + $0x6b8] sm:$0xff]   ;;  %v5484_v8 = vld [vmem:[%s6994_s9 + $0x630] sm:$0xff]  }
 0x664   :  { %v1458_v25 = vpop.permute.xlu0 %1457  ;;  %5048 = vmatprep.subr.bf16.mxu0 %v5449_v17  ;;  %4150 = vmatmul.mubr.bf16.vlgmr.msra.gmra.mxu1 %v1688_v26  ;;  %v5480_v17 = vld [vmem:[%s6994_s9 + $0x6f8] sm:$0xff]  }
 0x665   :  { %v1446_v32 = vsel %vm1194_vm7, %v1444_v19, %v1445_v21  ;;  %v1459_v33 = vrot.slane %v1458_v25, 2  ;;  %v1602_v37 = vcombine.high %v6654_v29, %v6654_v29  ;;  %v6663_v39 = vrot.slane %v1587_v31, %v6047_v60  ;;  %5069 = vmatpush3.bf16.msra.mxu1 %v5448_v22  ;;  %v5483_v19 = vld [vmem:[%s6994_s9 + $0x670] sm:$0xff]   ;;  %v5489_v31 = vld [vmem:[%s6994_s9 + $0x6e8] sm:$0xff]  }
 0x666   :  { %1448 = vst [vmem:[#allocation2 + $0x37] sm:$0x1] %v1446_v32  ;;  %v1466_v36 = vpop.permute.xlu1 %1465  ;;  %5070 = vmatprep.subr.bf16.mxu1 %v5451_v28  ;;  %v1690_v16 = vpack.c.bf16 %v6654_v29, %v6654_v29  ;;  %v5486_v28 = vld [vmem:[%s6994_s9 + $0x6b0] sm:$0xff]   ;;  %v5488_v29 = vld [vmem:[%s6994_s9 + $0x628] sm:$0xff]   ;;  %v5491_v32 = vld [vmem:[%s6994_s9 + $0x660] sm:$0xff]  }
 0x667   :  { %v1460_v42 = vsel %vm1194_vm7, %v1458_v25, %v1459_v33  ;;  %v1467_v41 = vrot.slane %v1466_v36, 2  ;;  %5049 = vmatpush3.bf16.msra.mxu0 %v5450_v27  ;;  %v1691_v38 = vpack.c.bf16 %v1602_v37, %v1602_v37  ;;  %v1603_v2 = vcombine.high %v6663_v39, %v6663_v39  ;;  %v5485_v25 = vld [vmem:[%s6994_s9 + $0x6f0] sm:$0xff]   ;;  %v5487_v27 = vld [vmem:[%s6994_s9 + $0x668] sm:$0xff]   ;;  %v5495_v37 = vld [vmem:[%s6994_s9 + $0x658] sm:$0xff]  }
 0x668   :  { %1462 = vst [vmem:[#allocation2 + $0x39] sm:$0x1] %v1460_v42  ;;  %v1473_v43 = vpop.permute.xlu0 %1472  ;;  %5050 = vmatprep.subr.bf16.mxu0 %v5453_v34  ;;  %v1692_v22 = vpack.c.bf16 %v6663_v39, %v6663_v39  ;;  %v5490_v33 = vld [vmem:[%s6994_s9 + $0x6a8] sm:$0xff]   ;;  %v5492_v34 = vld [vmem:[%s6994_s9 + $0x620] sm:$0xff]  }
 0x669   :  { %v1468_v44 = vsel %vm1194_vm7, %v1466_v36, %v1467_v41  ;;  %v1474_v45 = vrot.slane %v1473_v43, 2  ;;  %4189 = vmatprep.mubr.bf16.mxu0 %v1691_v38  ;;  %v1693_v48 = vpack.c.bf16 %v1603_v2, %v1603_v2  ;;  %5071 = vmatpush3.bf16.msra.mxu1 %v5452_v24  ;;  %v5493_v36 = vld [vmem:[%s6994_s9 + $0x6e0] sm:$0xff]   ;;  %v5496_v38 = vld [vmem:[%s6994_s9 + $0x618] sm:$0xff]   ;;  %v5499_v2 = vld [vmem:[%s6994_s9 + $0x650] sm:$0xff]  }
 0x66a   :  { %1470 = vst [vmem:[#allocation2 + $0x3b] sm:$0x1] %v1468_v44  ;;  %v1481_v47 = vpop.permute.xlu1 %1480  ;;  %5072 = vmatprep.subr.bf16.mxu1 %v5455_v30  ;;  %v5494_v42 = vld [vmem:[%s6994_s9 + $0x6a0] sm:$0xff]  }
 0x66b   :  { %v1475_v49 = vsel %vm1194_vm7, %v1473_v43, %v1474_v45  ;;  %v1482_v35 = vrot.slane %v1481_v47, 2  ;;  %5051 = vmatpush3.bf16.msra.mxu0 %v5454_v23  ;;  %4229 = vmatprep.mubr.bf16.mxu1 %v1693_v48  ;;  %v4532_v41 = vld [vmem:[%s6995_s10] ss:$0 sm:$0xff]  ;;  %v5497_v23 = vld [vmem:[%s6994_s9 + $0x6d8] sm:$0xff]  }
 0x66c   :  { %1477 = vst [vmem:[#allocation2 + $0x3d] sm:$0x1] %v1475_v49  ;;  %5052 = vmatprep.subr.bf16.mxu0 %v5458_v46  ;;  %v5498_v48 = vld [vmem:[%s6994_s9 + $0x698] sm:$0xff]  }
 0x66d   :  { %v1483_v10 = vsel %vm1194_vm7, %v1481_v47, %v1482_v35  ;;  %5073 = vmatpush3.bf16.msra.mxu1 %v5457_v51  ;;  %v1492_v62 = vld [vmem:[#allocation2 + $0x30] sm:$0xff] }
 0x66e   :  { %1485 = vst [vmem:[#allocation2 + $0x3f] sm:$0x1] %v1483_v10  ;;  %5074 = vmatprep.subr.bf16.mxu1 %v5460_v53  ;;  %v1604_v5 = vcombine.high %v1492_v62, %v1492_v62  ;;  %v6732_v6 = vrot.slane %v1492_v62, %v6047_v60  ;;  %v5500_v51 = vld [vmem:[%s6994_s9 + $0x610] sm:$0xff]   ;;  %v5503_v10 = vld [vmem:[%s6994_s9 + $0x648] sm:$0xff]   ;;  %v5508_v62 = vld [vmem:[%s6994_s9 + $0x600] sm:$0xff]  }
 0x66f   :  { %5053 = vmatpush3.bf16.msra.mxu0 %v5459_v52  ;;  %v5501_v52 = vld [vmem:[%s6994_s9 + $0x6d0] sm:$0xff]  }
 0x670   :  { %5054 = vmatprep.subr.bf16.mxu0 %v5462_v54  ;;  %v6747_v50 = vrot.slane %v1604_v5, %v6047_v60  ;;  %v1619_v13 = vcombine.high %v6732_v6, %v6732_v6  ;;  %v5510_v5 = vld [vmem:[%s6994_s9 + $0x680] sm:$0xff]  }
 0x671   :  { %5075 = vmatpush3.bf16.msra.mxu1 %v5461_v55 }
 0x672   :  { %5076 = vmatprep.subr.bf16.mxu1 %v5464_v40  ;;  %v1620_v3 = vcombine.high %v6747_v50, %v6747_v50  ;;  %v1695_v21 = vpack.c.bf16 %v1619_v13, %v1619_v13  ;;  %v5504_v40 = vld [vmem:[%s6994_s9 + $0x608] sm:$0xff]  }
 0x673   :  { %5055 = vmatpush3.bf16.msra.mxu0 %v5463_v56  ;;  %v5502_v56 = vld [vmem:[%s6994_s9 + $0x690] sm:$0xff]  }
 0x674   :  { %5056 = vmatprep.subr.bf16.mxu0 %v5466_v18  ;;  %v1697_v26 = vpack.c.bf16 %v1620_v3, %v1620_v3  ;;  %v5505_v18 = vld [vmem:[%s6994_s9 + $0x6c8] sm:$0xff]  }
 0x675   :  { %5077 = vmatpush3.bf16.msra.mxu1 %v5465_v57  ;;  %v1493_v55 = vld [vmem:[#allocation2 + $0x38] sm:$0xff]  ;;  %v5507_v57 = vld [vmem:[%s6994_s9 + $0x640] sm:$0xff]   ;;  %v5520_v3 = vld [vmem:[%s6994_s9 + $0x768] sm:$0xff]  }
 0x676   :  { %5078 = vmatprep.subr.bf16.mxu1 %v5468_v59  ;;  %v6847_v59 = vrot.slane %v1493_v55, %v6047_v60 }
 0x677   :  { %5057 = vmatpush3.bf16.msra.mxu0 %v5467_v58  ;;  %v1621_v58 = vcombine.high %v1493_v55, %v1493_v55 }
 0x678   :  { %5058 = vmatprep.subr.bf16.mxu0 %v5470_v61  ;;  %v5506_v61 = vld [vmem:[%s6994_s9 + $0x688] sm:$0xff]  }
 0x679   :  { %5079 = vmatpush3.bf16.msra.mxu1 %v5469_v63  ;;  %v5509_v63 = vld [vmem:[%s6994_s9 + $0x6c0] sm:$0xff]  }
 0x67a   :  { %5080 = vmatprep.subr.bf16.mxu1 %v5472_v1  ;;  %v6862_v1 = vrot.slane %v1621_v58, %v6047_v60  ;;  %v5513_v60 = vld [vmem:[%s6994_s9 + $0x7f8] sm:$0xff]  }
 0x67b   :  { %5059 = vmatpush3.bf16.msra.mxu0 %v5471_v0  ;;  %v5511_v0 = vld [vmem:[%s6994_s9 + $0x778] sm:$0xff]  }
 0x67c   :  { %5060 = vmatprep.subr.bf16.mxu0 %v5474_v4  ;;  %v1636_v4 = vcombine.high %v6847_v59, %v6847_v59 }
 0x67d   :  { %5081 = vmatpush3.bf16.msra.mxu1 %v5473_v7  ;;  %v5512_v7 = vld [vmem:[%s6994_s9 + $0x738] sm:$0xff]  }
 0x67e   :  { %5082 = vmatprep.subr.bf16.mxu1 %v5476_v11  ;;  %v1637_v11 = vcombine.high %v6862_v1, %v6862_v1  ;;  %v1699_v13 = vpack.c.bf16 %v1636_v4, %v1636_v4 }
 0x67f   :  { %5061 = vmatpush3.bf16.msra.mxu0 %v5475_v9  ;;  %v1694_v9 = vpack.c.bf16 %v6732_v6, %v6732_v6  ;;  %v1696_v6 = vpack.c.bf16 %v6747_v50, %v6747_v50  ;;  %v5519_v50 = vld [vmem:[%s6994_s9 + $0x7b0] sm:$0xff]  }
 0x680   :  { %5090 = vmatprep.subr.bf16.mxu0 %v5478_v12  ;;  %v5516_v12 = vld [vmem:[%s6994_s9 + $0x770] sm:$0xff]  }
 0x681   :  { %5083 = vmatpush3.bf16.msra.mxu1 %v5477_v14  ;;  %v5514_v14 = vld [vmem:[%s6994_s9 + $0x7b8] sm:$0xff]  }
 0x682   :  { %4190 = vmatmul.mubr.bf16.vlgmr.msra.gmra.mxu0 %v1690_v16  ;;  %5112 = vmatprep.subr.bf16.mxu1 %v5480_v17  ;;  %v5518_v16 = vld [vmem:[%s6994_s9 + $0x7f0] sm:$0xff]   ;;  %v1701_v17 = vpack.c.bf16 %v1637_v11, %v1637_v11 }
 0x683   :  { %5091 = vmatpush3.bf16.msra.mxu0 %v5479_v15  ;;  %4269 = vmatprep.mubr.bf16.mxu0 %v1695_v21  ;;  %v5517_v15 = vld [vmem:[%s6994_s9 + $0x730] sm:$0xff]   ;;  %v5522_v21 = vld [vmem:[%s6994_s9 + $0x7e8] sm:$0xff]  }
 0x684   :  { %5092 = vmatprep.subr.bf16.mxu0 %v5483_v19  ;;  %4230 = vmatmul.mubr.bf16.vlgmr.msra.gmra.mxu1 %v1692_v22  ;;  %v5521_v19 = vld [vmem:[%s6994_s9 + $0x728] sm:$0xff]  }
 0x685   :  { %5113 = vmatpush3.bf16.msra.mxu1 %v5481_v20  ;;  %4309 = vmatprep.mubr.bf16.mxu1 %v1697_v26  ;;  %v5524_v20 = vld [vmem:[%s6994_s9 + $0x760] sm:$0xff]   ;;  %v5523_v22 = vld [vmem:[%s6994_s9 + $0x7a8] sm:$0xff]   ;;  %v5528_v26 = vld [vmem:[%s6994_s9 + $0x758] sm:$0xff]  }
 0x686   :  { %5114 = vmatprep.subr.bf16.mxu1 %v5485_v25  ;;  %v5526_v25 = vld [vmem:[%s6994_s9 + $0x7e0] sm:$0xff]  }
 0x687   :  { %5093 = vmatpush3.bf16.msra.mxu0 %v5484_v8  ;;  %v5525_v8 = vld [vmem:[%s6994_s9 + $0x720] sm:$0xff]  }
 0x688   :  { %5094 = vmatprep.subr.bf16.mxu0 %v5487_v27 }
 0x689   :  { %5115 = vmatpush3.bf16.msra.mxu1 %v5486_v28  ;;  %v5527_v28 = vld [vmem:[%s6994_s9 + $0x7a0] sm:$0xff]  }
 0x68a   :  { %5116 = vmatprep.subr.bf16.mxu1 %v5489_v31 }
 0x68b   :  { %5095 = vmatpush3.bf16.msra.mxu0 %v5488_v29 }
 0x68c   :  { %5096 = vmatprep.subr.bf16.mxu0 %v5491_v32  ;;  %v5529_v32 = vld [vmem:[%s6994_s9 + $0x718] sm:$0xff]  }
 0x68d   :  { %v4842_v39 = vpop.f32.mrf.mxu0  ;;  %5117 = vmatpush3.bf16.msra.mxu1 %v5490_v33  ;;  %v5530_v33 = vld [vmem:[%s6994_s9 + $0x7d8] sm:$0xff]  }
 0x68e   :  { %5118 = vmatprep.subr.bf16.mxu1 %v5493_v36  ;;  %v5532_v36 = vld [vmem:[%s6994_s9 + $0x750] sm:$0xff]  }
 0x68f   :  { %5097 = vmatpush3.bf16.msra.mxu0 %v5492_v34  ;;  %v4843_v24 = vpop.f32.mrf.mxu0 }
 0x690   :  { %v4864_v43 = vpop.f32.mrf.mxu1  ;;  %v4844_v30 = vadd.f32 %v4843_v24, %v4842_v39  ;;  %5098 = vmatprep.subr.bf16.mxu0 %v5495_v37  ;;  %v5531_v24 = vld [vmem:[%s6994_s9 + $0x798] sm:$0xff]  }
 0x691   :  { %v4845_v44 = vpop.f32.mrf.mxu0  ;;  %5119 = vmatpush3.bf16.msra.mxu1 %v5494_v42 }
 0x692   :  { %v4865_v45 = vpop.f32.mrf.mxu1  ;;  %v3792_v46 = vadd.f32 %v4844_v30, %v4532_v41  ;;  %5120 = vmatprep.subr.bf16.mxu1 %v5497_v23  ;;  %v5533_v23 = vld [vmem:[%s6994_s9 + $0x710] sm:$0xff]   ;;  %v5536_v44 = vld [vmem:[%s6994_s9 + $0x748] sm:$0xff]  }
 0x693   :  { %v4866_v47 = vadd.f32 %v4865_v45, %v4864_v43  ;;  %5099 = vmatpush3.bf16.msra.mxu0 %v5496_v38  ;;  %v4846_v49 = vpop.f32.mrf.mxu0  ;;  %v5534_v30 = vld [vmem:[%s6994_s9 + $0x7d0] sm:$0xff]  }
 0x694   :  { %v4867_v35 = vpop.f32.mrf.mxu1  ;;  %5100 = vmatprep.subr.bf16.mxu0 %v5499_v2  ;;  %v5540_v49 = vld [vmem:[%s6994_s9 + $0x740] sm:$0xff]  }
 0x695   :  { %v6829_v53 = vadd.f32 %v4866_v47, %v3792_v46  ;;  %5121 = vmatpush3.bf16.msra.mxu1 %v5498_v48  ;;  %v5535_v46 = vld [vmem:[%s6994_s9 + $0x790] sm:$0xff]   ;;  %v5537_v47 = vld [vmem:[%s6994_s9 + $0x708] sm:$0xff]  }
 0x696   :  { %v4868_v54 = vpop.f32.mrf.mxu1  ;;  %5122 = vmatprep.subr.bf16.mxu1 %v5501_v52  ;;  %v5538_v48 = vld [vmem:[%s6994_s9 + $0x7c8] sm:$0xff]   ;;  %v5542_v52 = vld [vmem:[%s6994_s9 + $0x7c0] sm:$0xff]  }
 0x697   :  { %5101 = vmatpush3.bf16.msra.mxu0 %v5500_v51  ;;  %v5539_v35 = vld [vmem:[%s6994_s9 + $0x788] sm:$0xff]   ;;  %v5541_v51 = vld [vmem:[%s6994_s9 + $0x700] sm:$0xff]   ;;  %v1700_v54 = vpack.c.bf16 %v6862_v1, %v6862_v1 }
 0x698   :  { %5102 = vmatprep.subr.bf16.mxu0 %v5503_v10  ;;  %v1698_v10 = vpack.c.bf16 %v6847_v59, %v6847_v59 }
 0x699   :  { %5123 = vmatpush3.bf16.msra.mxu1 %v5502_v56 }
 0x69a   :  { %5124 = vmatprep.subr.bf16.mxu1 %v5505_v18 }
 0x69b   :  { %5103 = vmatpush3.bf16.msra.mxu0 %v5504_v40 }
 0x69c   :  { %5104 = vmatprep.subr.bf16.mxu0 %v5507_v57 }
 0x69d   :  { %5125 = vmatpush3.bf16.msra.mxu1 %v5506_v61 }
 0x69e   :  { %5126 = vmatprep.subr.bf16.mxu1 %v5509_v63 }
 0x69f   :  { %5105 = vmatpush3.bf16.msra.mxu0 %v5508_v62 }
 0x6a0   :  { %5134 = vmatprep.subr.bf16.mxu0 %v5511_v0 }
 0x6a1   :  { %5127 = vmatpush3.bf16.msra.mxu1 %v5510_v5 }
 0x6a2   :  { %4270 = vmatmul.mubr.bf16.vlgmr.msra.gmra.mxu0 %v1694_v9  ;;  %5156 = vmatprep.subr.bf16.mxu1 %v5513_v60 }
 0x6a3   :  { %5135 = vmatpush3.bf16.msra.mxu0 %v5512_v7  ;;  %4349 = vmatprep.mubr.bf16.mxu0 %v1699_v13 }
 0x6a4   :  { %5136 = vmatprep.subr.bf16.mxu0 %v5516_v12  ;;  %4310 = vmatmul.mubr.bf16.vlgmr.msra.gmra.mxu1 %v1696_v6 }
 0x6a5   :  { %5157 = vmatpush3.bf16.msra.mxu1 %v5514_v14  ;;  %4389 = vmatprep.mubr.bf16.mxu1 %v1701_v17  ;;  %v5544_v17 = vld [vmem:[%s6996_s11 + $0x8] sm:$0xff]  }
 0x6a6   :  { %5158 = vmatprep.subr.bf16.mxu1 %v5518_v16 }
 0x6a7   :  { %5137 = vmatpush3.bf16.msra.mxu0 %v5517_v15 }
 0x6a8   :  { %5138 = vmatprep.subr.bf16.mxu0 %v5520_v3  ;;  %v5577_v3 = vmov 0.0  }
 0x6a9   :  { %5159 = vmatpush3.bf16.msra.mxu1 %v5519_v50  ;;  %v5545_v50 = vld [vmem:[%s6996_s11] sm:$0xff]  }
 0x6aa   :  { %5160 = vmatprep.subr.bf16.mxu1 %v5522_v21 }
 0x6ab   :  { %5139 = vmatpush3.bf16.msra.mxu0 %v5521_v19 }
 0x6ac   :  { %5140 = vmatprep.subr.bf16.mxu0 %v5524_v20 }
 0x6ad   :  { %5161 = vmatpush3.bf16.msra.mxu1 %v5523_v22 }
 0x6ae   :  { %v4886_v27 = vpop.f32.mrf.mxu0  ;;  %5162 = vmatprep.subr.bf16.mxu1 %v5526_v25 }
 0x6af   :  { %5141 = vmatpush3.bf16.msra.mxu0 %v5525_v8 }
 0x6b0   :  { %v4887_v29 = vpop.f32.mrf.mxu0  ;;  %v4908_v31 = vpop.f32.mrf.mxu1  ;;  %5142 = vmatprep.subr.bf16.mxu0 %v5528_v26 }
 0x6b1   :  { %v4888_v34 = vadd.f32 %v4887_v29, %v4886_v27  ;;  %5163 = vmatpush3.bf16.msra.mxu1 %v5527_v28 }
 0x6b2   :  { %v4889_v37 = vpop.f32.mrf.mxu0  ;;  %v4909_v39 = vpop.f32.mrf.mxu1  ;;  %5164 = vmatprep.subr.bf16.mxu1 %v5530_v33 }
 0x6b3   :  { %v3872_v42 = vadd.f32 %v4888_v34, %v6829_v53  ;;  %v4910_v41 = vadd.f32 %v4909_v39, %v4908_v31  ;;  %5143 = vmatpush3.bf16.msra.mxu0 %v5529_v32  ;;  %v5543_v53 = vld [vmem:[%s6994_s9 + $0x780] sm:$0xff]  }
 0x6b4   :  { %v4890_v43 = vpop.f32.mrf.mxu0  ;;  %v4911_v38 = vpop.f32.mrf.mxu1  ;;  %5144 = vmatprep.subr.bf16.mxu0 %v5532_v36 }
 0x6b5   :  { %v3912_v2 = vadd.f32 %v4910_v41, %v3872_v42  ;;  %5165 = vmatpush3.bf16.msra.mxu1 %v5531_v24 }
 0x6b6   :  { %v4912_v45 = vpop.f32.mrf.mxu1  ;;  %5166 = vmatprep.subr.bf16.mxu1 %v5534_v30 }
 0x6b7   :  { %5145 = vmatpush3.bf16.msra.mxu0 %v5533_v23 }
 0x6b8   :  { %5146 = vmatprep.subr.bf16.mxu0 %v5536_v44 }
 0x6b9   :  { %5167 = vmatpush3.bf16.msra.mxu1 %v5535_v46 }
 0x6ba   :  { %5168 = vmatprep.subr.bf16.mxu1 %v5538_v48 }
 0x6bb   :  { %5147 = vmatpush3.bf16.msra.mxu0 %v5537_v47 }
 0x6bc   :  { %5148 = vmatprep.subr.bf16.mxu0 %v5540_v49 }
 0x6bd   :  { %5169 = vmatpush3.bf16.msra.mxu1 %v5539_v35 }
 0x6be   :  { %5170 = vmatprep.subr.bf16.mxu1 %v5542_v52 }
 0x6bf   :  { %5149 = vmatpush3.bf16.msra.mxu0 %v5541_v51 }
 0x6c0   :  { %5247 = vmatprep.subr.bf16.mxu0 %v5577_v3 }
 0x6c1   :  { %5171 = vmatpush3.bf16.msra.mxu1 %v5543_v53 }
 0x6c2   :  { %4350 = vmatmul.mubr.bf16.vlgmr.msra.gmra.mxu0 %v1698_v10 }
 0x6c3   :  { %5248 = vmatpush3.bf16.msra.mxu0 %v5544_v17  ;;  %5251 = vmatprep.mubr.msk.bf16.mxu0 %vm5578_vm8, %v5577_v3 }
 0x6c4   :  { %4390 = vmatmul.mubr.bf16.vlgmr.msra.gmra.mxu1 %v1700_v54  ;;  %5249 = vmatprep.subr.bf16.mxu0 %v5577_v3 }
 0x6c7   :  { %5250 = vmatpush3.bf16.msra.mxu0 %v5545_v50 }
 0x6ce   :  { %v4930_v55 = vpop.f32.mrf.mxu0 }
 0x6d0   :  { %v4931_v56 = vpop.f32.mrf.mxu0  ;;  %v4952_v40 = vpop.f32.mrf.mxu1 }
 0x6d1   :  { %v4932_v18 = vadd.f32 %v4931_v56, %v4930_v55 }
 0x6d2   :  { %v4933_v57 = vpop.f32.mrf.mxu0  ;;  %v4953_v58 = vpop.f32.mrf.mxu1 }
 0x6d3   :  { %v3952_v61 = vadd.f32 %v4932_v18, %v3912_v2  ;;  %v4954_v62 = vadd.f32 %v4953_v58, %v4952_v40 }
 0x6d4   :  { %v4934_v63 = vpop.f32.mrf.mxu0  ;;  %v4955_v0 = vpop.f32.mrf.mxu1 }
 0x6d5   :  { %v3992_v4 = vadd.f32 %v4954_v62, %v3952_v61 }
 0x6d6   :  { %v4956_v5 = vpop.f32.mrf.mxu1 }
 0x6ee   :  { %v4974_v7 = vpop.f32.mrf.mxu0 }
 0x6f0   :  { %v4975_v59 = vpop.f32.mrf.mxu0  ;;  %v4996_v9 = vpop.f32.mrf.mxu1 }
 0x6f1   :  { %v4976_v60 = vadd.f32 %v4975_v59, %v4974_v7  ;;  %v4789_v59 = vld [vmem:[%s6997_s12] ss:$0 sm:$0xff] }
 0x6f2   :  { %v4977_v11 = vpop.f32.mrf.mxu0  ;;  %v4997_v12 = vpop.f32.mrf.mxu1 }
 0x6f3   :  { %v4032_v1 = vadd.f32 %v4976_v60, %v3992_v4  ;;  %v4998_v13 = vadd.f32 %v4997_v12, %v4996_v9 }
 0x6f4   :  { %v4978_v14 = vpop.f32.mrf.mxu0  ;;  %v4999_v6 = vpop.f32.mrf.mxu1 }
 0x6f5   :  { %v4072_v15 = vadd.f32 %v4998_v13, %v4032_v1 }
 0x6f6   :  { %v5000_v16 = vpop.f32.mrf.mxu1 }
 0x722   :  { %v5018_v19 = vpop.f32.mrf.mxu0 }
 0x724   :  { %v5019_v21 = vpop.f32.mrf.mxu0  ;;  %v5040_v22 = vpop.f32.mrf.mxu1 }
 0x725   :  { %v5020_v20 = vadd.f32 %v5019_v21, %v5018_v19 }
 0x726   :  { %v5021_v8 = vpop.f32.mrf.mxu0  ;;  %v5041_v26 = vpop.f32.mrf.mxu1 }
 0x727   :  { %v4112_v25 = vadd.f32 %v5020_v20, %v4072_v15  ;;  %v5042_v27 = vadd.f32 %v5041_v26, %v5040_v22 }
 0x728   :  { %v5022_v28 = vpop.f32.mrf.mxu0  ;;  %v5043_v29 = vpop.f32.mrf.mxu1 }
 0x729   :  { %v4152_v31 = vadd.f32 %v5042_v27, %v4112_v25 }
 0x72a   :  { %v5044_v32 = vpop.f32.mrf.mxu1 }
 0x742   :  { %v5062_v33 = vpop.f32.mrf.mxu0 }
 0x744   :  { %v5063_v34 = vpop.f32.mrf.mxu0  ;;  %v5084_v36 = vpop.f32.mrf.mxu1 }
 0x745   :  { %v5064_v47 = vadd.f32 %v5063_v34, %v5062_v33 }
 0x746   :  { %v5065_v37 = vpop.f32.mrf.mxu0  ;;  %v5085_v39 = vpop.f32.mrf.mxu1 }
 0x747   :  { %v4192_v48 = vadd.f32 %v5064_v47, %v4152_v31  ;;  %v5086_v49 = vadd.f32 %v5085_v39, %v5084_v36 }
 0x748   :  { %v5066_v42 = vpop.f32.mrf.mxu0  ;;  %v5087_v41 = vpop.f32.mrf.mxu1 }
 0x749   :  { %v4232_v51 = vadd.f32 %v5086_v49, %v4192_v48 }
 0x74a   :  { %v5088_v24 = vpop.f32.mrf.mxu1 }
 0x762   :  { %v5106_v43 = vpop.f32.mrf.mxu0 }
 0x764   :  { %v5107_v38 = vpop.f32.mrf.mxu0  ;;  %v5128_v23 = vpop.f32.mrf.mxu1 }
 0x765   :  { %v5108_v35 = vadd.f32 %v5107_v38, %v5106_v43 }
 0x766   :  { %v5109_v30 = vpop.f32.mrf.mxu0  ;;  %v5129_v2 = vpop.f32.mrf.mxu1 }
 0x767   :  { %v4272_v52 = vadd.f32 %v5108_v35, %v4232_v51  ;;  %v5130_v53 = vadd.f32 %v5129_v2, %v5128_v23 }
 0x768   :  { %v5110_v44 = vpop.f32.mrf.mxu0  ;;  %v5131_v45 = vpop.f32.mrf.mxu1 }
 0x769   :  { %v4312_v55 = vadd.f32 %v5130_v53, %v4272_v52 }
 0x76a   :  { %v5132_v46 = vpop.f32.mrf.mxu1 }
 0x782   :  { %v5150_v10 = vpop.f32.mrf.mxu0 }
 0x784   :  { %v5151_v54 = vpop.f32.mrf.mxu0  ;;  %v5172_v40 = vpop.f32.mrf.mxu1 }
 0x785   :  { %v5152_v56 = vadd.f32 %v5151_v54, %v5150_v10 }
 0x786   :  { %v5153_v18 = vpop.f32.mrf.mxu0  ;;  %v5173_v58 = vpop.f32.mrf.mxu1 }
 0x787   :  { %v4352_v57 = vadd.f32 %v5152_v56, %v4312_v55  ;;  %v5174_v61 = vadd.f32 %v5173_v58, %v5172_v40 }
 0x788   :  { %v5154_v62 = vpop.f32.mrf.mxu0  ;;  %v5175_v63 = vpop.f32.mrf.mxu1 }
 0x789   :  { %v4392_v0 = vadd.f32 %v5174_v61, %v4352_v57 }
 0x78a   :  { %v5176_v4 = vpop.f32.mrf.mxu1 }
 0x78b   :  { %v4397_v5 = vmax.f32 %v4392_v0, 0.0 }
 0x78d   :  { %v4398_v7 = vpack.c.bf16 %v4397_v5, %v4397_v5 }
 0x78f   :  { %5252 = vmatmul.mubr.msk.bf16.vlgmr.msra.gmra.mxu0 %vm4422_vm9, %v4398_v7 }
 0x84f   :  { %v4460_v9 = vpop.f32.mrf.mxu0 }
 0x850   :  { %v4461_v60 = vadd.f32 %v4789_v59, %v4460_v9 }
 0x851   :  { %v5253_v11 = vpop.f32.mrf.mxu0 }
 0x852   :  { %4466 = vst [vmem:[#allocation3] sm:$0x3] %v4461_v60 }
 0x853   :  { %v4463_v12 = vpop.f32.mrf.mxu0 }
 0x854   :  { %5557 = shalt.err (!%p5554_p4)
}
 0x855   :  { %4476 = dma.vmem_to_hbm [thread:$0]  %s4474_s22, 32, %s6998_s13, [#allocation4]   ;;  %v5254_v1 = vpop.f32.mrf.mxu0 }
 0x856   :  { %5566 = dma.done.wait [#allocation4], 32  }
 0x857   :  { %5567 = vsyncadd [#allocation4], 4294967264 }
 0x858   :  { %4480 = vsyncpa [#allocation4], 1 }

</bundles_post_ra>
